<compile_context>
chip_gen: v5e
topology: v5e:2x2
jax: 0.10.0
libtpu: 0.0.40
codegen_flags: <defaults>
</compile_context>

<pallas_src>
import math
import functools

import jax
import jax.numpy as jnp
from jax.experimental import pallas as pl
from jax.experimental.pallas import tpu as pltpu

EPS = 1e-6
NEG_INF = -1e9


# ------------------------------ helpers -------------------------------------

def _row_tile(m, cap=1024, min_mult=8):
    """Largest row tile (multiple of min_mult, divides m) up to cap; else m."""
    for t in (1024, 512, 256, 128, 64, 32, 16, 8):
        if t <= cap and t <= m and m % t == 0 and t % min_mult == 0:
            return t
    return m


def _nbytes(a):
    return int(a.size) * a.dtype.itemsize


def _cparams(semantics, est_bytes):
    # Footprint-derived scoped-VMEM limit: headroom under v7x's 64 MiB physical
    # VMEM, floor at v5e's 16 MiB scoped default.
    vmem = int(min(max(int(est_bytes * 1.5) + (4 << 20), 16 << 20), 64 << 20))
    return pltpu.CompilerParams(dimension_semantics=semantics,
                                vmem_limit_bytes=vmem)


def _probe_buffered_one():
    """Check (once, eagerly) that pipeline_mode=pl.Buffered(1) is supported."""
    try:
        def k(x_ref, o_ref):
            o_ref[...] = x_ref[...] + 1.0
        spec = pl.BlockSpec((8, 128), lambda i: (0, 0),
                            pipeline_mode=pl.Buffered(1))
        f = pl.pallas_call(
            k, out_shape=jax.ShapeDtypeStruct((8, 128), jnp.float32),
            grid=(1,), in_specs=[spec],
            out_specs=pl.BlockSpec((8, 128), lambda i: (0, 0)))
        jax.block_until_ready(f(jnp.zeros((8, 128), jnp.float32)))
        return True
    except Exception:
        return False


_BUFFERED_ONE = _probe_buffered_one()


def _resident(shape, index_map):
    """BlockSpec for weights whose block never changes: single-buffer if possible."""
    if _BUFFERED_ONE:
        return pl.BlockSpec(shape, index_map, pipeline_mode=pl.Buffered(1))
    return pl.BlockSpec(shape, index_map)


def _layernorm(x, g, b):
    # annotated-transformer LayerNorm: unbiased std, eps added to std.
    d = x.shape[-1]
    mean = jnp.mean(x, axis=-1, keepdims=True)
    var = jnp.sum((x - mean) ** 2, axis=-1, keepdims=True) / (d - 1)
    return g * (x - mean) / (jnp.sqrt(var) + EPS) + b


# ----------------------------- Pallas kernels -------------------------------

def _layernorm_kernel(x_ref, g_ref, b_ref, o_ref):
    o_ref[...] = _layernorm(x_ref[...], g_ref[...], b_ref[...])


def _norm_qkv_kernel(x_ref, g_ref, b_ref, w_ref, bias_ref, q_ref, kv_ref, *, scale):
    # q  = (LN(x) @ Wq + bq) * (1/sqrt(dk))   -> bf16
    # kv =  LN(x) @ [Wk|Wv] + [bk|bv]         -> bf16
    D = q_ref.shape[-1]
    xn = _layernorm(x_ref[...], g_ref[...], b_ref[...])
    y = jnp.dot(xn.astype(jnp.bfloat16), w_ref[...],
                preferred_element_type=jnp.float32) + bias_ref[...]
    q_ref[...] = (y[:, :D] * scale).astype(jnp.bfloat16)
    kv_ref[...] = y[:, D:].astype(jnp.bfloat16)


def _kv_linear_kernel(x_ref, w_ref, bias_ref, o_ref):
    # memory K/V projection: y = x @ [Wk|Wv] + b -> bf16
    y = jnp.dot(x_ref[...].astype(jnp.bfloat16), w_ref[...],
                preferred_element_type=jnp.float32) + bias_ref[...]
    o_ref[...] = y.astype(jnp.bfloat16)


def _mask_bias(mask_ref, tq):
    # additive -1e9 mask bias, computed once per program (not per head).
    m = mask_ref[0].astype(jnp.float32)                 # (Tm, Tk)
    bias = jnp.where(m == 0.0, NEG_INF, 0.0)
    tm_rows = bias.shape[0]
    if tm_rows != 1 and tm_rows != tq:                  # q-tiled grid: take our rows
        row0 = pl.multiple_of(pl.program_id(1) * tq, tq)
        bias = jax.lax.dynamic_slice_in_dim(bias, row0, tq, axis=0)
    return bias


def _mha_core(q, kv, bias, wo, num_heads):
    # q (tq, D) bf16 already scaled by 1/sqrt(dk); kv (Tk, 2D) bf16;
    # bias (tq|1, Tk) f32 additive mask; wo (D, D) bf16.
    # Per-head scores/softmax/AV; per-head contexts are concatenated along the
    # lane axis and projected with ONE (tq,D)@(D,D) matmul (MXU-full K = D,
    # no loop-carried f32 accumulator).
    # TODO(synk): for long Tk switch to flash-style Tk tiling (online softmax)
    #             so the (tq, Tk) score buffer stays bounded on v7x VMEM.
    D = q.shape[-1]
    dk = D // num_heads
    ctx = []
    for h in range(num_heads):                          # static unroll over heads
        lo = h * dk
        s = jax.lax.dot_general(q[:, lo:lo + dk], kv[:, lo:lo + dk],
                                (((1,), (1,)), ((), ())),
                                preferred_element_type=jnp.float32) + bias
        mx = jnp.max(s, axis=-1, keepdims=True)
        e = jnp.exp(s - mx)
        p = e * pl.reciprocal(jnp.sum(e, axis=-1, keepdims=True), approx=True)
        c = jnp.dot(p.astype(jnp.bfloat16), kv[:, D + lo:D + lo + dk],
                    preferred_element_type=jnp.float32)
        ctx.append(c.astype(jnp.bfloat16))
    ctx = jnp.concatenate(ctx, axis=-1)                 # (tq, D) bf16, head-concat
    return jnp.dot(ctx, wo, preferred_element_type=jnp.float32)


def _self_attn_kernel(q_ref, kv_ref, mask_ref, x_ref, wo_ref, bo_ref,
                      g1_ref, nb1_ref, wq_ref, bq_ref, out_ref, qn_ref,
                      *, num_heads, scale):
    tq = q_ref.shape[1]
    bias = _mask_bias(mask_ref, tq)
    attn = _mha_core(q_ref[0], kv_ref[0], bias, wo_ref[...], num_heads)
    out = x_ref[0] + attn + bo_ref[...]
    out_ref[0] = out
    # fused epilogue: cross-attention query = (LN1(out) @ Wq + bq) * scale
    xn = _layernorm(out, g1_ref[...], nb1_ref[...])
    qn = jnp.dot(xn.astype(jnp.bfloat16), wq_ref[...],
                 preferred_element_type=jnp.float32) + bq_ref[...]
    qn_ref[0] = (qn * scale).astype(jnp.bfloat16)


def _src_attn_kernel(q_ref, kv_ref, mask_ref, x_ref, wo_ref, bo_ref, out_ref,
                     *, num_heads):
    tq = q_ref.shape[1]
    bias = _mask_bias(mask_ref, tq)
    attn = _mha_core(q_ref[0], kv_ref[0], bias, wo_ref[...], num_heads)
    out_ref[0] = x_ref[0] + attn + bo_ref[...]


def _norm_ffn_kernel(x_ref, g_ref, b_ref, w1_ref, b1_ref, w2_ref, b2_ref, o_ref):
    # out = x + W2 @ relu(W1 @ LN2(x) + b1) + b2
    x = x_ref[...]
    xn = _layernorm(x, g_ref[...], b_ref[...])
    h = jnp.dot(xn.astype(jnp.bfloat16), w1_ref[...],
                preferred_element_type=jnp.float32) + b1_ref[...]
    h = jnp.maximum(h, 0.0)
    y = jnp.dot(h.astype(jnp.bfloat16), w2_ref[...],
                preferred_element_type=jnp.float32) + b2_ref[...]
    o_ref[...] = x + y


def _norm_ffn_final_kernel(x_ref, g_ref, b_ref, w1_ref, b1_ref, w2_ref, b2_ref,
                           gf_ref, bf_ref, o_ref):
    # same as above, plus the decoder's final LayerNorm fused into the epilogue.
    x = x_ref[...]
    xn = _layernorm(x, g_ref[...], b_ref[...])
    h = jnp.dot(xn.astype(jnp.bfloat16), w1_ref[...],
                preferred_element_type=jnp.float32) + b1_ref[...]
    h = jnp.maximum(h, 0.0)
    y = jnp.dot(h.astype(jnp.bfloat16), w2_ref[...],
                preferred_element_type=jnp.float32) + b2_ref[...]
    o_ref[...] = _layernorm(x + y, gf_ref[...], bf_ref[...])


# ----------------------------- Pallas wrappers ------------------------------

def layer_norm(x2d, g, b):
    M, D = x2d.shape
    tm = _row_tile(M)
    est = 4 * tm * D * 4
    return pl.pallas_call(
        _layernorm_kernel,
        out_shape=jax.ShapeDtypeStruct((M, D), jnp.float32),
        grid=(M // tm,),
        in_specs=[pl.BlockSpec((tm, D), lambda i: (i, 0)),
                  _resident((1, D), lambda i: (0, 0)),
                  _resident((1, D), lambda i: (0, 0))],
        out_specs=pl.BlockSpec((tm, D), lambda i: (i, 0)),
        compiler_params=_cparams(("parallel",), est),
    )(x2d, g, b)


def norm_qkv(x2d, g, b, W, bias, scale):
    # fused LayerNorm + QKV projection; bf16 outputs (q pre-scaled by 1/sqrt(dk)).
    M, D = x2d.shape
    D3 = W.shape[1]
    tm = _row_tile(M, min_mult=16)
    est = (_nbytes(W) + _nbytes(bias)
           + 2 * tm * D * 4 + 2 * tm * D3 * 2 + tm * D3 * 4)
    kern = functools.partial(_norm_qkv_kernel, scale=scale)
    return pl.pallas_call(
        kern,
        out_shape=(jax.ShapeDtypeStruct((M, D), jnp.bfloat16),
                   jax.ShapeDtypeStruct((M, D3 - D), jnp.bfloat16)),
        grid=(M // tm,),
        in_specs=[pl.BlockSpec((tm, D), lambda i: (i, 0)),
                  _resident((1, D), lambda i: (0, 0)),
                  _resident((1, D), lambda i: (0, 0)),
                  _resident((D, D3), lambda i: (0, 0)),
                  _resident((1, D3), lambda i: (0, 0))],
        out_specs=[pl.BlockSpec((tm, D), lambda i: (i, 0)),
                   pl.BlockSpec((tm, D3 - D), lambda i: (i, 0))],
        compiler_params=_cparams(("parallel",), est),
    )(x2d, g, b, W, bias)


def kv_linear(x2d, W, bias):
    # memory K/V projection (no norm); bf16 output.
    M, D = x2d.shape
    Dout = W.shape[1]
    tm = _row_tile(M, min_mult=16)
    est = (_nbytes(W) + _nbytes(bias)
           + 2 * tm * D * 4 + 2 * tm * Dout * 2 + tm * Dout * 4)
    return pl.pallas_call(
        _kv_linear_kernel,
        out_shape=jax.ShapeDtypeStruct((M, Dout), jnp.bfloat16),
        grid=(M // tm,),
        in_specs=[pl.BlockSpec((tm, D), lambda i: (i, 0)),
                  _resident((D, Dout), lambda i: (0, 0)),
                  _resident((1, Dout), lambda i: (0, 0))],
        out_specs=pl.BlockSpec((tm, Dout), lambda i: (i, 0)),
        compiler_params=_cparams(("parallel",), est),
    )(x2d, W, bias)


def self_attention(q, kv, mask, x, wo, bo, g1, b1, wq, bq, num_heads, scale):
    # q (B,T,D) bf16 pre-scaled, kv (B,T,2D) bf16, mask (B,Tm,T) int8,
    # x (B,T,D) f32 residual.  Outputs: residual-updated x (f32) and the
    # cross-attention query (bf16) from the fused norm1+Wq epilogue.
    B, T, D = x.shape
    Tk = kv.shape[1]
    Tm = mask.shape[1]
    tq = _row_tile(T, cap=256, min_mult=16)
    nq = T // tq
    est = (_nbytes(wo) + _nbytes(wq)
           + 2 * Tk * 2 * D * 2 + 2 * tq * D * 2
           + 2 * (tq * D * 4 + tq * D * 4 + tq * D * 2)
           + Tm * Tk + tq * Tk * 4)
    kern = functools.partial(_self_attn_kernel, num_heads=num_heads, scale=scale)
    return pl.pallas_call(
        kern,
        out_shape=(jax.ShapeDtypeStruct((B, T, D), jnp.float32),
                   jax.ShapeDtypeStruct((B, T, D), jnp.bfloat16)),
        grid=(B, nq),
        in_specs=[
            pl.BlockSpec((1, tq, D), lambda b, i: (b, i, 0)),
            pl.BlockSpec((1, Tk, 2 * D), lambda b, i: (b, 0, 0)),
            pl.BlockSpec((1, Tm, Tk), lambda b, i: (b, 0, 0)),
            pl.BlockSpec((1, tq, D), lambda b, i: (b, i, 0)),
            _resident((D, D), lambda b, i: (0, 0)),
            _resident((1, D), lambda b, i: (0, 0)),
            _resident((1, D), lambda b, i: (0, 0)),
            _resident((1, D), lambda b, i: (0, 0)),
            _resident((D, D), lambda b, i: (0, 0)),
            _resident((1, D), lambda b, i: (0, 0)),
        ],
        out_specs=[pl.BlockSpec((1, tq, D), lambda b, i: (b, i, 0)),
                   pl.BlockSpec((1, tq, D), lambda b, i: (b, i, 0))],
        compiler_params=_cparams(("parallel", "parallel"), est),
    )(q, kv, mask, x, wo, bo, g1, b1, wq, bq)


def src_attention(q, kv, mask, x, wo, bo, num_heads):
    # q (B,T,D) bf16 pre-scaled, kv (B,S,2D) bf16, mask (B,Tm,S) int8, x f32.
    B, T, D = x.shape
    S = kv.shape[1]
    Tm = mask.shape[1]
    tq = _row_tile(T, cap=256, min_mult=16)
    nq = T // tq
    est = (_nbytes(wo) + 2 * S * 2 * D * 2 + 2 * tq * D * 2
           + 4 * tq * D * 4 + Tm * S + tq * S * 4)
    kern = functools.partial(_src_attn_kernel, num_heads=num_heads)
    return pl.pallas_call(
        kern,
        out_shape=jax.ShapeDtypeStruct((B, T, D), jnp.float32),
        grid=(B, nq),
        in_specs=[
            pl.BlockSpec((1, tq, D), lambda b, i: (b, i, 0)),
            pl.BlockSpec((1, S, 2 * D), lambda b, i: (b, 0, 0)),
            pl.BlockSpec((1, Tm, S), lambda b, i: (b, 0, 0)),
            pl.BlockSpec((1, tq, D), lambda b, i: (b, i, 0)),
            _resident((D, D), lambda b, i: (0, 0)),
            _resident((1, D), lambda b, i: (0, 0)),
        ],
        out_specs=pl.BlockSpec((1, tq, D), lambda b, i: (b, i, 0)),
        compiler_params=_cparams(("parallel", "parallel"), est),
    )(q, kv, mask, x, wo, bo)


def norm_ffn(x2d, g, b, w1, b1, w2, b2, final_g=None, final_b=None):
    # x + FFN(LayerNorm(x)); optionally fuses the decoder's final LayerNorm.
    M, D = x2d.shape
    Dff = w1.shape[1]
    tm = _row_tile(M)
    est = (_nbytes(w1) + _nbytes(w2)
           + 4 * tm * D * 4 + tm * Dff * 4)
    in_specs = [pl.BlockSpec((tm, D), lambda i: (i, 0)),
                _resident((1, D), lambda i: (0, 0)),
                _resident((1, D), lambda i: (0, 0)),
                _resident((D, Dff), lambda i: (0, 0)),
                _resident((1, Dff), lambda i: (0, 0)),
                _resident((Dff, D), lambda i: (0, 0)),
                _resident((1, D), lambda i: (0, 0))]
    args = [x2d, g, b, w1, b1, w2, b2]
    if final_g is not None:
        kern = _norm_ffn_final_kernel
        in_specs += [_resident((1, D), lambda i: (0, 0)),
                     _resident((1, D), lambda i: (0, 0))]
        args += [final_g, final_b]
    else:
        kern = _norm_ffn_kernel
    return pl.pallas_call(
        kern,
        out_shape=jax.ShapeDtypeStruct((M, D), jnp.float32),
        grid=(M // tm,),
        in_specs=in_specs,
        out_specs=pl.BlockSpec((tm, D), lambda i: (i, 0)),
        compiler_params=_cparams(("parallel",), est),
    )(*args)


# --------------------------- Model (plain-JAX glue) -------------------------

def mix_att_layer(p, x, memory, src_mask, self_mask, num_heads, final_norm=None):
    B, T, D = x.shape
    S = memory.shape[1]
    dk = D // num_heads
    scale = 1.0 / math.sqrt(dk)

    sa = p["self_attn"]
    ca = p["src_attn"]

    # --- sublayer 0: [norm0 + QKV proj] -> [self-attn + Wo + residual
    #     (+ fused norm1 + cross-attn Q projection in the epilogue)]
    q, kv = norm_qkv(x.reshape(-1, D), p["norm0"]["g"], p["norm0"]["b"],
                     sa["wqkv"], sa["bqkv"], scale)
    x, q_cross = self_attention(q.reshape(B, T, D), kv.reshape(B, T, 2 * D),
                                self_mask, x, sa["wo"], sa["bo"],
                                p["norm1"]["g"], p["norm1"]["b"],
                                ca["wq"], ca["bq"], num_heads, scale)

    # --- sublayer 1: cross-attention; K/V from raw memory (no norm), bf16
    kv_mem = kv_linear(memory.reshape(-1, D), ca["wkv"], ca["bkv"]).reshape(B, S, 2 * D)
    x = src_attention(q_cross, kv_mem, src_mask, x, ca["wo"], ca["bo"], num_heads)

    # --- sublayer 2: fused norm2 + FFN + residual (+ optional fused final LN)
    f = p["ffn"]
    fg = final_norm["g"] if final_norm is not None else None
    fb = final_norm["b"] if final_norm is not None else None
    x = norm_ffn(x.reshape(-1, D), p["norm2"]["g"], p["norm2"]["b"],
                 f["w1"], f["b1"], f["w2"], f["b2"], fg, fb).reshape(B, T, D)
    return x


def mix_att_decoder(params, x, memory, src_mask, tgt_mask, num_heads,
                    interce_alpha=0, interce_layer=4):
    # torch-style masks (B, 1, Tm, Tk): drop the broadcast head dim, pack to int8.
    self_mask = (tgt_mask[:, 0] != 0).astype(jnp.int8)     # (B, T, T)
    cross_mask = (src_mask[:, 0] != 0).astype(jnp.int8)    # (B, 1, S) or (B, T, S)
    n_layers = len(params["layers"])
    fuse_final = interce_alpha <= 0        # keep pre-norm x visible for interce
    interce_out = None
    for n_layer, layer_p in enumerate(params["layers"]):
        final_norm = params["norm"] if (fuse_final and n_layer == n_layers - 1) else None
        x = mix_att_layer(layer_p, x, memory, cross_mask, self_mask, num_heads,
                          final_norm=final_norm)
        if interce_alpha > 0 and n_layer == interce_layer - 1:
            interce_out = x
    if fuse_final:
        return x
    B, T, D = x.shape
    xn = layer_norm(x.reshape(-1, D), params["norm"]["g"],
                    params["norm"]["b"]).reshape(B, T, D)
    if interce_alpha > 0:
        return xn, interce_out
    return xn


# ------------------------------ Param init ----------------------------------

def init_params(key, d_model, d_ff, n_layers, n_heads):
    assert d_model % n_heads == 0

    def dense(k, din, dout):
        w = (0.02 * jax.random.normal(k, (din, dout), jnp.float32)).astype(jnp.bfloat16)
        return w, jnp.zeros((1, dout), jnp.float32)

    def self_attn_params(k):
        ks = jax.random.split(k, 4)
        wq, _ = dense(ks[0], d_model, d_model)
        wk, _ = dense(ks[1], d_model, d_model)
        wv, _ = dense(ks[2], d_model, d_model)
        wo, bo = dense(ks[3], d_model, d_model)
        return dict(wqkv=jnp.concatenate([wq, wk, wv], axis=1),
                    bqkv=jnp.zeros((1, 3 * d_model), jnp.float32),
                    wo=wo, bo=bo)

    def src_attn_params(k):
        ks = jax.random.split(k, 4)
        wq, bq = dense(ks[0], d_model, d_model)
        wk, _ = dense(ks[1], d_model, d_model)
        wv, _ = dense(ks[2], d_model, d_model)
        wo, bo = dense(ks[3], d_model, d_model)
        return dict(wq=wq, bq=bq,
                    wkv=jnp.concatenate([wk, wv], axis=1),
                    bkv=jnp.zeros((1, 2 * d_model), jnp.float32),
                    wo=wo, bo=bo)

    def norm_params():
        return dict(g=jnp.ones((1, d_model), jnp.float32),
                    b=jnp.zeros((1, d_model), jnp.float32))

    layers = []
    keys = jax.random.split(key, n_layers)
    for i in range(n_layers):
        ks = jax.random.split(keys[i], 4)
        w1, b1 = dense(ks[2], d_model, d_ff)
        w2, b2 = dense(ks[3], d_ff, d_model)
        layers.append(dict(
            self_attn=self_attn_params(ks[0]),
            src_attn=src_attn_params(ks[1]),
            ffn=dict(w1=w1, b1=b1, w2=w2, b2=b2),
            norm0=norm_params(), norm1=norm_params(), norm2=norm_params()))
    return dict(layers=layers, norm=norm_params())


# ---------------------------------- main -------------------------------------

if __name__ == "__main__":
    B, T, S = 2, 8, 10           # batch, target length, source (memory) length
    D, H, DFF, N = 32, 4, 64, 2  # d_model, heads, ffn hidden, num layers

    key = jax.random.PRNGKey(0)
    k_param, k_x, k_mem = jax.random.split(key, 3)

    params = init_params(k_param, D, DFF, N, H)
    x = jax.random.normal(k_x, (B, T, D), jnp.float32)
    memory = jax.random.normal(k_mem, (B, S, D), jnp.float32)

    # tgt mask: causal (B, 1, T, T); src mask: padding mask (B, 1, 1, S)
    tgt_mask = jnp.tril(jnp.ones((T, T), jnp.float32))[None, None]
    tgt_mask = jnp.broadcast_to(tgt_mask, (B, 1, T, T))
    src_lens = jnp.array([S, S - 3])
    src_mask = (jnp.arange(S)[None, :] < src_lens[:, None]).astype(jnp.float32)
    src_mask = src_mask[:, None, None, :]                  # (B, 1, 1, S)

    fwd = jax.jit(functools.partial(mix_att_decoder, num_heads=H))
    out = fwd(params, x, memory, src_mask, tgt_mask)
    out = jax.block_until_ready(out)
    assert out.shape == (B, T, D) and bool(jnp.all(jnp.isfinite(out)))
    print("KERNEL_OK")
</pallas_src>

<mosaic_0001>
module attributes {stable_mosaic.version = 11 : i64} {
  func.func @k(%arg0: i32, %arg1: memref<8x128xf32, #tpu.memory_space<vmem>>, %arg2: memref<8x128xf32, #tpu.memory_space<vmem>>) attributes {dimension_semantics = [#tpu.dimension_semantics<arbitrary>], iteration_bounds = array<i64: 1>, scalar_prefetch = 0 : i64, scratch_operands = 0 : i64, tpu.core_type = #tpu.core_type<tc>, window_params = [{pipeline_mode = #tpu.pipeline_mode<synchronous>, transform_indices = @transform_0, window_bounds = array<i64: 8, 128>}, {pipeline_mode = #tpu.pipeline_mode<synchronous>, transform_indices = @transform_1, window_bounds = array<i64: 8, 128>}]} {
    %c0 = arith.constant 0 : index
    %c0_0 = arith.constant 0 : index
    %0 = vector.load %arg1[%c0, %c0_0] : memref<8x128xf32, #tpu.memory_space<vmem>>, vector<8x128xf32>
    %cst = arith.constant 1.000000e+00 : f32
    %1 = vector.broadcast %cst : f32 to vector<8x128xf32>
    %2 = arith.addf %0, %1 : vector<8x128xf32>
    %c0_1 = arith.constant 0 : index
    %c0_2 = arith.constant 0 : index
    %3 = vector.load %arg2[%c0_1, %c0_2] : memref<8x128xf32, #tpu.memory_space<vmem>>, vector<8x128xf32>
    tpu.vector_store %arg2[%c0_1, %c0_2], %2 {strides = array<i32>} : memref<8x128xf32, #tpu.memory_space<vmem>>, vector<8x128xf32>,
    return
  }
  func.func @transform_0(%arg0: i32) -> (i32, i32) {
    %c0_i32 = arith.constant 0 : i32
    %c0_i32_0 = arith.constant 0 : i32
    %c0_i32_1 = arith.constant 0 : i32
    return %c0_i32, %c0_i32_0 : i32, i32
  }
  func.func @transform_1(%arg0: i32) -> (i32, i32) {
    %c0_i32 = arith.constant 0 : i32
    %c0_i32_0 = arith.constant 0 : i32
    %c0_i32_1 = arith.constant 0 : i32
    return %c0_i32, %c0_i32_0 : i32, i32
  }
}

module attributes {stable_mosaic.version = 11 : i64} {
  func.func @_kv_linear_kernel(%arg0: i32, %arg1: memref<20x32xf32, #tpu.memory_space<vmem>>, %arg2: memref<32x64xbf16, #tpu.memory_space<vmem>>, %arg3: memref<1x64xf32, #tpu.memory_space<vmem>>, %arg4: memref<20x64xbf16, #tpu.memory_space<vmem>>) attributes {dimension_semantics = [#tpu.dimension_semantics<parallel>], iteration_bounds = array<i64: 1>, scalar_prefetch = 0 : i64, scratch_operands = 0 : i64, tpu.core_type = #tpu.core_type<tc>, window_params = [{transform_indices = @transform_0, window_bounds = array<i64: 20, 32>}, {pipeline_mode = #tpu.pipeline_mode<synchronous>, transform_indices = @transform_1, window_bounds = array<i64: 32, 64>}, {pipeline_mode = #tpu.pipeline_mode<synchronous>, transform_indices = @transform_2, window_bounds = array<i64: 1, 64>}, {transform_indices = @transform_3, window_bounds = array<i64: 20, 64>}]} {
    %c0 = arith.constant 0 : index
    %c0_0 = arith.constant 0 : index
    %0 = vector.load %arg1[%c0, %c0_0] : memref<20x32xf32, #tpu.memory_space<vmem>>, vector<20x32xf32>
    %1 = arith.truncf %0 : vector<20x32xf32> to vector<20x32xbf16>
    %c0_1 = arith.constant 0 : index
    %c0_2 = arith.constant 0 : index
    %2 = vector.load %arg2[%c0_1, %c0_2] : memref<32x64xbf16, #tpu.memory_space<vmem>>, vector<32x64xbf16>
    %cst = arith.constant dense<0.000000e+00> : vector<20x64xf32>
    %3 = tpu.matmul %1, %2, %cst {dimension_numbers = #tpu.dot_dimension_numbers<[1], [0], [0], [1], [0, 0, 1, 1], [], []>} : vector<20x32xbf16>, vector<32x64xbf16>, vector<20x64xf32> -> vector<20x64xf32>
    %c0_3 = arith.constant 0 : index
    %c0_4 = arith.constant 0 : index
    %4 = vector.load %arg3[%c0_3, %c0_4] : memref<1x64xf32, #tpu.memory_space<vmem>>, vector<1x64xf32>
    %5 = vector.broadcast %4 : vector<1x64xf32> to vector<20x64xf32>
    %6 = arith.addf %3, %5 : vector<20x64xf32>
    %7 = arith.truncf %6 : vector<20x64xf32> to vector<20x64xbf16>
    %c0_5 = arith.constant 0 : index
    %c0_6 = arith.constant 0 : index
    %8 = vector.load %arg4[%c0_5, %c0_6] : memref<20x64xbf16, #tpu.memory_space<vmem>>, vector<20x64xbf16>
    tpu.vector_store %arg4[%c0_5, %c0_6], %7 {strides = array<i32>} : memref<20x64xbf16, #tpu.memory_space<vmem>>, vector<20x64xbf16>,
    return
  }
  func.func @transform_0(%arg0: i32) -> (i32, i32) {
    %c0_i32 = arith.constant 0 : i32
    %c0_i32_0 = arith.constant 0 : i32
    return %arg0, %c0_i32 : i32, i32
  }
  func.func @transform_1(%arg0: i32) -> (i32, i32) {
    %c0_i32 = arith.constant 0 : i32
    %c0_i32_0 = arith.constant 0 : i32
    %c0_i32_1 = arith.constant 0 : i32
    return %c0_i32, %c0_i32_0 : i32, i32
  }
  func.func @transform_2(%arg0: i32) -> (i32, i32) {
    %c0_i32 = arith.constant 0 : i32
    %c0_i32_0 = arith.constant 0 : i32
    %c0_i32_1 = arith.constant 0 : i32
    return %c0_i32, %c0_i32_0 : i32, i32
  }
  func.func @transform_3(%arg0: i32) -> (i32, i32) {
    %c0_i32 = arith.constant 0 : i32
    %c0_i32_0 = arith.constant 0 : i32
    return %arg0, %c0_i32 : i32, i32
  }
}

module attributes {stable_mosaic.version = 11 : i64} {
  func.func @_norm_qkv_kernel(%arg0: i32, %arg1: memref<16x32xf32, #tpu.memory_space<vmem>>, %arg2: memref<1x32xf32, #tpu.memory_space<vmem>>, %arg3: memref<1x32xf32, #tpu.memory_space<vmem>>, %arg4: memref<32x96xbf16, #tpu.memory_space<vmem>>, %arg5: memref<1x96xf32, #tpu.memory_space<vmem>>, %arg6: memref<16x32xbf16, #tpu.memory_space<vmem>>, %arg7: memref<16x64xbf16, #tpu.memory_space<vmem>>) attributes {dimension_semantics = [#tpu.dimension_semantics<parallel>], iteration_bounds = array<i64: 1>, scalar_prefetch = 0 : i64, scratch_operands = 0 : i64, tpu.core_type = #tpu.core_type<tc>, window_params = [{transform_indices = @transform_0, window_bounds = array<i64: 16, 32>}, {pipeline_mode = #tpu.pipeline_mode<synchronous>, transform_indices = @transform_1, window_bounds = array<i64: 1, 32>}, {pipeline_mode = #tpu.pipeline_mode<synchronous>, transform_indices = @transform_2, window_bounds = array<i64: 1, 32>}, {pipeline_mode = #tpu.pipeline_mode<synchronous>, transform_indices = @transform_3, window_bounds = array<i64: 32, 96>}, {pipeline_mode = #tpu.pipeline_mode<synchronous>, transform_indices = @transform_4, window_bounds = array<i64: 1, 96>}, {transform_indices = @transform_5, window_bounds = array<i64: 16, 32>}, {transform_indices = @transform_6, window_bounds = array<i64: 16, 64>}]} {
    %c0 = arith.constant 0 : index
    %c0_0 = arith.constant 0 : index
    %0 = vector.load %arg1[%c0, %c0_0] : memref<16x32xf32, #tpu.memory_space<vmem>>, vector<16x32xf32>
    %c0_1 = arith.constant 0 : index
    %c0_2 = arith.constant 0 : index
    %1 = vector.load %arg2[%c0_1, %c0_2] : memref<1x32xf32, #tpu.memory_space<vmem>>, vector<1x32xf32>
    %c0_3 = arith.constant 0 : index
    %c0_4 = arith.constant 0 : index
    %2 = vector.load %arg3[%c0_3, %c0_4] : memref<1x32xf32, #tpu.memory_space<vmem>>, vector<1x32xf32>
    %cst = arith.constant dense<0.000000e+00> : vector<16xf32>
    %3 = vector.multi_reduction <add>, %0, %cst [1] : vector<16x32xf32> to vector<16xf32>
    %4 = vector.shape_cast %3 : vector<16xf32> to vector<16x1xf32>
    %cst_5 = arith.constant 3.200000e+01 : f32
    %5 = vector.broadcast %cst_5 : f32 to vector<16x1xf32>
    %6 = arith.divf %4, %5 : vector<16x1xf32>
    %7 = vector.broadcast %6 : vector<16x1xf32> to vector<16x32xf32>
    %8 = arith.subf %0, %7 : vector<16x32xf32>
    %9 = arith.mulf %8, %8 : vector<16x32xf32>
    %cst_6 = arith.constant dense<0.000000e+00> : vector<16xf32>
    %10 = vector.multi_reduction <add>, %9, %cst_6 [1] : vector<16x32xf32> to vector<16xf32>
    %11 = vector.shape_cast %10 : vector<16xf32> to vector<16x1xf32>
    %cst_7 = arith.constant 3.100000e+01 : f32
    %12 = vector.broadcast %cst_7 : f32 to vector<16x1xf32>
    %13 = arith.divf %11, %12 : vector<16x1xf32>
    %14 = vector.broadcast %6 : vector<16x1xf32> to vector<16x32xf32>
    %15 = arith.subf %0, %14 : vector<16x32xf32>
    %16 = vector.broadcast %1 : vector<1x32xf32> to vector<16x32xf32>
    %17 = arith.mulf %16, %15 : vector<16x32xf32>
    %18 = math.sqrt %13 : vector<16x1xf32>
    %cst_8 = arith.constant 9.99999997E-7 : f32
    %19 = vector.broadcast %cst_8 : f32 to vector<16x1xf32>
    %20 = arith.addf %18, %19 : vector<16x1xf32>
    %21 = vector.broadcast %20 : vector<16x1xf32> to vector<16x32xf32>
    %22 = arith.divf %17, %21 : vector<16x32xf32>
    %23 = vector.broadcast %2 : vector<1x32xf32> to vector<16x32xf32>
    %24 = arith.addf %22, %23 : vector<16x32xf32>
    %25 = arith.truncf %24 : vector<16x32xf32> to vector<16x32xbf16>
    %c0_9 = arith.constant 0 : index
    %c0_10 = arith.constant 0 : index
    %26 = vector.load %arg4[%c0_9, %c0_10] : memref<32x96xbf16, #tpu.memory_space<vmem>>, vector<32x96xbf16>
    %cst_11 = arith.constant dense<0.000000e+00> : vector<16x96xf32>
    %27 = tpu.matmul %25, %26, %cst_11 {dimension_numbers = #tpu.dot_dimension_numbers<[1], [0], [0], [1], [0, 0, 1, 1], [], []>} : vector<16x32xbf16>, vector<32x96xbf16>, vector<16x96xf32> -> vector<16x96xf32>
    %c0_12 = arith.constant 0 : index
    %c0_13 = arith.constant 0 : index
    %28 = vector.load %arg5[%c0_12, %c0_13] : memref<1x96xf32, #tpu.memory_space<vmem>>, vector<1x96xf32>
    %29 = vector.broadcast %28 : vector<1x96xf32> to vector<16x96xf32>
    %30 = arith.addf %27, %29 : vector<16x96xf32>
    %31 = vector.extract_strided_slice %30 {offsets = [0, 0], sizes = [16, 32], strides = [1, 1]} : vector<16x96xf32> to vector<16x32xf32>
    %cst_14 = arith.constant 0.353553385 : f32
    %32 = vector.broadcast %cst_14 : f32 to vector<16x32xf32>
    %33 = arith.mulf %31, %32 : vector<16x32xf32>
    %34 = arith.truncf %33 : vector<16x32xf32> to vector<16x32xbf16>
    %c0_15 = arith.constant 0 : index
    %c0_16 = arith.constant 0 : index
    %35 = vector.load %arg6[%c0_15, %c0_16] : memref<16x32xbf16, #tpu.memory_space<vmem>>, vector<16x32xbf16>
    tpu.vector_store %arg6[%c0_15, %c0_16], %34 {strides = array<i32>} : memref<16x32xbf16, #tpu.memory_space<vmem>>, vector<16x32xbf16>,
    %36 = vector.extract_strided_slice %30 {offsets = [0, 32], sizes = [16, 64], strides = [1, 1]} : vector<16x96xf32> to vector<16x64xf32>
    %37 = arith.truncf %36 : vector<16x64xf32> to vector<16x64xbf16>
    %c0_17 = arith.constant 0 : index
    %c0_18 = arith.constant 0 : index
    %38 = vector.load %arg7[%c0_17, %c0_18] : memref<16x64xbf16, #tpu.memory_space<vmem>>, vector<16x64xbf16>
    tpu.vector_store %arg7[%c0_17, %c0_18], %37 {strides = array<i32>} : memref<16x64xbf16, #tpu.memory_space<vmem>>, vector<16x64xbf16>,
    return
  }
  func.func @transform_0(%arg0: i32) -> (i32, i32) {
    %c0_i32 = arith.constant 0 : i32
    %c0_i32_0 = arith.constant 0 : i32
    return %arg0, %c0_i32 : i32, i32
  }
  func.func @transform_1(%arg0: i32) -> (i32, i32) {
    %c0_i32 = arith.constant 0 : i32
    %c0_i32_0 = arith.constant 0 : i32
    %c0_i32_1 = arith.constant 0 : i32
    return %c0_i32, %c0_i32_0 : i32, i32
  }
  func.func @transform_2(%arg0: i32) -> (i32, i32) {
    %c0_i32 = arith.constant 0 : i32
    %c0_i32_0 = arith.constant 0 : i32
    %c0_i32_1 = arith.constant 0 : i32
    return %c0_i32, %c0_i32_0 : i32, i32
  }
  func.func @transform_3(%arg0: i32) -> (i32, i32) {
    %c0_i32 = arith.constant 0 : i32
    %c0_i32_0 = arith.constant 0 : i32
    %c0_i32_1 = arith.constant 0 : i32
    return %c0_i32, %c0_i32_0 : i32, i32
  }
  func.func @transform_4(%arg0: i32) -> (i32, i32) {
    %c0_i32 = arith.constant 0 : i32
    %c0_i32_0 = arith.constant 0 : i32
    %c0_i32_1 = arith.constant 0 : i32
    return %c0_i32, %c0_i32_0 : i32, i32
  }
  func.func @transform_5(%arg0: i32) -> (i32, i32) {
    %c0_i32 = arith.constant 0 : i32
    %c0_i32_0 = arith.constant 0 : i32
    return %arg0, %c0_i32 : i32, i32
  }
  func.func @transform_6(%arg0: i32) -> (i32, i32) {
    %c0_i32 = arith.constant 0 : i32
    %c0_i32_0 = arith.constant 0 : i32
    return %arg0, %c0_i32 : i32, i32
  }
}

module attributes {stable_mosaic.version = 11 : i64} {
  func.func @_self_attn_kernel(%arg0: i32, %arg1: i32, %arg2: memref<1x8x32xbf16, #tpu.memory_space<vmem>>, %arg3: memref<1x8x64xbf16, #tpu.memory_space<vmem>>, %arg4: memref<1x8x8xi8, #tpu.memory_space<vmem>>, %arg5: memref<1x8x32xf32, #tpu.memory_space<vmem>>, %arg6: memref<32x32xbf16, #tpu.memory_space<vmem>>, %arg7: memref<1x32xf32, #tpu.memory_space<vmem>>, %arg8: memref<1x32xf32, #tpu.memory_space<vmem>>, %arg9: memref<1x32xf32, #tpu.memory_space<vmem>>, %arg10: memref<32x32xbf16, #tpu.memory_space<vmem>>, %arg11: memref<1x32xf32, #tpu.memory_space<vmem>>, %arg12: memref<1x8x32xf32, #tpu.memory_space<vmem>>, %arg13: memref<1x8x32xbf16, #tpu.memory_space<vmem>>) attributes {dimension_semantics = [#tpu.dimension_semantics<parallel>, #tpu.dimension_semantics<parallel>], iteration_bounds = array<i64: 2, 1>, scalar_prefetch = 0 : i64, scratch_operands = 0 : i64, tpu.core_type = #tpu.core_type<tc>, window_params = [{transform_indices = @transform_0, window_bounds = array<i64: 1, 8, 32>}, {transform_indices = @transform_1, window_bounds = array<i64: 1, 8, 64>}, {transform_indices = @transform_2, window_bounds = array<i64: 1, 8, 8>}, {transform_indices = @transform_3, window_bounds = array<i64: 1, 8, 32>}, {pipeline_mode = #tpu.pipeline_mode<synchronous>, transform_indices = @transform_4, window_bounds = array<i64: 32, 32>}, {pipeline_mode = #tpu.pipeline_mode<synchronous>, transform_indices = @transform_5, window_bounds = array<i64: 1, 32>}, {pipeline_mode = #tpu.pipeline_mode<synchronous>, transform_indices = @transform_6, window_bounds = array<i64: 1, 32>}, {pipeline_mode = #tpu.pipeline_mode<synchronous>, transform_indices = @transform_7, window_bounds = array<i64: 1, 32>}, {pipeline_mode = #tpu.pipeline_mode<synchronous>, transform_indices = @transform_8, window_bounds = array<i64: 32, 32>}, {pipeline_mode = #tpu.pipeline_mode<synchronous>, transform_indices = @transform_9, window_bounds = array<i64: 1, 32>}, {transform_indices = @transform_10, window_bounds = array<i64: 1, 8, 32>}, {transform_indices = @transform_11, window_bounds = array<i64: 1, 8, 32>}]} {
    %c0 = arith.constant 0 : index
    %c0_0 = arith.constant 0 : index
    %c0_1 = arith.constant 0 : index
    %0 = vector.load %arg4[%c0, %c0_0, %c0_1] : memref<1x8x8xi8, #tpu.memory_space<vmem>>, vector<1x8x8xi8>
    %1 = vector.shape_cast %0 : vector<1x8x8xi8> to vector<8x8xi8>
    %2 = arith.sitofp %1 : vector<8x8xi8> to vector<8x8xf32>
    %cst = arith.constant 0.000000e+00 : f32
    %3 = vector.broadcast %cst : f32 to vector<8x8xf32>
    %4 = arith.cmpf oeq, %2, %3 : vector<8x8xf32>
    %cst_2 = arith.constant -1.000000e+09 : f32
    %cst_3 = arith.constant 0.000000e+00 : f32
    %5 = vector.broadcast %cst_2 : f32 to vector<8x8xf32>
    %6 = vector.broadcast %cst_3 : f32 to vector<8x8xf32>
    %7 = arith.select %4, %5, %6 : vector<8x8xi1>, vector<8x8xf32>
    %c0_4 = arith.constant 0 : index
    %c0_5 = arith.constant 0 : index
    %c0_6 = arith.constant 0 : index
    %8 = vector.load %arg2[%c0_4, %c0_5, %c0_6] : memref<1x8x32xbf16, #tpu.memory_space<vmem>>, vector<1x8x32xbf16>
    %9 = vector.shape_cast %8 : vector<1x8x32xbf16> to vector<8x32xbf16>
    %c0_7 = arith.constant 0 : index
    %c0_8 = arith.constant 0 : index
    %c0_9 = arith.constant 0 : index
    %10 = vector.load %arg3[%c0_7, %c0_8, %c0_9] : memref<1x8x64xbf16, #tpu.memory_space<vmem>>, vector<1x8x64xbf16>
    %11 = vector.shape_cast %10 : vector<1x8x64xbf16> to vector<8x64xbf16>
    %c0_10 = arith.constant 0 : index
    %c0_11 = arith.constant 0 : index
    %12 = vector.load %arg6[%c0_10, %c0_11] : memref<32x32xbf16, #tpu.memory_space<vmem>>, vector<32x32xbf16>
    %13 = vector.extract_strided_slice %9 {offsets = [0, 0], sizes = [8, 8], strides = [1, 1]} : vector<8x32xbf16> to vector<8x8xbf16>
    %14 = vector.extract_strided_slice %11 {offsets = [0, 0], sizes = [8, 8], strides = [1, 1]} : vector<8x64xbf16> to vector<8x8xbf16>
    %cst_12 = arith.constant dense<0.000000e+00> : vector<8x8xf32>
    %15 = tpu.matmul %13, %14, %cst_12 {dimension_numbers = #tpu.dot_dimension_numbers<[1], [1], [0], [0], [0, 0, 1, 0], [], []>} : vector<8x8xbf16>, vector<8x8xbf16>, vector<8x8xf32> -> vector<8x8xf32>
    %16 = arith.addf %15, %7 : vector<8x8xf32>
    %cst_13 = arith.constant dense<0xFF800000> : vector<8xf32>
    %17 = vector.multi_reduction <maximumf>, %16, %cst_13 [1] : vector<8x8xf32> to vector<8xf32>
    %18 = vector.shape_cast %17 : vector<8xf32> to vector<8x1xf32>
    %19 = vector.broadcast %18 : vector<8x1xf32> to vector<8x8xf32>
    %20 = arith.subf %16, %19 : vector<8x8xf32>
    %21 = math.exp %20 : vector<8x8xf32>
    %cst_14 = arith.constant dense<0.000000e+00> : vector<8xf32>
    %22 = vector.multi_reduction <add>, %21, %cst_14 [1] : vector<8x8xf32> to vector<8xf32>
    %23 = vector.shape_cast %22 : vector<8xf32> to vector<8x1xf32>
    %24 = tpu.reciprocal %23 {approx = true} : vector<8x1xf32> -> vector<8x1xf32>
    %25 = vector.broadcast %24 : vector<8x1xf32> to vector<8x8xf32>
    %26 = arith.mulf %21, %25 : vector<8x8xf32>
    %27 = arith.truncf %26 : vector<8x8xf32> to vector<8x8xbf16>
    %28 = vector.extract_strided_slice %11 {offsets = [0, 32], sizes = [8, 8], strides = [1, 1]} : vector<8x64xbf16> to vector<8x8xbf16>
    %cst_15 = arith.constant dense<0.000000e+00> : vector<8x8xf32>
    %29 = tpu.matmul %27, %28, %cst_15 {dimension_numbers = #tpu.dot_dimension_numbers<[1], [0], [0], [1], [0, 0, 1, 1], [], []>} : vector<8x8xbf16>, vector<8x8xbf16>, vector<8x8xf32> -> vector<8x8xf32>
    %30 = arith.truncf %29 : vector<8x8xf32> to vector<8x8xbf16>
    %31 = vector.extract_strided_slice %9 {offsets = [0, 8], sizes = [8, 8], strides = [1, 1]} : vector<8x32xbf16> to vector<8x8xbf16>
    %32 = vector.extract_strided_slice %11 {offsets = [0, 8], sizes = [8, 8], strides = [1, 1]} : vector<8x64xbf16> to vector<8x8xbf16>
    %cst_16 = arith.constant dense<0.000000e+00> : vector<8x8xf32>
    %33 = tpu.matmul %31, %32, %cst_16 {dimension_numbers = #tpu.dot_dimension_numbers<[1], [1], [0], [0], [0, 0, 1, 0], [], []>} : vector<8x8xbf16>, vector<8x8xbf16>, vector<8x8xf32> -> vector<8x8xf32>
    %34 = arith.addf %33, %7 : vector<8x8xf32>
    %cst_17 = arith.constant dense<0xFF800000> : vector<8xf32>
    %35 = vector.multi_reduction <maximumf>, %34, %cst_17 [1] : vector<8x8xf32> to vector<8xf32>
    %36 = vector.shape_cast %35 : vector<8xf32> to vector<8x1xf32>
    %37 = vector.broadcast %36 : vector<8x1xf32> to vector<8x8xf32>
    %38 = arith.subf %34, %37 : vector<8x8xf32>
    %39 = math.exp %38 : vector<8x8xf32>
    %cst_18 = arith.constant dense<0.000000e+00> : vector<8xf32>
    %40 = vector.multi_reduction <add>, %39, %cst_18 [1] : vector<8x8xf32> to vector<8xf32>
    %41 = vector.shape_cast %40 : vector<8xf32> to vector<8x1xf32>
    %42 = tpu.reciprocal %41 {approx = true} : vector<8x1xf32> -> vector<8x1xf32>
    %43 = vector.broadcast %42 : vector<8x1xf32> to vector<8x8xf32>
    %44 = arith.mulf %39, %43 : vector<8x8xf32>
    %45 = arith.truncf %44 : vector<8x8xf32> to vector<8x8xbf16>
    %46 = vector.extract_strided_slice %11 {offsets = [0, 40], sizes = [8, 8], strides = [1, 1]} : vector<8x64xbf16> to vector<8x8xbf16>
    %cst_19 = arith.constant dense<0.000000e+00> : vector<8x8xf32>
    %47 = tpu.matmul %45, %46, %cst_19 {dimension_numbers = #tpu.dot_dimension_numbers<[1], [0], [0], [1], [0, 0, 1, 1], [], []>} : vector<8x8xbf16>, vector<8x8xbf16>, vector<8x8xf32> -> vector<8x8xf32>
    %48 = arith.truncf %47 : vector<8x8xf32> to vector<8x8xbf16>
    %49 = vector.extract_strided_slice %9 {offsets = [0, 16], sizes = [8, 8], strides = [1, 1]} : vector<8x32xbf16> to vector<8x8xbf16>
    %50 = vector.extract_strided_slice %11 {offsets = [0, 16], sizes = [8, 8], strides = [1, 1]} : vector<8x64xbf16> to vector<8x8xbf16>
    %cst_20 = arith.constant dense<0.000000e+00> : vector<8x8xf32>
    %51 = tpu.matmul %49, %50, %cst_20 {dimension_numbers = #tpu.dot_dimension_numbers<[1], [1], [0], [0], [0, 0, 1, 0], [], []>} : vector<8x8xbf16>, vector<8x8xbf16>, vector<8x8xf32> -> vector<8x8xf32>
    %52 = arith.addf %51, %7 : vector<8x8xf32>
    %cst_21 = arith.constant dense<0xFF800000> : vector<8xf32>
    %53 = vector.multi_reduction <maximumf>, %52, %cst_21 [1] : vector<8x8xf32> to vector<8xf32>
    %54 = vector.shape_cast %53 : vector<8xf32> to vector<8x1xf32>
    %55 = vector.broadcast %54 : vector<8x1xf32> to vector<8x8xf32>
    %56 = arith.subf %52, %55 : vector<8x8xf32>
    %57 = math.exp %56 : vector<8x8xf32>
    %cst_22 = arith.constant dense<0.000000e+00> : vector<8xf32>
    %58 = vector.multi_reduction <add>, %57, %cst_22 [1] : vector<8x8xf32> to vector<8xf32>
    %59 = vector.shape_cast %58 : vector<8xf32> to vector<8x1xf32>
    %60 = tpu.reciprocal %59 {approx = true} : vector<8x1xf32> -> vector<8x1xf32>
    %61 = vector.broadcast %60 : vector<8x1xf32> to vector<8x8xf32>
    %62 = arith.mulf %57, %61 : vector<8x8xf32>
    %63 = arith.truncf %62 : vector<8x8xf32> to vector<8x8xbf16>
    %64 = vector.extract_strided_slice %11 {offsets = [0, 48], sizes = [8, 8], strides = [1, 1]} : vector<8x64xbf16> to vector<8x8xbf16>
    %cst_23 = arith.constant dense<0.000000e+00> : vector<8x8xf32>
    %65 = tpu.matmul %63, %64, %cst_23 {dimension_numbers = #tpu.dot_dimension_numbers<[1], [0], [0], [1], [0, 0, 1, 1], [], []>} : vector<8x8xbf16>, vector<8x8xbf16>, vector<8x8xf32> -> vector<8x8xf32>
    %66 = arith.truncf %65 : vector<8x8xf32> to vector<8x8xbf16>
    %67 = vector.extract_strided_slice %9 {offsets = [0, 24], sizes = [8, 8], strides = [1, 1]} : vector<8x32xbf16> to vector<8x8xbf16>
    %68 = vector.extract_strided_slice %11 {offsets = [0, 24], sizes = [8, 8], strides = [1, 1]} : vector<8x64xbf16> to vector<8x8xbf16>
    %cst_24 = arith.constant dense<0.000000e+00> : vector<8x8xf32>
    %69 = tpu.matmul %67, %68, %cst_24 {dimension_numbers = #tpu.dot_dimension_numbers<[1], [1], [0], [0], [0, 0, 1, 0], [], []>} : vector<8x8xbf16>, vector<8x8xbf16>, vector<8x8xf32> -> vector<8x8xf32>
    %70 = arith.addf %69, %7 : vector<8x8xf32>
    %cst_25 = arith.constant dense<0xFF800000> : vector<8xf32>
    %71 = vector.multi_reduction <maximumf>, %70, %cst_25 [1] : vector<8x8xf32> to vector<8xf32>
    %72 = vector.shape_cast %71 : vector<8xf32> to vector<8x1xf32>
    %73 = vector.broadcast %72 : vector<8x1xf32> to vector<8x8xf32>
    %74 = arith.subf %70, %73 : vector<8x8xf32>
    %75 = math.exp %74 : vector<8x8xf32>
    %cst_26 = arith.constant dense<0.000000e+00> : vector<8xf32>
    %76 = vector.multi_reduction <add>, %75, %cst_26 [1] : vector<8x8xf32> to vector<8xf32>
    %77 = vector.shape_cast %76 : vector<8xf32> to vector<8x1xf32>
    %78 = tpu.reciprocal %77 {approx = true} : vector<8x1xf32> -> vector<8x1xf32>
    %79 = vector.broadcast %78 : vector<8x1xf32> to vector<8x8xf32>
    %80 = arith.mulf %75, %79 : vector<8x8xf32>
    %81 = arith.truncf %80 : vector<8x8xf32> to vector<8x8xbf16>
    %82 = vector.extract_strided_slice %11 {offsets = [0, 56], sizes = [8, 8], strides = [1, 1]} : vector<8x64xbf16> to vector<8x8xbf16>
    %cst_27 = arith.constant dense<0.000000e+00> : vector<8x8xf32>
    %83 = tpu.matmul %81, %82, %cst_27 {dimension_numbers = #tpu.dot_dimension_numbers<[1], [0], [0], [1], [0, 0, 1, 1], [], []>} : vector<8x8xbf16>, vector<8x8xbf16>, vector<8x8xf32> -> vector<8x8xf32>
    %84 = arith.truncf %83 : vector<8x8xf32> to vector<8x8xbf16>
    %85 = tpu.concatenate %30, %48, %66, %84 in 1 : vector<8x8xbf16>, vector<8x8xbf16>, vector<8x8xbf16>, vector<8x8xbf16> -> vector<8x32xbf16>
    %cst_28 = arith.constant dense<0.000000e+00> : vector<8x32xf32>
    %86 = tpu.matmul %85, %12, %cst_28 {dimension_numbers = #tpu.dot_dimension_numbers<[1], [0], [0], [1], [0, 0, 1, 1], [], []>} : vector<8x32xbf16>, vector<32x32xbf16>, vector<8x32xf32> -> vector<8x32xf32>
    %c0_29 = arith.constant 0 : index
    %c0_30 = arith.constant 0 : index
    %c0_31 = arith.constant 0 : index
    %87 = vector.load %arg5[%c0_29, %c0_30, %c0_31] : memref<1x8x32xf32, #tpu.memory_space<vmem>>, vector<1x8x32xf32>
    %88 = vector.shape_cast %87 : vector<1x8x32xf32> to vector<8x32xf32>
    %89 = arith.addf %88, %86 : vector<8x32xf32>
    %c0_32 = arith.constant 0 : index
    %c0_33 = arith.constant 0 : index
    %90 = vector.load %arg7[%c0_32, %c0_33] : memref<1x32xf32, #tpu.memory_space<vmem>>, vector<1x32xf32>
    %91 = vector.broadcast %90 : vector<1x32xf32> to vector<8x32xf32>
    %92 = arith.addf %89, %91 : vector<8x32xf32>
    %c0_34 = arith.constant 0 : index
    %c0_35 = arith.constant 0 : index
    %c0_36 = arith.constant 0 : index
    %93 = vector.load %arg12[%c0_34, %c0_35, %c0_36] : memref<1x8x32xf32, #tpu.memory_space<vmem>>, vector<1x8x32xf32>
    %94 = vector.shape_cast %93 : vector<1x8x32xf32> to vector<8x32xf32>
    %95 = vector.shape_cast %92 : vector<8x32xf32> to vector<1x8x32xf32>
    tpu.vector_store %arg12[%c0_34, %c0_35, %c0_36], %95 {strides = array<i32>} : memref<1x8x32xf32, #tpu.memory_space<vmem>>, vector<1x8x32xf32>,
    %c0_37 = arith.constant 0 : index
    %c0_38 = arith.constant 0 : index
    %96 = vector.load %arg8[%c0_37, %c0_38] : memref<1x32xf32, #tpu.memory_space<vmem>>, vector<1x32xf32>
    %c0_39 = arith.constant 0 : index
    %c0_40 = arith.constant 0 : index
    %97 = vector.load %arg9[%c0_39, %c0_40] : memref<1x32xf32, #tpu.memory_space<vmem>>, vector<1x32xf32>
    %cst_41 = arith.constant dense<0.000000e+00> : vector<8xf32>
    %98 = vector.multi_reduction <add>, %92, %cst_41 [1] : vector<8x32xf32> to vector<8xf32>
    %99 = vector.shape_cast %98 : vector<8xf32> to vector<8x1xf32>
    %cst_42 = arith.constant 3.200000e+01 : f32
    %100 = vector.broadcast %cst_42 : f32 to vector<8x1xf32>
    %101 = arith.divf %99, %100 : vector<8x1xf32>
    %102 = vector.broadcast %101 : vector<8x1xf32> to vector<8x32xf32>
    %103 = arith.subf %92, %102 : vector<8x32xf32>
    %104 = arith.mulf %103, %103 : vector<8x32xf32>
    %cst_43 = arith.constant dense<0.000000e+00> : vector<8xf32>
    %105 = vector.multi_reduction <add>, %104, %cst_43 [1] : vector<8x32xf32> to vector<8xf32>
    %106 = vector.shape_cast %105 : vector<8xf32> to vector<8x1xf32>
    %cst_44 = arith.constant 3.100000e+01 : f32
    %107 = vector.broadcast %cst_44 : f32 to vector<8x1xf32>
    %108 = arith.divf %106, %107 : vector<8x1xf32>
    %109 = vector.broadcast %101 : vector<8x1xf32> to vector<8x32xf32>
    %110 = arith.subf %92, %109 : vector<8x32xf32>
    %111 = vector.broadcast %96 : vector<1x32xf32> to vector<8x32xf32>
    %112 = arith.mulf %111, %110 : vector<8x32xf32>
    %113 = math.sqrt %108 : vector<8x1xf32>
    %cst_45 = arith.constant 9.99999997E-7 : f32
    %114 = vector.broadcast %cst_45 : f32 to vector<8x1xf32>
    %115 = arith.addf %113, %114 : vector<8x1xf32>
    %116 = vector.broadcast %115 : vector<8x1xf32> to vector<8x32xf32>
    %117 = arith.divf %112, %116 : vector<8x32xf32>
    %118 = vector.broadcast %97 : vector<1x32xf32> to vector<8x32xf32>
    %119 = arith.addf %117, %118 : vector<8x32xf32>
    %120 = arith.truncf %119 : vector<8x32xf32> to vector<8x32xbf16>
    %c0_46 = arith.constant 0 : index
    %c0_47 = arith.constant 0 : index
    %121 = vector.load %arg10[%c0_46, %c0_47] : memref<32x32xbf16, #tpu.memory_space<vmem>>, vector<32x32xbf16>
    %cst_48 = arith.constant dense<0.000000e+00> : vector<8x32xf32>
    %122 = tpu.matmul %120, %121, %cst_48 {dimension_numbers = #tpu.dot_dimension_numbers<[1], [0], [0], [1], [0, 0, 1, 1], [], []>} : vector<8x32xbf16>, vector<32x32xbf16>, vector<8x32xf32> -> vector<8x32xf32>
    %c0_49 = arith.constant 0 : index
    %c0_50 = arith.constant 0 : index
    %123 = vector.load %arg11[%c0_49, %c0_50] : memref<1x32xf32, #tpu.memory_space<vmem>>, vector<1x32xf32>
    %124 = vector.broadcast %123 : vector<1x32xf32> to vector<8x32xf32>
    %125 = arith.addf %122, %124 : vector<8x32xf32>
    %cst_51 = arith.constant 0.353553385 : f32
    %126 = vector.broadcast %cst_51 : f32 to vector<8x32xf32>
    %127 = arith.mulf %125, %126 : vector<8x32xf32>
    %128 = arith.truncf %127 : vector<8x32xf32> to vector<8x32xbf16>
    %c0_52 = arith.constant 0 : index
    %c0_53 = arith.constant 0 : index
    %c0_54 = arith.constant 0 : index
    %129 = vector.load %arg13[%c0_52, %c0_53, %c0_54] : memref<1x8x32xbf16, #tpu.memory_space<vmem>>, vector<1x8x32xbf16>
    %130 = vector.shape_cast %129 : vector<1x8x32xbf16> to vector<8x32xbf16>
    %131 = vector.shape_cast %128 : vector<8x32xbf16> to vector<1x8x32xbf16>
    tpu.vector_store %arg13[%c0_52, %c0_53, %c0_54], %131 {strides = array<i32>} : memref<1x8x32xbf16, #tpu.memory_space<vmem>>, vector<1x8x32xbf16>,
    return
  }
  func.func @transform_0(%arg0: i32, %arg1: i32) -> (i32, i32, i32) {
    %c0_i32 = arith.constant 0 : i32
    %c0_i32_0 = arith.constant 0 : i32
    return %arg0, %arg1, %c0_i32 : i32, i32, i32
  }
  func.func @transform_1(%arg0: i32, %arg1: i32) -> (i32, i32, i32) {
    %c0_i32 = arith.constant 0 : i32
    %c0_i32_0 = arith.constant 0 : i32
    %c0_i32_1 = arith.constant 0 : i32
    return %arg0, %c0_i32, %c0_i32_0 : i32, i32, i32
  }
  func.func @transform_2(%arg0: i32, %arg1: i32) -> (i32, i32, i32) {
    %c0_i32 = arith.constant 0 : i32
    %c0_i32_0 = arith.constant 0 : i32
    %c0_i32_1 = arith.constant 0 : i32
    return %arg0, %c0_i32, %c0_i32_0 : i32, i32, i32
  }
  func.func @transform_3(%arg0: i32, %arg1: i32) -> (i32, i32, i32) {
    %c0_i32 = arith.constant 0 : i32
    %c0_i32_0 = arith.constant 0 : i32
    return %arg0, %arg1, %c0_i32 : i32, i32, i32
  }
  func.func @transform_4(%arg0: i32, %arg1: i32) -> (i32, i32) {
    %c0_i32 = arith.constant 0 : i32
    %c0_i32_0 = arith.constant 0 : i32
    %c0_i32_1 = arith.constant 0 : i32
    return %c0_i32, %c0_i32_0 : i32, i32
  }
  func.func @transform_5(%arg0: i32, %arg1: i32) -> (i32, i32) {
    %c0_i32 = arith.constant 0 : i32
    %c0_i32_0 = arith.constant 0 : i32
    %c0_i32_1 = arith.constant 0 : i32
    return %c0_i32, %c0_i32_0 : i32, i32
  }
  func.func @transform_6(%arg0: i32, %arg1: i32) -> (i32, i32) {
    %c0_i32 = arith.constant 0 : i32
    %c0_i32_0 = arith.constant 0 : i32
    %c0_i32_1 = arith.constant 0 : i32
    return %c0_i32, %c0_i32_0 : i32, i32
  }
  func.func @transform_7(%arg0: i32, %arg1: i32) -> (i32, i32) {
    %c0_i32 = arith.constant 0 : i32
    %c0_i32_0 = arith.constant 0 : i32
    %c0_i32_1 = arith.constant 0 : i32
    return %c0_i32, %c0_i32_0 : i32, i32
  }
  func.func @transform_8(%arg0: i32, %arg1: i32) -> (i32, i32) {
    %c0_i32 = arith.constant 0 : i32
    %c0_i32_0 = arith.constant 0 : i32
    %c0_i32_1 = arith.constant 0 : i32
    return %c0_i32, %c0_i32_0 : i32, i32
  }
  func.func @transform_9(%arg0: i32, %arg1: i32) -> (i32, i32) {
    %c0_i32 = arith.constant 0 : i32
    %c0_i32_0 = arith.constant 0 : i32
    %c0_i32_1 = arith.constant 0 : i32
    return %c0_i32, %c0_i32_0 : i32, i32
  }
  func.func @transform_10(%arg0: i32, %arg1: i32) -> (i32, i32, i32) {
    %c0_i32 = arith.constant 0 : i32
    %c0_i32_0 = arith.constant 0 : i32
    return %arg0, %arg1, %c0_i32 : i32, i32, i32
  }
  func.func @transform_11(%arg0: i32, %arg1: i32) -> (i32, i32, i32) {
    %c0_i32 = arith.constant 0 : i32
    %c0_i32_0 = arith.constant 0 : i32
    return %arg0, %arg1, %c0_i32 : i32, i32, i32
  }
}

module attributes {stable_mosaic.version = 11 : i64} {
  func.func @_src_attn_kernel(%arg0: i32, %arg1: i32, %arg2: memref<1x8x32xbf16, #tpu.memory_space<vmem>>, %arg3: memref<1x10x64xbf16, #tpu.memory_space<vmem>>, %arg4: memref<1x1x10xi8, #tpu.memory_space<vmem>>, %arg5: memref<1x8x32xf32, #tpu.memory_space<vmem>>, %arg6: memref<32x32xbf16, #tpu.memory_space<vmem>>, %arg7: memref<1x32xf32, #tpu.memory_space<vmem>>, %arg8: memref<1x8x32xf32, #tpu.memory_space<vmem>>) attributes {dimension_semantics = [#tpu.dimension_semantics<parallel>, #tpu.dimension_semantics<parallel>], iteration_bounds = array<i64: 2, 1>, scalar_prefetch = 0 : i64, scratch_operands = 0 : i64, tpu.core_type = #tpu.core_type<tc>, window_params = [{transform_indices = @transform_0, window_bounds = array<i64: 1, 8, 32>}, {transform_indices = @transform_1, window_bounds = array<i64: 1, 10, 64>}, {transform_indices = @transform_2, window_bounds = array<i64: 1, 1, 10>}, {transform_indices = @transform_3, window_bounds = array<i64: 1, 8, 32>}, {pipeline_mode = #tpu.pipeline_mode<synchronous>, transform_indices = @transform_4, window_bounds = array<i64: 32, 32>}, {pipeline_mode = #tpu.pipeline_mode<synchronous>, transform_indices = @transform_5, window_bounds = array<i64: 1, 32>}, {transform_indices = @transform_6, window_bounds = array<i64: 1, 8, 32>}]} {
    %c0 = arith.constant 0 : index
    %c0_0 = arith.constant 0 : index
    %c0_1 = arith.constant 0 : index
    %0 = vector.load %arg4[%c0, %c0_0, %c0_1] : memref<1x1x10xi8, #tpu.memory_space<vmem>>, vector<1x1x10xi8>
    %1 = vector.shape_cast %0 : vector<1x1x10xi8> to vector<1x10xi8>
    %2 = arith.sitofp %1 : vector<1x10xi8> to vector<1x10xf32>
    %cst = arith.constant 0.000000e+00 : f32
    %3 = vector.broadcast %cst : f32 to vector<1x10xf32>
    %4 = arith.cmpf oeq, %2, %3 : vector<1x10xf32>
    %cst_2 = arith.constant -1.000000e+09 : f32
    %cst_3 = arith.constant 0.000000e+00 : f32
    %5 = vector.broadcast %cst_2 : f32 to vector<1x10xf32>
    %6 = vector.broadcast %cst_3 : f32 to vector<1x10xf32>
    %7 = arith.select %4, %5, %6 : vector<1x10xi1>, vector<1x10xf32>
    %c0_4 = arith.constant 0 : index
    %c0_5 = arith.constant 0 : index
    %c0_6 = arith.constant 0 : index
    %8 = vector.load %arg2[%c0_4, %c0_5, %c0_6] : memref<1x8x32xbf16, #tpu.memory_space<vmem>>, vector<1x8x32xbf16>
    %9 = vector.shape_cast %8 : vector<1x8x32xbf16> to vector<8x32xbf16>
    %c0_7 = arith.constant 0 : index
    %c0_8 = arith.constant 0 : index
    %c0_9 = arith.constant 0 : index
    %10 = vector.load %arg3[%c0_7, %c0_8, %c0_9] : memref<1x10x64xbf16, #tpu.memory_space<vmem>>, vector<1x10x64xbf16>
    %11 = vector.shape_cast %10 : vector<1x10x64xbf16> to vector<10x64xbf16>
    %c0_10 = arith.constant 0 : index
    %c0_11 = arith.constant 0 : index
    %12 = vector.load %arg6[%c0_10, %c0_11] : memref<32x32xbf16, #tpu.memory_space<vmem>>, vector<32x32xbf16>
    %13 = vector.extract_strided_slice %9 {offsets = [0, 0], sizes = [8, 8], strides = [1, 1]} : vector<8x32xbf16> to vector<8x8xbf16>
    %14 = vector.extract_strided_slice %11 {offsets = [0, 0], sizes = [10, 8], strides = [1, 1]} : vector<10x64xbf16> to vector<10x8xbf16>
    %cst_12 = arith.constant dense<0.000000e+00> : vector<8x10xf32>
    %15 = tpu.matmul %13, %14, %cst_12 {dimension_numbers = #tpu.dot_dimension_numbers<[1], [1], [0], [0], [0, 0, 1, 0], [], []>} : vector<8x8xbf16>, vector<10x8xbf16>, vector<8x10xf32> -> vector<8x10xf32>
    %16 = vector.broadcast %7 : vector<1x10xf32> to vector<8x10xf32>
    %17 = arith.addf %15, %16 : vector<8x10xf32>
    %cst_13 = arith.constant dense<0xFF800000> : vector<8xf32>
    %18 = vector.multi_reduction <maximumf>, %17, %cst_13 [1] : vector<8x10xf32> to vector<8xf32>
    %19 = vector.shape_cast %18 : vector<8xf32> to vector<8x1xf32>
    %20 = vector.broadcast %19 : vector<8x1xf32> to vector<8x10xf32>
    %21 = arith.subf %17, %20 : vector<8x10xf32>
    %22 = math.exp %21 : vector<8x10xf32>
    %cst_14 = arith.constant dense<0.000000e+00> : vector<8xf32>
    %23 = vector.multi_reduction <add>, %22, %cst_14 [1] : vector<8x10xf32> to vector<8xf32>
    %24 = vector.shape_cast %23 : vector<8xf32> to vector<8x1xf32>
    %25 = tpu.reciprocal %24 {approx = true} : vector<8x1xf32> -> vector<8x1xf32>
    %26 = vector.broadcast %25 : vector<8x1xf32> to vector<8x10xf32>
    %27 = arith.mulf %22, %26 : vector<8x10xf32>
    %28 = arith.truncf %27 : vector<8x10xf32> to vector<8x10xbf16>
    %29 = vector.extract_strided_slice %11 {offsets = [0, 32], sizes = [10, 8], strides = [1, 1]} : vector<10x64xbf16> to vector<10x8xbf16>
    %cst_15 = arith.constant dense<0.000000e+00> : vector<8x8xf32>
    %30 = tpu.matmul %28, %29, %cst_15 {dimension_numbers = #tpu.dot_dimension_numbers<[1], [0], [0], [1], [0, 0, 1, 1], [], []>} : vector<8x10xbf16>, vector<10x8xbf16>, vector<8x8xf32> -> vector<8x8xf32>
    %31 = arith.truncf %30 : vector<8x8xf32> to vector<8x8xbf16>
    %32 = vector.extract_strided_slice %9 {offsets = [0, 8], sizes = [8, 8], strides = [1, 1]} : vector<8x32xbf16> to vector<8x8xbf16>
    %33 = vector.extract_strided_slice %11 {offsets = [0, 8], sizes = [10, 8], strides = [1, 1]} : vector<10x64xbf16> to vector<10x8xbf16>
    %cst_16 = arith.constant dense<0.000000e+00> : vector<8x10xf32>
    %34 = tpu.matmul %32, %33, %cst_16 {dimension_numbers = #tpu.dot_dimension_numbers<[1], [1], [0], [0], [0, 0, 1, 0], [], []>} : vector<8x8xbf16>, vector<10x8xbf16>, vector<8x10xf32> -> vector<8x10xf32>
    %35 = vector.broadcast %7 : vector<1x10xf32> to vector<8x10xf32>
    %36 = arith.addf %34, %35 : vector<8x10xf32>
    %cst_17 = arith.constant dense<0xFF800000> : vector<8xf32>
    %37 = vector.multi_reduction <maximumf>, %36, %cst_17 [1] : vector<8x10xf32> to vector<8xf32>
    %38 = vector.shape_cast %37 : vector<8xf32> to vector<8x1xf32>
    %39 = vector.broadcast %38 : vector<8x1xf32> to vector<8x10xf32>
    %40 = arith.subf %36, %39 : vector<8x10xf32>
    %41 = math.exp %40 : vector<8x10xf32>
    %cst_18 = arith.constant dense<0.000000e+00> : vector<8xf32>
    %42 = vector.multi_reduction <add>, %41, %cst_18 [1] : vector<8x10xf32> to vector<8xf32>
    %43 = vector.shape_cast %42 : vector<8xf32> to vector<8x1xf32>
    %44 = tpu.reciprocal %43 {approx = true} : vector<8x1xf32> -> vector<8x1xf32>
    %45 = vector.broadcast %44 : vector<8x1xf32> to vector<8x10xf32>
    %46 = arith.mulf %41, %45 : vector<8x10xf32>
    %47 = arith.truncf %46 : vector<8x10xf32> to vector<8x10xbf16>
    %48 = vector.extract_strided_slice %11 {offsets = [0, 40], sizes = [10, 8], strides = [1, 1]} : vector<10x64xbf16> to vector<10x8xbf16>
    %cst_19 = arith.constant dense<0.000000e+00> : vector<8x8xf32>
    %49 = tpu.matmul %47, %48, %cst_19 {dimension_numbers = #tpu.dot_dimension_numbers<[1], [0], [0], [1], [0, 0, 1, 1], [], []>} : vector<8x10xbf16>, vector<10x8xbf16>, vector<8x8xf32> -> vector<8x8xf32>
    %50 = arith.truncf %49 : vector<8x8xf32> to vector<8x8xbf16>
    %51 = vector.extract_strided_slice %9 {offsets = [0, 16], sizes = [8, 8], strides = [1, 1]} : vector<8x32xbf16> to vector<8x8xbf16>
    %52 = vector.extract_strided_slice %11 {offsets = [0, 16], sizes = [10, 8], strides = [1, 1]} : vector<10x64xbf16> to vector<10x8xbf16>
    %cst_20 = arith.constant dense<0.000000e+00> : vector<8x10xf32>
    %53 = tpu.matmul %51, %52, %cst_20 {dimension_numbers = #tpu.dot_dimension_numbers<[1], [1], [0], [0], [0, 0, 1, 0], [], []>} : vector<8x8xbf16>, vector<10x8xbf16>, vector<8x10xf32> -> vector<8x10xf32>
    %54 = vector.broadcast %7 : vector<1x10xf32> to vector<8x10xf32>
    %55 = arith.addf %53, %54 : vector<8x10xf32>
    %cst_21 = arith.constant dense<0xFF800000> : vector<8xf32>
    %56 = vector.multi_reduction <maximumf>, %55, %cst_21 [1] : vector<8x10xf32> to vector<8xf32>
    %57 = vector.shape_cast %56 : vector<8xf32> to vector<8x1xf32>
    %58 = vector.broadcast %57 : vector<8x1xf32> to vector<8x10xf32>
    %59 = arith.subf %55, %58 : vector<8x10xf32>
    %60 = math.exp %59 : vector<8x10xf32>
    %cst_22 = arith.constant dense<0.000000e+00> : vector<8xf32>
    %61 = vector.multi_reduction <add>, %60, %cst_22 [1] : vector<8x10xf32> to vector<8xf32>
    %62 = vector.shape_cast %61 : vector<8xf32> to vector<8x1xf32>
    %63 = tpu.reciprocal %62 {approx = true} : vector<8x1xf32> -> vector<8x1xf32>
    %64 = vector.broadcast %63 : vector<8x1xf32> to vector<8x10xf32>
    %65 = arith.mulf %60, %64 : vector<8x10xf32>
    %66 = arith.truncf %65 : vector<8x10xf32> to vector<8x10xbf16>
    %67 = vector.extract_strided_slice %11 {offsets = [0, 48], sizes = [10, 8], strides = [1, 1]} : vector<10x64xbf16> to vector<10x8xbf16>
    %cst_23 = arith.constant dense<0.000000e+00> : vector<8x8xf32>
    %68 = tpu.matmul %66, %67, %cst_23 {dimension_numbers = #tpu.dot_dimension_numbers<[1], [0], [0], [1], [0, 0, 1, 1], [], []>} : vector<8x10xbf16>, vector<10x8xbf16>, vector<8x8xf32> -> vector<8x8xf32>
    %69 = arith.truncf %68 : vector<8x8xf32> to vector<8x8xbf16>
    %70 = vector.extract_strided_slice %9 {offsets = [0, 24], sizes = [8, 8], strides = [1, 1]} : vector<8x32xbf16> to vector<8x8xbf16>
    %71 = vector.extract_strided_slice %11 {offsets = [0, 24], sizes = [10, 8], strides = [1, 1]} : vector<10x64xbf16> to vector<10x8xbf16>
    %cst_24 = arith.constant dense<0.000000e+00> : vector<8x10xf32>
    %72 = tpu.matmul %70, %71, %cst_24 {dimension_numbers = #tpu.dot_dimension_numbers<[1], [1], [0], [0], [0, 0, 1, 0], [], []>} : vector<8x8xbf16>, vector<10x8xbf16>, vector<8x10xf32> -> vector<8x10xf32>
    %73 = vector.broadcast %7 : vector<1x10xf32> to vector<8x10xf32>
    %74 = arith.addf %72, %73 : vector<8x10xf32>
    %cst_25 = arith.constant dense<0xFF800000> : vector<8xf32>
    %75 = vector.multi_reduction <maximumf>, %74, %cst_25 [1] : vector<8x10xf32> to vector<8xf32>
    %76 = vector.shape_cast %75 : vector<8xf32> to vector<8x1xf32>
    %77 = vector.broadcast %76 : vector<8x1xf32> to vector<8x10xf32>
    %78 = arith.subf %74, %77 : vector<8x10xf32>
    %79 = math.exp %78 : vector<8x10xf32>
    %cst_26 = arith.constant dense<0.000000e+00> : vector<8xf32>
    %80 = vector.multi_reduction <add>, %79, %cst_26 [1] : vector<8x10xf32> to vector<8xf32>
    %81 = vector.shape_cast %80 : vector<8xf32> to vector<8x1xf32>
    %82 = tpu.reciprocal %81 {approx = true} : vector<8x1xf32> -> vector<8x1xf32>
    %83 = vector.broadcast %82 : vector<8x1xf32> to vector<8x10xf32>
    %84 = arith.mulf %79, %83 : vector<8x10xf32>
    %85 = arith.truncf %84 : vector<8x10xf32> to vector<8x10xbf16>
    %86 = vector.extract_strided_slice %11 {offsets = [0, 56], sizes = [10, 8], strides = [1, 1]} : vector<10x64xbf16> to vector<10x8xbf16>
    %cst_27 = arith.constant dense<0.000000e+00> : vector<8x8xf32>
    %87 = tpu.matmul %85, %86, %cst_27 {dimension_numbers = #tpu.dot_dimension_numbers<[1], [0], [0], [1], [0, 0, 1, 1], [], []>} : vector<8x10xbf16>, vector<10x8xbf16>, vector<8x8xf32> -> vector<8x8xf32>
    %88 = arith.truncf %87 : vector<8x8xf32> to vector<8x8xbf16>
    %89 = tpu.concatenate %31, %50, %69, %88 in 1 : vector<8x8xbf16>, vector<8x8xbf16>, vector<8x8xbf16>, vector<8x8xbf16> -> vector<8x32xbf16>
    %cst_28 = arith.constant dense<0.000000e+00> : vector<8x32xf32>
    %90 = tpu.matmul %89, %12, %cst_28 {dimension_numbers = #tpu.dot_dimension_numbers<[1], [0], [0], [1], [0, 0, 1, 1], [], []>} : vector<8x32xbf16>, vector<32x32xbf16>, vector<8x32xf32> -> vector<8x32xf32>
    %c0_29 = arith.constant 0 : index
    %c0_30 = arith.constant 0 : index
    %c0_31 = arith.constant 0 : index
    %91 = vector.load %arg5[%c0_29, %c0_30, %c0_31] : memref<1x8x32xf32, #tpu.memory_space<vmem>>, vector<1x8x32xf32>
    %92 = vector.shape_cast %91 : vector<1x8x32xf32> to vector<8x32xf32>
    %93 = arith.addf %92, %90 : vector<8x32xf32>
    %c0_32 = arith.constant 0 : index
    %c0_33 = arith.constant 0 : index
    %94 = vector.load %arg7[%c0_32, %c0_33] : memref<1x32xf32, #tpu.memory_space<vmem>>, vector<1x32xf32>
    %95 = vector.broadcast %94 : vector<1x32xf32> to vector<8x32xf32>
    %96 = arith.addf %93, %95 : vector<8x32xf32>
    %c0_34 = arith.constant 0 : index
    %c0_35 = arith.constant 0 : index
    %c0_36 = arith.constant 0 : index
    %97 = vector.load %arg8[%c0_34, %c0_35, %c0_36] : memref<1x8x32xf32, #tpu.memory_space<vmem>>, vector<1x8x32xf32>
    %98 = vector.shape_cast %97 : vector<1x8x32xf32> to vector<8x32xf32>
    %99 = vector.shape_cast %96 : vector<8x32xf32> to vector<1x8x32xf32>
    tpu.vector_store %arg8[%c0_34, %c0_35, %c0_36], %99 {strides = array<i32>} : memref<1x8x32xf32, #tpu.memory_space<vmem>>, vector<1x8x32xf32>,
    return
  }
  func.func @transform_0(%arg0: i32, %arg1: i32) -> (i32, i32, i32) {
    %c0_i32 = arith.constant 0 : i32
    %c0_i32_0 = arith.constant 0 : i32
    return %arg0, %arg1, %c0_i32 : i32, i32, i32
  }
  func.func @transform_1(%arg0: i32, %arg1: i32) -> (i32, i32, i32) {
    %c0_i32 = arith.constant 0 : i32
    %c0_i32_0 = arith.constant 0 : i32
    %c0_i32_1 = arith.constant 0 : i32
    return %arg0, %c0_i32, %c0_i32_0 : i32, i32, i32
  }
  func.func @transform_2(%arg0: i32, %arg1: i32) -> (i32, i32, i32) {
    %c0_i32 = arith.constant 0 : i32
    %c0_i32_0 = arith.constant 0 : i32
    %c0_i32_1 = arith.constant 0 : i32
    return %arg0, %c0_i32, %c0_i32_0 : i32, i32, i32
  }
  func.func @transform_3(%arg0: i32, %arg1: i32) -> (i32, i32, i32) {
    %c0_i32 = arith.constant 0 : i32
    %c0_i32_0 = arith.constant 0 : i32
    return %arg0, %arg1, %c0_i32 : i32, i32, i32
  }
  func.func @transform_4(%arg0: i32, %arg1: i32) -> (i32, i32) {
    %c0_i32 = arith.constant 0 : i32
    %c0_i32_0 = arith.constant 0 : i32
    %c0_i32_1 = arith.constant 0 : i32
    return %c0_i32, %c0_i32_0 : i32, i32
  }
  func.func @transform_5(%arg0: i32, %arg1: i32) -> (i32, i32) {
    %c0_i32 = arith.constant 0 : i32
    %c0_i32_0 = arith.constant 0 : i32
    %c0_i32_1 = arith.constant 0 : i32
    return %c0_i32, %c0_i32_0 : i32, i32
  }
  func.func @transform_6(%arg0: i32, %arg1: i32) -> (i32, i32, i32) {
    %c0_i32 = arith.constant 0 : i32
    %c0_i32_0 = arith.constant 0 : i32
    return %arg0, %arg1, %c0_i32 : i32, i32, i32
  }
}

module attributes {stable_mosaic.version = 11 : i64} {
  func.func @_norm_ffn_kernel(%arg0: i32, %arg1: memref<16x32xf32, #tpu.memory_space<vmem>>, %arg2: memref<1x32xf32, #tpu.memory_space<vmem>>, %arg3: memref<1x32xf32, #tpu.memory_space<vmem>>, %arg4: memref<32x64xbf16, #tpu.memory_space<vmem>>, %arg5: memref<1x64xf32, #tpu.memory_space<vmem>>, %arg6: memref<64x32xbf16, #tpu.memory_space<vmem>>, %arg7: memref<1x32xf32, #tpu.memory_space<vmem>>, %arg8: memref<16x32xf32, #tpu.memory_space<vmem>>) attributes {dimension_semantics = [#tpu.dimension_semantics<parallel>], iteration_bounds = array<i64: 1>, scalar_prefetch = 0 : i64, scratch_operands = 0 : i64, tpu.core_type = #tpu.core_type<tc>, window_params = [{transform_indices = @transform_0, window_bounds = array<i64: 16, 32>}, {pipeline_mode = #tpu.pipeline_mode<synchronous>, transform_indices = @transform_1, window_bounds = array<i64: 1, 32>}, {pipeline_mode = #tpu.pipeline_mode<synchronous>, transform_indices = @transform_2, window_bounds = array<i64: 1, 32>}, {pipeline_mode = #tpu.pipeline_mode<synchronous>, transform_indices = @transform_3, window_bounds = array<i64: 32, 64>}, {pipeline_mode = #tpu.pipeline_mode<synchronous>, transform_indices = @transform_4, window_bounds = array<i64: 1, 64>}, {pipeline_mode = #tpu.pipeline_mode<synchronous>, transform_indices = @transform_5, window_bounds = array<i64: 64, 32>}, {pipeline_mode = #tpu.pipeline_mode<synchronous>, transform_indices = @transform_6, window_bounds = array<i64: 1, 32>}, {transform_indices = @transform_7, window_bounds = array<i64: 16, 32>}]} {
    %c0 = arith.constant 0 : index
    %c0_0 = arith.constant 0 : index
    %0 = vector.load %arg1[%c0, %c0_0] : memref<16x32xf32, #tpu.memory_space<vmem>>, vector<16x32xf32>
    %c0_1 = arith.constant 0 : index
    %c0_2 = arith.constant 0 : index
    %1 = vector.load %arg2[%c0_1, %c0_2] : memref<1x32xf32, #tpu.memory_space<vmem>>, vector<1x32xf32>
    %c0_3 = arith.constant 0 : index
    %c0_4 = arith.constant 0 : index
    %2 = vector.load %arg3[%c0_3, %c0_4] : memref<1x32xf32, #tpu.memory_space<vmem>>, vector<1x32xf32>
    %cst = arith.constant dense<0.000000e+00> : vector<16xf32>
    %3 = vector.multi_reduction <add>, %0, %cst [1] : vector<16x32xf32> to vector<16xf32>
    %4 = vector.shape_cast %3 : vector<16xf32> to vector<16x1xf32>
    %cst_5 = arith.constant 3.200000e+01 : f32
    %5 = vector.broadcast %cst_5 : f32 to vector<16x1xf32>
    %6 = arith.divf %4, %5 : vector<16x1xf32>
    %7 = vector.broadcast %6 : vector<16x1xf32> to vector<16x32xf32>
    %8 = arith.subf %0, %7 : vector<16x32xf32>
    %9 = arith.mulf %8, %8 : vector<16x32xf32>
    %cst_6 = arith.constant dense<0.000000e+00> : vector<16xf32>
    %10 = vector.multi_reduction <add>, %9, %cst_6 [1] : vector<16x32xf32> to vector<16xf32>
    %11 = vector.shape_cast %10 : vector<16xf32> to vector<16x1xf32>
    %cst_7 = arith.constant 3.100000e+01 : f32
    %12 = vector.broadcast %cst_7 : f32 to vector<16x1xf32>
    %13 = arith.divf %11, %12 : vector<16x1xf32>
    %14 = vector.broadcast %6 : vector<16x1xf32> to vector<16x32xf32>
    %15 = arith.subf %0, %14 : vector<16x32xf32>
    %16 = vector.broadcast %1 : vector<1x32xf32> to vector<16x32xf32>
    %17 = arith.mulf %16, %15 : vector<16x32xf32>
    %18 = math.sqrt %13 : vector<16x1xf32>
    %cst_8 = arith.constant 9.99999997E-7 : f32
    %19 = vector.broadcast %cst_8 : f32 to vector<16x1xf32>
    %20 = arith.addf %18, %19 : vector<16x1xf32>
    %21 = vector.broadcast %20 : vector<16x1xf32> to vector<16x32xf32>
    %22 = arith.divf %17, %21 : vector<16x32xf32>
    %23 = vector.broadcast %2 : vector<1x32xf32> to vector<16x32xf32>
    %24 = arith.addf %22, %23 : vector<16x32xf32>
    %25 = arith.truncf %24 : vector<16x32xf32> to vector<16x32xbf16>
    %c0_9 = arith.constant 0 : index
    %c0_10 = arith.constant 0 : index
    %26 = vector.load %arg4[%c0_9, %c0_10] : memref<32x64xbf16, #tpu.memory_space<vmem>>, vector<32x64xbf16>
    %cst_11 = arith.constant dense<0.000000e+00> : vector<16x64xf32>
    %27 = tpu.matmul %25, %26, %cst_11 {dimension_numbers = #tpu.dot_dimension_numbers<[1], [0], [0], [1], [0, 0, 1, 1], [], []>} : vector<16x32xbf16>, vector<32x64xbf16>, vector<16x64xf32> -> vector<16x64xf32>
    %c0_12 = arith.constant 0 : index
    %c0_13 = arith.constant 0 : index
    %28 = vector.load %arg5[%c0_12, %c0_13] : memref<1x64xf32, #tpu.memory_space<vmem>>, vector<1x64xf32>
    %29 = vector.broadcast %28 : vector<1x64xf32> to vector<16x64xf32>
    %30 = arith.addf %27, %29 : vector<16x64xf32>
    %cst_14 = arith.constant 0.000000e+00 : f32
    %31 = vector.broadcast %cst_14 : f32 to vector<16x64xf32>
    %32 = arith.maximumf %30, %31 : vector<16x64xf32>
    %33 = arith.truncf %32 : vector<16x64xf32> to vector<16x64xbf16>
    %c0_15 = arith.constant 0 : index
    %c0_16 = arith.constant 0 : index
    %34 = vector.load %arg6[%c0_15, %c0_16] : memref<64x32xbf16, #tpu.memory_space<vmem>>, vector<64x32xbf16>
    %cst_17 = arith.constant dense<0.000000e+00> : vector<16x32xf32>
    %35 = tpu.matmul %33, %34, %cst_17 {dimension_numbers = #tpu.dot_dimension_numbers<[1], [0], [0], [1], [0, 0, 1, 1], [], []>} : vector<16x64xbf16>, vector<64x32xbf16>, vector<16x32xf32> -> vector<16x32xf32>
    %c0_18 = arith.constant 0 : index
    %c0_19 = arith.constant 0 : index
    %36 = vector.load %arg7[%c0_18, %c0_19] : memref<1x32xf32, #tpu.memory_space<vmem>>, vector<1x32xf32>
    %37 = vector.broadcast %36 : vector<1x32xf32> to vector<16x32xf32>
    %38 = arith.addf %35, %37 : vector<16x32xf32>
    %39 = arith.addf %0, %38 : vector<16x32xf32>
    %c0_20 = arith.constant 0 : index
    %c0_21 = arith.constant 0 : index
    %40 = vector.load %arg8[%c0_20, %c0_21] : memref<16x32xf32, #tpu.memory_space<vmem>>, vector<16x32xf32>
    tpu.vector_store %arg8[%c0_20, %c0_21], %39 {strides = array<i32>} : memref<16x32xf32, #tpu.memory_space<vmem>>, vector<16x32xf32>,
    return
  }
  func.func @transform_0(%arg0: i32) -> (i32, i32) {
    %c0_i32 = arith.constant 0 : i32
    %c0_i32_0 = arith.constant 0 : i32
    return %arg0, %c0_i32 : i32, i32
  }
  func.func @transform_1(%arg0: i32) -> (i32, i32) {
    %c0_i32 = arith.constant 0 : i32
    %c0_i32_0 = arith.constant 0 : i32
    %c0_i32_1 = arith.constant 0 : i32
    return %c0_i32, %c0_i32_0 : i32, i32
  }
  func.func @transform_2(%arg0: i32) -> (i32, i32) {
    %c0_i32 = arith.constant 0 : i32
    %c0_i32_0 = arith.constant 0 : i32
    %c0_i32_1 = arith.constant 0 : i32
    return %c0_i32, %c0_i32_0 : i32, i32
  }
  func.func @transform_3(%arg0: i32) -> (i32, i32) {
    %c0_i32 = arith.constant 0 : i32
    %c0_i32_0 = arith.constant 0 : i32
    %c0_i32_1 = arith.constant 0 : i32
    return %c0_i32, %c0_i32_0 : i32, i32
  }
  func.func @transform_4(%arg0: i32) -> (i32, i32) {
    %c0_i32 = arith.constant 0 : i32
    %c0_i32_0 = arith.constant 0 : i32
    %c0_i32_1 = arith.constant 0 : i32
    return %c0_i32, %c0_i32_0 : i32, i32
  }
  func.func @transform_5(%arg0: i32) -> (i32, i32) {
    %c0_i32 = arith.constant 0 : i32
    %c0_i32_0 = arith.constant 0 : i32
    %c0_i32_1 = arith.constant 0 : i32
    return %c0_i32, %c0_i32_0 : i32, i32
  }
  func.func @transform_6(%arg0: i32) -> (i32, i32) {
    %c0_i32 = arith.constant 0 : i32
    %c0_i32_0 = arith.constant 0 : i32
    %c0_i32_1 = arith.constant 0 : i32
    return %c0_i32, %c0_i32_0 : i32, i32
  }
  func.func @transform_7(%arg0: i32) -> (i32, i32) {
    %c0_i32 = arith.constant 0 : i32
    %c0_i32_0 = arith.constant 0 : i32
    return %arg0, %c0_i32 : i32, i32
  }
}

module attributes {stable_mosaic.version = 11 : i64} {
  func.func @_norm_qkv_kernel(%arg0: i32, %arg1: memref<16x32xf32, #tpu.memory_space<vmem>>, %arg2: memref<1x32xf32, #tpu.memory_space<vmem>>, %arg3: memref<1x32xf32, #tpu.memory_space<vmem>>, %arg4: memref<32x96xbf16, #tpu.memory_space<vmem>>, %arg5: memref<1x96xf32, #tpu.memory_space<vmem>>, %arg6: memref<16x32xbf16, #tpu.memory_space<vmem>>, %arg7: memref<16x64xbf16, #tpu.memory_space<vmem>>) attributes {dimension_semantics = [#tpu.dimension_semantics<parallel>], iteration_bounds = array<i64: 1>, scalar_prefetch = 0 : i64, scratch_operands = 0 : i64, tpu.core_type = #tpu.core_type<tc>, window_params = [{transform_indices = @transform_0, window_bounds = array<i64: 16, 32>}, {pipeline_mode = #tpu.pipeline_mode<synchronous>, transform_indices = @transform_1, window_bounds = array<i64: 1, 32>}, {pipeline_mode = #tpu.pipeline_mode<synchronous>, transform_indices = @transform_2, window_bounds = array<i64: 1, 32>}, {pipeline_mode = #tpu.pipeline_mode<synchronous>, transform_indices = @transform_3, window_bounds = array<i64: 32, 96>}, {pipeline_mode = #tpu.pipeline_mode<synchronous>, transform_indices = @transform_4, window_bounds = array<i64: 1, 96>}, {transform_indices = @transform_5, window_bounds = array<i64: 16, 32>}, {transform_indices = @transform_6, window_bounds = array<i64: 16, 64>}]} {
    %c0 = arith.constant 0 : index
    %c0_0 = arith.constant 0 : index
    %0 = vector.load %arg1[%c0, %c0_0] : memref<16x32xf32, #tpu.memory_space<vmem>>, vector<16x32xf32>
    %c0_1 = arith.constant 0 : index
    %c0_2 = arith.constant 0 : index
    %1 = vector.load %arg2[%c0_1, %c0_2] : memref<1x32xf32, #tpu.memory_space<vmem>>, vector<1x32xf32>
    %c0_3 = arith.constant 0 : index
    %c0_4 = arith.constant 0 : index
    %2 = vector.load %arg3[%c0_3, %c0_4] : memref<1x32xf32, #tpu.memory_space<vmem>>, vector<1x32xf32>
    %cst = arith.constant dense<0.000000e+00> : vector<16xf32>
    %3 = vector.multi_reduction <add>, %0, %cst [1] : vector<16x32xf32> to vector<16xf32>
    %4 = vector.shape_cast %3 : vector<16xf32> to vector<16x1xf32>
    %cst_5 = arith.constant 3.200000e+01 : f32
    %5 = vector.broadcast %cst_5 : f32 to vector<16x1xf32>
    %6 = arith.divf %4, %5 : vector<16x1xf32>
    %7 = vector.broadcast %6 : vector<16x1xf32> to vector<16x32xf32>
    %8 = arith.subf %0, %7 : vector<16x32xf32>
    %9 = arith.mulf %8, %8 : vector<16x32xf32>
    %cst_6 = arith.constant dense<0.000000e+00> : vector<16xf32>
    %10 = vector.multi_reduction <add>, %9, %cst_6 [1] : vector<16x32xf32> to vector<16xf32>
    %11 = vector.shape_cast %10 : vector<16xf32> to vector<16x1xf32>
    %cst_7 = arith.constant 3.100000e+01 : f32
    %12 = vector.broadcast %cst_7 : f32 to vector<16x1xf32>
    %13 = arith.divf %11, %12 : vector<16x1xf32>
    %14 = vector.broadcast %6 : vector<16x1xf32> to vector<16x32xf32>
    %15 = arith.subf %0, %14 : vector<16x32xf32>
    %16 = vector.broadcast %1 : vector<1x32xf32> to vector<16x32xf32>
    %17 = arith.mulf %16, %15 : vector<16x32xf32>
    %18 = math.sqrt %13 : vector<16x1xf32>
    %cst_8 = arith.constant 9.99999997E-7 : f32
    %19 = vector.broadcast %cst_8 : f32 to vector<16x1xf32>
    %20 = arith.addf %18, %19 : vector<16x1xf32>
    %21 = vector.broadcast %20 : vector<16x1xf32> to vector<16x32xf32>
    %22 = arith.divf %17, %21 : vector<16x32xf32>
    %23 = vector.broadcast %2 : vector<1x32xf32> to vector<16x32xf32>
    %24 = arith.addf %22, %23 : vector<16x32xf32>
    %25 = arith.truncf %24 : vector<16x32xf32> to vector<16x32xbf16>
    %c0_9 = arith.constant 0 : index
    %c0_10 = arith.constant 0 : index
    %26 = vector.load %arg4[%c0_9, %c0_10] : memref<32x96xbf16, #tpu.memory_space<vmem>>, vector<32x96xbf16>
    %cst_11 = arith.constant dense<0.000000e+00> : vector<16x96xf32>
    %27 = tpu.matmul %25, %26, %cst_11 {dimension_numbers = #tpu.dot_dimension_numbers<[1], [0], [0], [1], [0, 0, 1, 1], [], []>} : vector<16x32xbf16>, vector<32x96xbf16>, vector<16x96xf32> -> vector<16x96xf32>
    %c0_12 = arith.constant 0 : index
    %c0_13 = arith.constant 0 : index
    %28 = vector.load %arg5[%c0_12, %c0_13] : memref<1x96xf32, #tpu.memory_space<vmem>>, vector<1x96xf32>
    %29 = vector.broadcast %28 : vector<1x96xf32> to vector<16x96xf32>
    %30 = arith.addf %27, %29 : vector<16x96xf32>
    %31 = vector.extract_strided_slice %30 {offsets = [0, 0], sizes = [16, 32], strides = [1, 1]} : vector<16x96xf32> to vector<16x32xf32>
    %cst_14 = arith.constant 0.353553385 : f32
    %32 = vector.broadcast %cst_14 : f32 to vector<16x32xf32>
    %33 = arith.mulf %31, %32 : vector<16x32xf32>
    %34 = arith.truncf %33 : vector<16x32xf32> to vector<16x32xbf16>
    %c0_15 = arith.constant 0 : index
    %c0_16 = arith.constant 0 : index
    %35 = vector.load %arg6[%c0_15, %c0_16] : memref<16x32xbf16, #tpu.memory_space<vmem>>, vector<16x32xbf16>
    tpu.vector_store %arg6[%c0_15, %c0_16], %34 {strides = array<i32>} : memref<16x32xbf16, #tpu.memory_space<vmem>>, vector<16x32xbf16>,
    %36 = vector.extract_strided_slice %30 {offsets = [0, 32], sizes = [16, 64], strides = [1, 1]} : vector<16x96xf32> to vector<16x64xf32>
    %37 = arith.truncf %36 : vector<16x64xf32> to vector<16x64xbf16>
    %c0_17 = arith.constant 0 : index
    %c0_18 = arith.constant 0 : index
    %38 = vector.load %arg7[%c0_17, %c0_18] : memref<16x64xbf16, #tpu.memory_space<vmem>>, vector<16x64xbf16>
    tpu.vector_store %arg7[%c0_17, %c0_18], %37 {strides = array<i32>} : memref<16x64xbf16, #tpu.memory_space<vmem>>, vector<16x64xbf16>,
    return
  }
  func.func @transform_0(%arg0: i32) -> (i32, i32) {
    %c0_i32 = arith.constant 0 : i32
    %c0_i32_0 = arith.constant 0 : i32
    return %arg0, %c0_i32 : i32, i32
  }
  func.func @transform_1(%arg0: i32) -> (i32, i32) {
    %c0_i32 = arith.constant 0 : i32
    %c0_i32_0 = arith.constant 0 : i32
    %c0_i32_1 = arith.constant 0 : i32
    return %c0_i32, %c0_i32_0 : i32, i32
  }
  func.func @transform_2(%arg0: i32) -> (i32, i32) {
    %c0_i32 = arith.constant 0 : i32
    %c0_i32_0 = arith.constant 0 : i32
    %c0_i32_1 = arith.constant 0 : i32
    return %c0_i32, %c0_i32_0 : i32, i32
  }
  func.func @transform_3(%arg0: i32) -> (i32, i32) {
    %c0_i32 = arith.constant 0 : i32
    %c0_i32_0 = arith.constant 0 : i32
    %c0_i32_1 = arith.constant 0 : i32
    return %c0_i32, %c0_i32_0 : i32, i32
  }
  func.func @transform_4(%arg0: i32) -> (i32, i32) {
    %c0_i32 = arith.constant 0 : i32
    %c0_i32_0 = arith.constant 0 : i32
    %c0_i32_1 = arith.constant 0 : i32
    return %c0_i32, %c0_i32_0 : i32, i32
  }
  func.func @transform_5(%arg0: i32) -> (i32, i32) {
    %c0_i32 = arith.constant 0 : i32
    %c0_i32_0 = arith.constant 0 : i32
    return %arg0, %c0_i32 : i32, i32
  }
  func.func @transform_6(%arg0: i32) -> (i32, i32) {
    %c0_i32 = arith.constant 0 : i32
    %c0_i32_0 = arith.constant 0 : i32
    return %arg0, %c0_i32 : i32, i32
  }
}

module attributes {stable_mosaic.version = 11 : i64} {
  func.func @_self_attn_kernel(%arg0: i32, %arg1: i32, %arg2: memref<1x8x32xbf16, #tpu.memory_space<vmem>>, %arg3: memref<1x8x64xbf16, #tpu.memory_space<vmem>>, %arg4: memref<1x8x8xi8, #tpu.memory_space<vmem>>, %arg5: memref<1x8x32xf32, #tpu.memory_space<vmem>>, %arg6: memref<32x32xbf16, #tpu.memory_space<vmem>>, %arg7: memref<1x32xf32, #tpu.memory_space<vmem>>, %arg8: memref<1x32xf32, #tpu.memory_space<vmem>>, %arg9: memref<1x32xf32, #tpu.memory_space<vmem>>, %arg10: memref<32x32xbf16, #tpu.memory_space<vmem>>, %arg11: memref<1x32xf32, #tpu.memory_space<vmem>>, %arg12: memref<1x8x32xf32, #tpu.memory_space<vmem>>, %arg13: memref<1x8x32xbf16, #tpu.memory_space<vmem>>) attributes {dimension_semantics = [#tpu.dimension_semantics<parallel>, #tpu.dimension_semantics<parallel>], iteration_bounds = array<i64: 2, 1>, scalar_prefetch = 0 : i64, scratch_operands = 0 : i64, tpu.core_type = #tpu.core_type<tc>, window_params = [{transform_indices = @transform_0, window_bounds = array<i64: 1, 8, 32>}, {transform_indices = @transform_1, window_bounds = array<i64: 1, 8, 64>}, {transform_indices = @transform_2, window_bounds = array<i64: 1, 8, 8>}, {transform_indices = @transform_3, window_bounds = array<i64: 1, 8, 32>}, {pipeline_mode = #tpu.pipeline_mode<synchronous>, transform_indices = @transform_4, window_bounds = array<i64: 32, 32>}, {pipeline_mode = #tpu.pipeline_mode<synchronous>, transform_indices = @transform_5, window_bounds = array<i64: 1, 32>}, {pipeline_mode = #tpu.pipeline_mode<synchronous>, transform_indices = @transform_6, window_bounds = array<i64: 1, 32>}, {pipeline_mode = #tpu.pipeline_mode<synchronous>, transform_indices = @transform_7, window_bounds = array<i64: 1, 32>}, {pipeline_mode = #tpu.pipeline_mode<synchronous>, transform_indices = @transform_8, window_bounds = array<i64: 32, 32>}, {pipeline_mode = #tpu.pipeline_mode<synchronous>, transform_indices = @transform_9, window_bounds = array<i64: 1, 32>}, {transform_indices = @transform_10, window_bounds = array<i64: 1, 8, 32>}, {transform_indices = @transform_11, window_bounds = array<i64: 1, 8, 32>}]} {
    %c0 = arith.constant 0 : index
    %c0_0 = arith.constant 0 : index
    %c0_1 = arith.constant 0 : index
    %0 = vector.load %arg4[%c0, %c0_0, %c0_1] : memref<1x8x8xi8, #tpu.memory_space<vmem>>, vector<1x8x8xi8>
    %1 = vector.shape_cast %0 : vector<1x8x8xi8> to vector<8x8xi8>
    %2 = arith.sitofp %1 : vector<8x8xi8> to vector<8x8xf32>
    %cst = arith.constant 0.000000e+00 : f32
    %3 = vector.broadcast %cst : f32 to vector<8x8xf32>
    %4 = arith.cmpf oeq, %2, %3 : vector<8x8xf32>
    %cst_2 = arith.constant -1.000000e+09 : f32
    %cst_3 = arith.constant 0.000000e+00 : f32
    %5 = vector.broadcast %cst_2 : f32 to vector<8x8xf32>
    %6 = vector.broadcast %cst_3 : f32 to vector<8x8xf32>
    %7 = arith.select %4, %5, %6 : vector<8x8xi1>, vector<8x8xf32>
    %c0_4 = arith.constant 0 : index
    %c0_5 = arith.constant 0 : index
    %c0_6 = arith.constant 0 : index
    %8 = vector.load %arg2[%c0_4, %c0_5, %c0_6] : memref<1x8x32xbf16, #tpu.memory_space<vmem>>, vector<1x8x32xbf16>
    %9 = vector.shape_cast %8 : vector<1x8x32xbf16> to vector<8x32xbf16>
    %c0_7 = arith.constant 0 : index
    %c0_8 = arith.constant 0 : index
    %c0_9 = arith.constant 0 : index
    %10 = vector.load %arg3[%c0_7, %c0_8, %c0_9] : memref<1x8x64xbf16, #tpu.memory_space<vmem>>, vector<1x8x64xbf16>
    %11 = vector.shape_cast %10 : vector<1x8x64xbf16> to vector<8x64xbf16>
    %c0_10 = arith.constant 0 : index
    %c0_11 = arith.constant 0 : index
    %12 = vector.load %arg6[%c0_10, %c0_11] : memref<32x32xbf16, #tpu.memory_space<vmem>>, vector<32x32xbf16>
    %13 = vector.extract_strided_slice %9 {offsets = [0, 0], sizes = [8, 8], strides = [1, 1]} : vector<8x32xbf16> to vector<8x8xbf16>
    %14 = vector.extract_strided_slice %11 {offsets = [0, 0], sizes = [8, 8], strides = [1, 1]} : vector<8x64xbf16> to vector<8x8xbf16>
    %cst_12 = arith.constant dense<0.000000e+00> : vector<8x8xf32>
    %15 = tpu.matmul %13, %14, %cst_12 {dimension_numbers = #tpu.dot_dimension_numbers<[1], [1], [0], [0], [0, 0, 1, 0], [], []>} : vector<8x8xbf16>, vector<8x8xbf16>, vector<8x8xf32> -> vector<8x8xf32>
    %16 = arith.addf %15, %7 : vector<8x8xf32>
    %cst_13 = arith.constant dense<0xFF800000> : vector<8xf32>
    %17 = vector.multi_reduction <maximumf>, %16, %cst_13 [1] : vector<8x8xf32> to vector<8xf32>
    %18 = vector.shape_cast %17 : vector<8xf32> to vector<8x1xf32>
    %19 = vector.broadcast %18 : vector<8x1xf32> to vector<8x8xf32>
    %20 = arith.subf %16, %19 : vector<8x8xf32>
    %21 = math.exp %20 : vector<8x8xf32>
    %cst_14 = arith.constant dense<0.000000e+00> : vector<8xf32>
    %22 = vector.multi_reduction <add>, %21, %cst_14 [1] : vector<8x8xf32> to vector<8xf32>
    %23 = vector.shape_cast %22 : vector<8xf32> to vector<8x1xf32>
    %24 = tpu.reciprocal %23 {approx = true} : vector<8x1xf32> -> vector<8x1xf32>
    %25 = vector.broadcast %24 : vector<8x1xf32> to vector<8x8xf32>
    %26 = arith.mulf %21, %25 : vector<8x8xf32>
    %27 = arith.truncf %26 : vector<8x8xf32> to vector<8x8xbf16>
    %28 = vector.extract_strided_slice %11 {offsets = [0, 32], sizes = [8, 8], strides = [1, 1]} : vector<8x64xbf16> to vector<8x8xbf16>
    %cst_15 = arith.constant dense<0.000000e+00> : vector<8x8xf32>
    %29 = tpu.matmul %27, %28, %cst_15 {dimension_numbers = #tpu.dot_dimension_numbers<[1], [0], [0], [1], [0, 0, 1, 1], [], []>} : vector<8x8xbf16>, vector<8x8xbf16>, vector<8x8xf32> -> vector<8x8xf32>
    %30 = arith.truncf %29 : vector<8x8xf32> to vector<8x8xbf16>
    %31 = vector.extract_strided_slice %9 {offsets = [0, 8], sizes = [8, 8], strides = [1, 1]} : vector<8x32xbf16> to vector<8x8xbf16>
    %32 = vector.extract_strided_slice %11 {offsets = [0, 8], sizes = [8, 8], strides = [1, 1]} : vector<8x64xbf16> to vector<8x8xbf16>
    %cst_16 = arith.constant dense<0.000000e+00> : vector<8x8xf32>
    %33 = tpu.matmul %31, %32, %cst_16 {dimension_numbers = #tpu.dot_dimension_numbers<[1], [1], [0], [0], [0, 0, 1, 0], [], []>} : vector<8x8xbf16>, vector<8x8xbf16>, vector<8x8xf32> -> vector<8x8xf32>
    %34 = arith.addf %33, %7 : vector<8x8xf32>
    %cst_17 = arith.constant dense<0xFF800000> : vector<8xf32>
    %35 = vector.multi_reduction <maximumf>, %34, %cst_17 [1] : vector<8x8xf32> to vector<8xf32>
    %36 = vector.shape_cast %35 : vector<8xf32> to vector<8x1xf32>
    %37 = vector.broadcast %36 : vector<8x1xf32> to vector<8x8xf32>
    %38 = arith.subf %34, %37 : vector<8x8xf32>
    %39 = math.exp %38 : vector<8x8xf32>
    %cst_18 = arith.constant dense<0.000000e+00> : vector<8xf32>
    %40 = vector.multi_reduction <add>, %39, %cst_18 [1] : vector<8x8xf32> to vector<8xf32>
    %41 = vector.shape_cast %40 : vector<8xf32> to vector<8x1xf32>
    %42 = tpu.reciprocal %41 {approx = true} : vector<8x1xf32> -> vector<8x1xf32>
    %43 = vector.broadcast %42 : vector<8x1xf32> to vector<8x8xf32>
    %44 = arith.mulf %39, %43 : vector<8x8xf32>
    %45 = arith.truncf %44 : vector<8x8xf32> to vector<8x8xbf16>
    %46 = vector.extract_strided_slice %11 {offsets = [0, 40], sizes = [8, 8], strides = [1, 1]} : vector<8x64xbf16> to vector<8x8xbf16>
    %cst_19 = arith.constant dense<0.000000e+00> : vector<8x8xf32>
    %47 = tpu.matmul %45, %46, %cst_19 {dimension_numbers = #tpu.dot_dimension_numbers<[1], [0], [0], [1], [0, 0, 1, 1], [], []>} : vector<8x8xbf16>, vector<8x8xbf16>, vector<8x8xf32> -> vector<8x8xf32>
    %48 = arith.truncf %47 : vector<8x8xf32> to vector<8x8xbf16>
    %49 = vector.extract_strided_slice %9 {offsets = [0, 16], sizes = [8, 8], strides = [1, 1]} : vector<8x32xbf16> to vector<8x8xbf16>
    %50 = vector.extract_strided_slice %11 {offsets = [0, 16], sizes = [8, 8], strides = [1, 1]} : vector<8x64xbf16> to vector<8x8xbf16>
    %cst_20 = arith.constant dense<0.000000e+00> : vector<8x8xf32>
    %51 = tpu.matmul %49, %50, %cst_20 {dimension_numbers = #tpu.dot_dimension_numbers<[1], [1], [0], [0], [0, 0, 1, 0], [], []>} : vector<8x8xbf16>, vector<8x8xbf16>, vector<8x8xf32> -> vector<8x8xf32>
    %52 = arith.addf %51, %7 : vector<8x8xf32>
    %cst_21 = arith.constant dense<0xFF800000> : vector<8xf32>
    %53 = vector.multi_reduction <maximumf>, %52, %cst_21 [1] : vector<8x8xf32> to vector<8xf32>
    %54 = vector.shape_cast %53 : vector<8xf32> to vector<8x1xf32>
    %55 = vector.broadcast %54 : vector<8x1xf32> to vector<8x8xf32>
    %56 = arith.subf %52, %55 : vector<8x8xf32>
    %57 = math.exp %56 : vector<8x8xf32>
    %cst_22 = arith.constant dense<0.000000e+00> : vector<8xf32>
    %58 = vector.multi_reduction <add>, %57, %cst_22 [1] : vector<8x8xf32> to vector<8xf32>
    %59 = vector.shape_cast %58 : vector<8xf32> to vector<8x1xf32>
    %60 = tpu.reciprocal %59 {approx = true} : vector<8x1xf32> -> vector<8x1xf32>
    %61 = vector.broadcast %60 : vector<8x1xf32> to vector<8x8xf32>
    %62 = arith.mulf %57, %61 : vector<8x8xf32>
    %63 = arith.truncf %62 : vector<8x8xf32> to vector<8x8xbf16>
    %64 = vector.extract_strided_slice %11 {offsets = [0, 48], sizes = [8, 8], strides = [1, 1]} : vector<8x64xbf16> to vector<8x8xbf16>
    %cst_23 = arith.constant dense<0.000000e+00> : vector<8x8xf32>
    %65 = tpu.matmul %63, %64, %cst_23 {dimension_numbers = #tpu.dot_dimension_numbers<[1], [0], [0], [1], [0, 0, 1, 1], [], []>} : vector<8x8xbf16>, vector<8x8xbf16>, vector<8x8xf32> -> vector<8x8xf32>
    %66 = arith.truncf %65 : vector<8x8xf32> to vector<8x8xbf16>
    %67 = vector.extract_strided_slice %9 {offsets = [0, 24], sizes = [8, 8], strides = [1, 1]} : vector<8x32xbf16> to vector<8x8xbf16>
    %68 = vector.extract_strided_slice %11 {offsets = [0, 24], sizes = [8, 8], strides = [1, 1]} : vector<8x64xbf16> to vector<8x8xbf16>
    %cst_24 = arith.constant dense<0.000000e+00> : vector<8x8xf32>
    %69 = tpu.matmul %67, %68, %cst_24 {dimension_numbers = #tpu.dot_dimension_numbers<[1], [1], [0], [0], [0, 0, 1, 0], [], []>} : vector<8x8xbf16>, vector<8x8xbf16>, vector<8x8xf32> -> vector<8x8xf32>
    %70 = arith.addf %69, %7 : vector<8x8xf32>
    %cst_25 = arith.constant dense<0xFF800000> : vector<8xf32>
    %71 = vector.multi_reduction <maximumf>, %70, %cst_25 [1] : vector<8x8xf32> to vector<8xf32>
    %72 = vector.shape_cast %71 : vector<8xf32> to vector<8x1xf32>
    %73 = vector.broadcast %72 : vector<8x1xf32> to vector<8x8xf32>
    %74 = arith.subf %70, %73 : vector<8x8xf32>
    %75 = math.exp %74 : vector<8x8xf32>
    %cst_26 = arith.constant dense<0.000000e+00> : vector<8xf32>
    %76 = vector.multi_reduction <add>, %75, %cst_26 [1] : vector<8x8xf32> to vector<8xf32>
    %77 = vector.shape_cast %76 : vector<8xf32> to vector<8x1xf32>
    %78 = tpu.reciprocal %77 {approx = true} : vector<8x1xf32> -> vector<8x1xf32>
    %79 = vector.broadcast %78 : vector<8x1xf32> to vector<8x8xf32>
    %80 = arith.mulf %75, %79 : vector<8x8xf32>
    %81 = arith.truncf %80 : vector<8x8xf32> to vector<8x8xbf16>
    %82 = vector.extract_strided_slice %11 {offsets = [0, 56], sizes = [8, 8], strides = [1, 1]} : vector<8x64xbf16> to vector<8x8xbf16>
    %cst_27 = arith.constant dense<0.000000e+00> : vector<8x8xf32>
    %83 = tpu.matmul %81, %82, %cst_27 {dimension_numbers = #tpu.dot_dimension_numbers<[1], [0], [0], [1], [0, 0, 1, 1], [], []>} : vector<8x8xbf16>, vector<8x8xbf16>, vector<8x8xf32> -> vector<8x8xf32>
    %84 = arith.truncf %83 : vector<8x8xf32> to vector<8x8xbf16>
    %85 = tpu.concatenate %30, %48, %66, %84 in 1 : vector<8x8xbf16>, vector<8x8xbf16>, vector<8x8xbf16>, vector<8x8xbf16> -> vector<8x32xbf16>
    %cst_28 = arith.constant dense<0.000000e+00> : vector<8x32xf32>
    %86 = tpu.matmul %85, %12, %cst_28 {dimension_numbers = #tpu.dot_dimension_numbers<[1], [0], [0], [1], [0, 0, 1, 1], [], []>} : vector<8x32xbf16>, vector<32x32xbf16>, vector<8x32xf32> -> vector<8x32xf32>
    %c0_29 = arith.constant 0 : index
    %c0_30 = arith.constant 0 : index
    %c0_31 = arith.constant 0 : index
    %87 = vector.load %arg5[%c0_29, %c0_30, %c0_31] : memref<1x8x32xf32, #tpu.memory_space<vmem>>, vector<1x8x32xf32>
    %88 = vector.shape_cast %87 : vector<1x8x32xf32> to vector<8x32xf32>
    %89 = arith.addf %88, %86 : vector<8x32xf32>
    %c0_32 = arith.constant 0 : index
    %c0_33 = arith.constant 0 : index
    %90 = vector.load %arg7[%c0_32, %c0_33] : memref<1x32xf32, #tpu.memory_space<vmem>>, vector<1x32xf32>
    %91 = vector.broadcast %90 : vector<1x32xf32> to vector<8x32xf32>
    %92 = arith.addf %89, %91 : vector<8x32xf32>
    %c0_34 = arith.constant 0 : index
    %c0_35 = arith.constant 0 : index
    %c0_36 = arith.constant 0 : index
    %93 = vector.load %arg12[%c0_34, %c0_35, %c0_36] : memref<1x8x32xf32, #tpu.memory_space<vmem>>, vector<1x8x32xf32>
    %94 = vector.shape_cast %93 : vector<1x8x32xf32> to vector<8x32xf32>
    %95 = vector.shape_cast %92 : vector<8x32xf32> to vector<1x8x32xf32>
    tpu.vector_store %arg12[%c0_34, %c0_35, %c0_36], %95 {strides = array<i32>} : memref<1x8x32xf32, #tpu.memory_space<vmem>>, vector<1x8x32xf32>,
    %c0_37 = arith.constant 0 : index
    %c0_38 = arith.constant 0 : index
    %96 = vector.load %arg8[%c0_37, %c0_38] : memref<1x32xf32, #tpu.memory_space<vmem>>, vector<1x32xf32>
    %c0_39 = arith.constant 0 : index
    %c0_40 = arith.constant 0 : index
    %97 = vector.load %arg9[%c0_39, %c0_40] : memref<1x32xf32, #tpu.memory_space<vmem>>, vector<1x32xf32>
    %cst_41 = arith.constant dense<0.000000e+00> : vector<8xf32>
    %98 = vector.multi_reduction <add>, %92, %cst_41 [1] : vector<8x32xf32> to vector<8xf32>
    %99 = vector.shape_cast %98 : vector<8xf32> to vector<8x1xf32>
    %cst_42 = arith.constant 3.200000e+01 : f32
    %100 = vector.broadcast %cst_42 : f32 to vector<8x1xf32>
    %101 = arith.divf %99, %100 : vector<8x1xf32>
    %102 = vector.broadcast %101 : vector<8x1xf32> to vector<8x32xf32>
    %103 = arith.subf %92, %102 : vector<8x32xf32>
    %104 = arith.mulf %103, %103 : vector<8x32xf32>
    %cst_43 = arith.constant dense<0.000000e+00> : vector<8xf32>
    %105 = vector.multi_reduction <add>, %104, %cst_43 [1] : vector<8x32xf32> to vector<8xf32>
    %106 = vector.shape_cast %105 : vector<8xf32> to vector<8x1xf32>
    %cst_44 = arith.constant 3.100000e+01 : f32
    %107 = vector.broadcast %cst_44 : f32 to vector<8x1xf32>
    %108 = arith.divf %106, %107 : vector<8x1xf32>
    %109 = vector.broadcast %101 : vector<8x1xf32> to vector<8x32xf32>
    %110 = arith.subf %92, %109 : vector<8x32xf32>
    %111 = vector.broadcast %96 : vector<1x32xf32> to vector<8x32xf32>
    %112 = arith.mulf %111, %110 : vector<8x32xf32>
    %113 = math.sqrt %108 : vector<8x1xf32>
    %cst_45 = arith.constant 9.99999997E-7 : f32
    %114 = vector.broadcast %cst_45 : f32 to vector<8x1xf32>
    %115 = arith.addf %113, %114 : vector<8x1xf32>
    %116 = vector.broadcast %115 : vector<8x1xf32> to vector<8x32xf32>
    %117 = arith.divf %112, %116 : vector<8x32xf32>
    %118 = vector.broadcast %97 : vector<1x32xf32> to vector<8x32xf32>
    %119 = arith.addf %117, %118 : vector<8x32xf32>
    %120 = arith.truncf %119 : vector<8x32xf32> to vector<8x32xbf16>
    %c0_46 = arith.constant 0 : index
    %c0_47 = arith.constant 0 : index
    %121 = vector.load %arg10[%c0_46, %c0_47] : memref<32x32xbf16, #tpu.memory_space<vmem>>, vector<32x32xbf16>
    %cst_48 = arith.constant dense<0.000000e+00> : vector<8x32xf32>
    %122 = tpu.matmul %120, %121, %cst_48 {dimension_numbers = #tpu.dot_dimension_numbers<[1], [0], [0], [1], [0, 0, 1, 1], [], []>} : vector<8x32xbf16>, vector<32x32xbf16>, vector<8x32xf32> -> vector<8x32xf32>
    %c0_49 = arith.constant 0 : index
    %c0_50 = arith.constant 0 : index
    %123 = vector.load %arg11[%c0_49, %c0_50] : memref<1x32xf32, #tpu.memory_space<vmem>>, vector<1x32xf32>
    %124 = vector.broadcast %123 : vector<1x32xf32> to vector<8x32xf32>
    %125 = arith.addf %122, %124 : vector<8x32xf32>
    %cst_51 = arith.constant 0.353553385 : f32
    %126 = vector.broadcast %cst_51 : f32 to vector<8x32xf32>
    %127 = arith.mulf %125, %126 : vector<8x32xf32>
    %128 = arith.truncf %127 : vector<8x32xf32> to vector<8x32xbf16>
    %c0_52 = arith.constant 0 : index
    %c0_53 = arith.constant 0 : index
    %c0_54 = arith.constant 0 : index
    %129 = vector.load %arg13[%c0_52, %c0_53, %c0_54] : memref<1x8x32xbf16, #tpu.memory_space<vmem>>, vector<1x8x32xbf16>
    %130 = vector.shape_cast %129 : vector<1x8x32xbf16> to vector<8x32xbf16>
    %131 = vector.shape_cast %128 : vector<8x32xbf16> to vector<1x8x32xbf16>
    tpu.vector_store %arg13[%c0_52, %c0_53, %c0_54], %131 {strides = array<i32>} : memref<1x8x32xbf16, #tpu.memory_space<vmem>>, vector<1x8x32xbf16>,
    return
  }
  func.func @transform_0(%arg0: i32, %arg1: i32) -> (i32, i32, i32) {
    %c0_i32 = arith.constant 0 : i32
    %c0_i32_0 = arith.constant 0 : i32
    return %arg0, %arg1, %c0_i32 : i32, i32, i32
  }
  func.func @transform_1(%arg0: i32, %arg1: i32) -> (i32, i32, i32) {
    %c0_i32 = arith.constant 0 : i32
    %c0_i32_0 = arith.constant 0 : i32
    %c0_i32_1 = arith.constant 0 : i32
    return %arg0, %c0_i32, %c0_i32_0 : i32, i32, i32
  }
  func.func @transform_2(%arg0: i32, %arg1: i32) -> (i32, i32, i32) {
    %c0_i32 = arith.constant 0 : i32
    %c0_i32_0 = arith.constant 0 : i32
    %c0_i32_1 = arith.constant 0 : i32
    return %arg0, %c0_i32, %c0_i32_0 : i32, i32, i32
  }
  func.func @transform_3(%arg0: i32, %arg1: i32) -> (i32, i32, i32) {
    %c0_i32 = arith.constant 0 : i32
    %c0_i32_0 = arith.constant 0 : i32
    return %arg0, %arg1, %c0_i32 : i32, i32, i32
  }
  func.func @transform_4(%arg0: i32, %arg1: i32) -> (i32, i32) {
    %c0_i32 = arith.constant 0 : i32
    %c0_i32_0 = arith.constant 0 : i32
    %c0_i32_1 = arith.constant 0 : i32
    return %c0_i32, %c0_i32_0 : i32, i32
  }
  func.func @transform_5(%arg0: i32, %arg1: i32) -> (i32, i32) {
    %c0_i32 = arith.constant 0 : i32
    %c0_i32_0 = arith.constant 0 : i32
    %c0_i32_1 = arith.constant 0 : i32
    return %c0_i32, %c0_i32_0 : i32, i32
  }
  func.func @transform_6(%arg0: i32, %arg1: i32) -> (i32, i32) {
    %c0_i32 = arith.constant 0 : i32
    %c0_i32_0 = arith.constant 0 : i32
    %c0_i32_1 = arith.constant 0 : i32
    return %c0_i32, %c0_i32_0 : i32, i32
  }
  func.func @transform_7(%arg0: i32, %arg1: i32) -> (i32, i32) {
    %c0_i32 = arith.constant 0 : i32
    %c0_i32_0 = arith.constant 0 : i32
    %c0_i32_1 = arith.constant 0 : i32
    return %c0_i32, %c0_i32_0 : i32, i32
  }
  func.func @transform_8(%arg0: i32, %arg1: i32) -> (i32, i32) {
    %c0_i32 = arith.constant 0 : i32
    %c0_i32_0 = arith.constant 0 : i32
    %c0_i32_1 = arith.constant 0 : i32
    return %c0_i32, %c0_i32_0 : i32, i32
  }
  func.func @transform_9(%arg0: i32, %arg1: i32) -> (i32, i32) {
    %c0_i32 = arith.constant 0 : i32
    %c0_i32_0 = arith.constant 0 : i32
    %c0_i32_1 = arith.constant 0 : i32
    return %c0_i32, %c0_i32_0 : i32, i32
  }
  func.func @transform_10(%arg0: i32, %arg1: i32) -> (i32, i32, i32) {
    %c0_i32 = arith.constant 0 : i32
    %c0_i32_0 = arith.constant 0 : i32
    return %arg0, %arg1, %c0_i32 : i32, i32, i32
  }
  func.func @transform_11(%arg0: i32, %arg1: i32) -> (i32, i32, i32) {
    %c0_i32 = arith.constant 0 : i32
    %c0_i32_0 = arith.constant 0 : i32
    return %arg0, %arg1, %c0_i32 : i32, i32, i32
  }
}

module attributes {stable_mosaic.version = 11 : i64} {
  func.func @_norm_ffn_final_kernel(%arg0: i32, %arg1: memref<16x32xf32, #tpu.memory_space<vmem>>, %arg2: memref<1x32xf32, #tpu.memory_space<vmem>>, %arg3: memref<1x32xf32, #tpu.memory_space<vmem>>, %arg4: memref<32x64xbf16, #tpu.memory_space<vmem>>, %arg5: memref<1x64xf32, #tpu.memory_space<vmem>>, %arg6: memref<64x32xbf16, #tpu.memory_space<vmem>>, %arg7: memref<1x32xf32, #tpu.memory_space<vmem>>, %arg8: memref<1x32xf32, #tpu.memory_space<vmem>>, %arg9: memref<1x32xf32, #tpu.memory_space<vmem>>, %arg10: memref<16x32xf32, #tpu.memory_space<vmem>>) attributes {dimension_semantics = [#tpu.dimension_semantics<parallel>], iteration_bounds = array<i64: 1>, scalar_prefetch = 0 : i64, scratch_operands = 0 : i64, tpu.core_type = #tpu.core_type<tc>, window_params = [{transform_indices = @transform_0, window_bounds = array<i64: 16, 32>}, {pipeline_mode = #tpu.pipeline_mode<synchronous>, transform_indices = @transform_1, window_bounds = array<i64: 1, 32>}, {pipeline_mode = #tpu.pipeline_mode<synchronous>, transform_indices = @transform_2, window_bounds = array<i64: 1, 32>}, {pipeline_mode = #tpu.pipeline_mode<synchronous>, transform_indices = @transform_3, window_bounds = array<i64: 32, 64>}, {pipeline_mode = #tpu.pipeline_mode<synchronous>, transform_indices = @transform_4, window_bounds = array<i64: 1, 64>}, {pipeline_mode = #tpu.pipeline_mode<synchronous>, transform_indices = @transform_5, window_bounds = array<i64: 64, 32>}, {pipeline_mode = #tpu.pipeline_mode<synchronous>, transform_indices = @transform_6, window_bounds = array<i64: 1, 32>}, {pipeline_mode = #tpu.pipeline_mode<synchronous>, transform_indices = @transform_7, window_bounds = array<i64: 1, 32>}, {pipeline_mode = #tpu.pipeline_mode<synchronous>, transform_indices = @transform_8, window_bounds = array<i64: 1, 32>}, {transform_indices = @transform_9, window_bounds = array<i64: 16, 32>}]} {
    %c0 = arith.constant 0 : index
    %c0_0 = arith.constant 0 : index
    %0 = vector.load %arg1[%c0, %c0_0] : memref<16x32xf32, #tpu.memory_space<vmem>>, vector<16x32xf32>
    %c0_1 = arith.constant 0 : index
    %c0_2 = arith.constant 0 : index
    %1 = vector.load %arg2[%c0_1, %c0_2] : memref<1x32xf32, #tpu.memory_space<vmem>>, vector<1x32xf32>
    %c0_3 = arith.constant 0 : index
    %c0_4 = arith.constant 0 : index
    %2 = vector.load %arg3[%c0_3, %c0_4] : memref<1x32xf32, #tpu.memory_space<vmem>>, vector<1x32xf32>
    %cst = arith.constant dense<0.000000e+00> : vector<16xf32>
    %3 = vector.multi_reduction <add>, %0, %cst [1] : vector<16x32xf32> to vector<16xf32>
    %4 = vector.shape_cast %3 : vector<16xf32> to vector<16x1xf32>
    %cst_5 = arith.constant 3.200000e+01 : f32
    %5 = vector.broadcast %cst_5 : f32 to vector<16x1xf32>
    %6 = arith.divf %4, %5 : vector<16x1xf32>
    %7 = vector.broadcast %6 : vector<16x1xf32> to vector<16x32xf32>
    %8 = arith.subf %0, %7 : vector<16x32xf32>
    %9 = arith.mulf %8, %8 : vector<16x32xf32>
    %cst_6 = arith.constant dense<0.000000e+00> : vector<16xf32>
    %10 = vector.multi_reduction <add>, %9, %cst_6 [1] : vector<16x32xf32> to vector<16xf32>
    %11 = vector.shape_cast %10 : vector<16xf32> to vector<16x1xf32>
    %cst_7 = arith.constant 3.100000e+01 : f32
    %12 = vector.broadcast %cst_7 : f32 to vector<16x1xf32>
    %13 = arith.divf %11, %12 : vector<16x1xf32>
    %14 = vector.broadcast %6 : vector<16x1xf32> to vector<16x32xf32>
    %15 = arith.subf %0, %14 : vector<16x32xf32>
    %16 = vector.broadcast %1 : vector<1x32xf32> to vector<16x32xf32>
    %17 = arith.mulf %16, %15 : vector<16x32xf32>
    %18 = math.sqrt %13 : vector<16x1xf32>
    %cst_8 = arith.constant 9.99999997E-7 : f32
    %19 = vector.broadcast %cst_8 : f32 to vector<16x1xf32>
    %20 = arith.addf %18, %19 : vector<16x1xf32>
    %21 = vector.broadcast %20 : vector<16x1xf32> to vector<16x32xf32>
    %22 = arith.divf %17, %21 : vector<16x32xf32>
    %23 = vector.broadcast %2 : vector<1x32xf32> to vector<16x32xf32>
    %24 = arith.addf %22, %23 : vector<16x32xf32>
    %25 = arith.truncf %24 : vector<16x32xf32> to vector<16x32xbf16>
    %c0_9 = arith.constant 0 : index
    %c0_10 = arith.constant 0 : index
    %26 = vector.load %arg4[%c0_9, %c0_10] : memref<32x64xbf16, #tpu.memory_space<vmem>>, vector<32x64xbf16>
    %cst_11 = arith.constant dense<0.000000e+00> : vector<16x64xf32>
    %27 = tpu.matmul %25, %26, %cst_11 {dimension_numbers = #tpu.dot_dimension_numbers<[1], [0], [0], [1], [0, 0, 1, 1], [], []>} : vector<16x32xbf16>, vector<32x64xbf16>, vector<16x64xf32> -> vector<16x64xf32>
    %c0_12 = arith.constant 0 : index
    %c0_13 = arith.constant 0 : index
    %28 = vector.load %arg5[%c0_12, %c0_13] : memref<1x64xf32, #tpu.memory_space<vmem>>, vector<1x64xf32>
    %29 = vector.broadcast %28 : vector<1x64xf32> to vector<16x64xf32>
    %30 = arith.addf %27, %29 : vector<16x64xf32>
    %cst_14 = arith.constant 0.000000e+00 : f32
    %31 = vector.broadcast %cst_14 : f32 to vector<16x64xf32>
    %32 = arith.maximumf %30, %31 : vector<16x64xf32>
    %33 = arith.truncf %32 : vector<16x64xf32> to vector<16x64xbf16>
    %c0_15 = arith.constant 0 : index
    %c0_16 = arith.constant 0 : index
    %34 = vector.load %arg6[%c0_15, %c0_16] : memref<64x32xbf16, #tpu.memory_space<vmem>>, vector<64x32xbf16>
    %cst_17 = arith.constant dense<0.000000e+00> : vector<16x32xf32>
    %35 = tpu.matmul %33, %34, %cst_17 {dimension_numbers = #tpu.dot_dimension_numbers<[1], [0], [0], [1], [0, 0, 1, 1], [], []>} : vector<16x64xbf16>, vector<64x32xbf16>, vector<16x32xf32> -> vector<16x32xf32>
    %c0_18 = arith.constant 0 : index
    %c0_19 = arith.constant 0 : index
    %36 = vector.load %arg7[%c0_18, %c0_19] : memref<1x32xf32, #tpu.memory_space<vmem>>, vector<1x32xf32>
    %37 = vector.broadcast %36 : vector<1x32xf32> to vector<16x32xf32>
    %38 = arith.addf %35, %37 : vector<16x32xf32>
    %39 = arith.addf %0, %38 : vector<16x32xf32>
    %c0_20 = arith.constant 0 : index
    %c0_21 = arith.constant 0 : index
    %40 = vector.load %arg8[%c0_20, %c0_21] : memref<1x32xf32, #tpu.memory_space<vmem>>, vector<1x32xf32>
    %c0_22 = arith.constant 0 : index
    %c0_23 = arith.constant 0 : index
    %41 = vector.load %arg9[%c0_22, %c0_23] : memref<1x32xf32, #tpu.memory_space<vmem>>, vector<1x32xf32>
    %cst_24 = arith.constant dense<0.000000e+00> : vector<16xf32>
    %42 = vector.multi_reduction <add>, %39, %cst_24 [1] : vector<16x32xf32> to vector<16xf32>
    %43 = vector.shape_cast %42 : vector<16xf32> to vector<16x1xf32>
    %cst_25 = arith.constant 3.200000e+01 : f32
    %44 = vector.broadcast %cst_25 : f32 to vector<16x1xf32>
    %45 = arith.divf %43, %44 : vector<16x1xf32>
    %46 = vector.broadcast %45 : vector<16x1xf32> to vector<16x32xf32>
    %47 = arith.subf %39, %46 : vector<16x32xf32>
    %48 = arith.mulf %47, %47 : vector<16x32xf32>
    %cst_26 = arith.constant dense<0.000000e+00> : vector<16xf32>
    %49 = vector.multi_reduction <add>, %48, %cst_26 [1] : vector<16x32xf32> to vector<16xf32>
    %50 = vector.shape_cast %49 : vector<16xf32> to vector<16x1xf32>
    %cst_27 = arith.constant 3.100000e+01 : f32
    %51 = vector.broadcast %cst_27 : f32 to vector<16x1xf32>
    %52 = arith.divf %50, %51 : vector<16x1xf32>
    %53 = vector.broadcast %45 : vector<16x1xf32> to vector<16x32xf32>
    %54 = arith.subf %39, %53 : vector<16x32xf32>
    %55 = vector.broadcast %40 : vector<1x32xf32> to vector<16x32xf32>
    %56 = arith.mulf %55, %54 : vector<16x32xf32>
    %57 = math.sqrt %52 : vector<16x1xf32>
    %cst_28 = arith.constant 9.99999997E-7 : f32
    %58 = vector.broadcast %cst_28 : f32 to vector<16x1xf32>
    %59 = arith.addf %57, %58 : vector<16x1xf32>
    %60 = vector.broadcast %59 : vector<16x1xf32> to vector<16x32xf32>
    %61 = arith.divf %56, %60 : vector<16x32xf32>
    %62 = vector.broadcast %41 : vector<1x32xf32> to vector<16x32xf32>
    %63 = arith.addf %61, %62 : vector<16x32xf32>
    %c0_29 = arith.constant 0 : index
    %c0_30 = arith.constant 0 : index
    %64 = vector.load %arg10[%c0_29, %c0_30] : memref<16x32xf32, #tpu.memory_space<vmem>>, vector<16x32xf32>
    tpu.vector_store %arg10[%c0_29, %c0_30], %63 {strides = array<i32>} : memref<16x32xf32, #tpu.memory_space<vmem>>, vector<16x32xf32>,
    return
  }
  func.func @transform_0(%arg0: i32) -> (i32, i32) {
    %c0_i32 = arith.constant 0 : i32
    %c0_i32_0 = arith.constant 0 : i32
    return %arg0, %c0_i32 : i32, i32
  }
  func.func @transform_1(%arg0: i32) -> (i32, i32) {
    %c0_i32 = arith.constant 0 : i32
    %c0_i32_0 = arith.constant 0 : i32
    %c0_i32_1 = arith.constant 0 : i32
    return %c0_i32, %c0_i32_0 : i32, i32
  }
  func.func @transform_2(%arg0: i32) -> (i32, i32) {
    %c0_i32 = arith.constant 0 : i32
    %c0_i32_0 = arith.constant 0 : i32
    %c0_i32_1 = arith.constant 0 : i32
    return %c0_i32, %c0_i32_0 : i32, i32
  }
  func.func @transform_3(%arg0: i32) -> (i32, i32) {
    %c0_i32 = arith.constant 0 : i32
    %c0_i32_0 = arith.constant 0 : i32
    %c0_i32_1 = arith.constant 0 : i32
    return %c0_i32, %c0_i32_0 : i32, i32
  }
  func.func @transform_4(%arg0: i32) -> (i32, i32) {
    %c0_i32 = arith.constant 0 : i32
    %c0_i32_0 = arith.constant 0 : i32
    %c0_i32_1 = arith.constant 0 : i32
    return %c0_i32, %c0_i32_0 : i32, i32
  }
  func.func @transform_5(%arg0: i32) -> (i32, i32) {
    %c0_i32 = arith.constant 0 : i32
    %c0_i32_0 = arith.constant 0 : i32
    %c0_i32_1 = arith.constant 0 : i32
    return %c0_i32, %c0_i32_0 : i32, i32
  }
  func.func @transform_6(%arg0: i32) -> (i32, i32) {
    %c0_i32 = arith.constant 0 : i32
    %c0_i32_0 = arith.constant 0 : i32
    %c0_i32_1 = arith.constant 0 : i32
    return %c0_i32, %c0_i32_0 : i32, i32
  }
  func.func @transform_7(%arg0: i32) -> (i32, i32) {
    %c0_i32 = arith.constant 0 : i32
    %c0_i32_0 = arith.constant 0 : i32
    %c0_i32_1 = arith.constant 0 : i32
    return %c0_i32, %c0_i32_0 : i32, i32
  }
  func.func @transform_8(%arg0: i32) -> (i32, i32) {
    %c0_i32 = arith.constant 0 : i32
    %c0_i32_0 = arith.constant 0 : i32
    %c0_i32_1 = arith.constant 0 : i32
    return %c0_i32, %c0_i32_0 : i32, i32
  }
  func.func @transform_9(%arg0: i32) -> (i32, i32) {
    %c0_i32 = arith.constant 0 : i32
    %c0_i32_0 = arith.constant 0 : i32
    return %arg0, %c0_i32 : i32, i32
  }
}

</mosaic_0001>

<bundles_post_ra>
// kernel: tpu_custom_call.1
= control target key start
LH: loop header
LB: loop body
LE: loop exit
PB: predicated region body
PF: predicated region fallthrough
CT: control target
= control target key end

     0   :  { %6 = vsyncpa [#allocation3], 0  ;;  %s115_s0 = inlined_call_operand.hbm [shape: f32[8,128], index: 0, kind: input, shape index: {}]   ;;  %s116_s1 = inlined_call_operand.hbm [shape: f32[8,128], index: 1, kind: output, shape index: {}]  }
   0x1   :  { %7 = vsyncpa [#allocation4], 0  ;;  %s13_s8 = sshll.u32 %s115_s0, 4  ;;  %s97_s9 = smov [#allocation2]   ;;  %s14_s8 = int_to_ptr.hbm [resolvable:$true] %s13_s8 }
   0x2   :  { %s15_s10 = sshll.u32 %s97_s9, 4  ;;  %s16_s10 = int_to_ptr.vmem [resolvable:$true] %s15_s10 }
   0x3   :  { %18 = dma.hbm_to_vmem [thread:$0]  %s14_s8, 128, %s16_s10, [#allocation3]  }
   0x4   :  { %93 = dma.done.wait [#allocation3], 128  }
   0x5   :  { %94 = vsyncadd [#allocation3], 4294967168  ;;  %s98_s11 = smov [#allocation5]   ;;  %s33_s15 = sshll.u32 %s116_s1, 4  ;;  %v23_v0 = vld [vmem:[#allocation2] sm:$0xff]  ;;  %s34_s15 = int_to_ptr.hbm [resolvable:$true] %s33_s15 }
   0x6   :  { %s31_s12 = sshll.u32 %s98_s11, 4  ;;  %v24_v1 = vadd.f32 1.0, %v23_v0  ;;  %s32_s12 = int_to_ptr.vmem [resolvable:$true] %s31_s12 }
   0x8   :  { %25 = vst [vmem:[#allocation5] sm:$0xff] %v24_v1 }
   0x9   :  { %36 = dma.vmem_to_hbm [thread:$0]  %s32_s12, 128, %s34_s15, [#allocation4]  }
   0xa   :  { %95 = dma.done.wait [#allocation4], 128  }
   0xb   :  { %96 = vsyncadd [#allocation4], 4294967168 }
   0xc   :  { %41 = vsyncpa [#allocation3], 1 }
   0xd   :  { %42 = vsyncpa [#allocation4], 1 }

// kernel: mix_att_decoder.12
= control target key start
LH: loop header
LB: loop body
LE: loop exit
PB: predicated region body
PF: predicated region fallthrough
CT: control target
= control target key end

     0   :  { %vm40_vm0 = vcmask 261120   ;;  %vm68_vm1 = vcmask 519168   ;;  %vm71_vm2 = vcmask 517120   ;;  %s139_s1 = inlined_call_operand.vmem [shape: bf16[32,64], index: 1, kind: input, shape index: {}]   ;;  %s140_s0 = inlined_call_operand.vmem [shape: f32[20,32], index: 0, kind: input, shape index: {}]   ;;  %s141_s2 = inlined_call_operand.vmem [shape: f32[1,64], index: 2, kind: input, shape index: {}]   ;;  %s142_s3 = inlined_call_operand.vmem [shape: bf16[20,64], index: 3, kind: output, shape index: {}]  }
   0x1   :  { %v88_v0 = vld [vmem:[%s139_s1 + $0x8] sm:$0xff]  ;;  %v87_v1 = vld [vmem:[%s139_s1] sm:$0xff]  ;;  %v17_v4 = vld [vmem:[%s140_s0 + $0x10] sm:$0xf] }
   0x2   :  { %53 = vmatpush.bf16.msra.mxu0 %v88_v0  ;;  %89 = vmatpush.bf16.msra.mxu1 %v88_v0  ;;  %v15_v2 = vld [vmem:[%s140_s0] sm:$0xff]  ;;  %v16_v3 = vld [vmem:[%s140_s0 + $0x8] sm:$0xff]  ;;  %v19_v6 = vpack.c.bf16 %v17_v4, %v17_v4 }
   0x3   :  { %v18_v5 = vpack.c.bf16 %v16_v3, %v15_v2  ;;  %v91_v7 = vld [vmem:[%s141_s2] ss:$0 sm:$0xff] }
   0x6   :  { %54 = vmatpush.bf16.msra.mxu0 %v87_v1  ;;  %90 = vmatpush.bf16.msra.mxu1 %v87_v1 }
   0x9   :  { %85 = vmatmul.msk.bf16.vlgmr.msra.gmra.mxu0 %vm40_vm0, %v18_v5  ;;  %86 = vmatmul.msk.bf16.vlgmr.msra.gmra.mxu1 %vm40_vm0, %v19_v6 }
  0x86   :  { %v56_v8 = vpop.f32.mrf.mxu0  ;;  %v61_v9 = vpop.f32.mrf.mxu1 }
  0x87   :  { %v57_v10 = vadd.f32 %v91_v7, %v56_v8  ;;  %v62_v11 = vadd.f32 %v91_v7, %v61_v9 }
  0x89   :  { %v65_v12 = vpack.c.bf16 %v57_v10, %v57_v10  ;;  %v67_v13 = vpack.c.bf16 %v62_v11, %v62_v11 }
  0x8b   :  { %69 = vst.msk [vmem:[%s142_s3] sm:$0xf] %vm68_vm1, %v65_v12 }
  0x8c   :  { %72 = vst.msk [vmem:[%s142_s3 + $0x8] sm:$0x3] %vm71_vm2, %v67_v13 }
  0x8e   :  { %v58_v14 = vpop.f32.mrf.mxu0  ;;  %v63_v15 = vpop.f32.mrf.mxu1 }
  0x8f   :  { %v59_v16 = vadd.f32 %v91_v7, %v58_v14 }
  0x91   :  { %v66_v17 = vpack.c.bf16 %v59_v16, %v59_v16 }
  0x93   :  { %70 = vst.msk [vmem:[%s142_s3 + $0x4] sm:$0xf] %vm68_vm1, %v66_v17 }

// kernel: mix_att_decoder.10
= control target key start
LH: loop header
LB: loop body
LE: loop exit
PB: predicated region body
PF: predicated region fallthrough
CT: control target
= control target key end

     0   :  { %12 = vsyncpa [#allocation3], 0  ;;  %s434_s0 = inlined_call_operand.vmem [shape: f32[16,32], index: 0, kind: input, shape index: {}]   ;;  %s435_s1 = inlined_call_operand.hbm [shape: f32[1,32], index: 1, kind: input, shape index: {}]   ;;  %s436_s2 = inlined_call_operand.hbm [shape: f32[1,32], index: 2, kind: input, shape index: {}]   ;;  %s437_s3 = inlined_call_operand.vmem [shape: bf16[32,96], index: 3, kind: input, shape index: {}]   ;;  %s438_s4 = inlined_call_operand.hbm [shape: f32[1,96], index: 4, kind: input, shape index: {}]   ;;  %s439_s5 = inlined_call_operand.vmem [shape: bf16[16,32], index: 5, kind: output, shape index: {0}]   ;;  %s440_s6 = inlined_call_operand.vmem [shape: bf16[16,64], index: 6, kind: output, shape index: {1}]  }
   0x1   :  { %13 = vsyncpa [#allocation5], 0  ;;  %s32_s23 = sshll.u32 %s436_s2, 4  ;;  %s345_s24 = smov [#allocation4]   ;;  %s33_s23 = int_to_ptr.hbm [resolvable:$true] %s32_s23 }
   0x2   :  { %s34_s25 = sshll.u32 %s345_s24, 4  ;;  %s21_s28 = sshll.u32 %s435_s1, 4  ;;  %s35_s25 = int_to_ptr.vmem [resolvable:$true] %s34_s25  ;;  %s22_s28 = int_to_ptr.hbm [resolvable:$true] %s21_s28 }
   0x3   :  { %37 = dma.hbm_to_vmem [thread:$0]  %s33_s23, 16, %s35_s25, [#allocation5]  }
   0x4   :  { %s346_s29 = smov [#allocation2]   ;;  %s45_s9 = sshll.u32 %s438_s4, 4  ;;  %s46_s9 = int_to_ptr.hbm [resolvable:$true] %s45_s9 }
   0x5   :  { %s23_s30 = sshll.u32 %s346_s29, 4  ;;  %s347_s2 = smov [#allocation6]   ;;  %s24_s30 = int_to_ptr.vmem [resolvable:$true] %s23_s30 }
   0x6   :  { %26 = dma.hbm_to_vmem [thread:$0]  %s22_s28, 16, %s24_s30, [#allocation3]  }
   0x7   :  { %s47_s10 = sshll.u32 %s347_s2, 4  ;;  %s48_s10 = int_to_ptr.vmem [resolvable:$true] %s47_s10 }
   0x8   :  { %50 = dma.hbm_to_vmem [thread:$0]  %s46_s9, 16, %s48_s10, [#allocation5]  }
   0x9   :  { %341 = dma.done.wait [#allocation3], 16  }
   0xa   :  { %342 = vsyncadd [#allocation3], 4294967280 }
   0xb   :  { %343 = dma.done.wait [#allocation5], 32  }
   0xc   :  { %344 = vsyncadd [#allocation5], 4294967264  ;;  %vm68_vm0 = vcmask 261120   ;;  %v64_v0 = vld [vmem:[%s434_s0] sm:$0xff]  ;;  %v65_v2 = vld [vmem:[%s434_s0 + $0x8] sm:$0xff]  ;;  %v348_v4 = vmov 32.0  }
   0xd   :  { %v69_v1 = vsel %vm68_vm0, %v64_v0, 0.0  ;;  %v72_v3 = vsel %vm68_vm0, %v65_v2, 0.0  ;;  %257 = vrcp.f32 %v348_v4  ;;  %v349_v21 = vmov 31.0   ;;  %v247_v28 = vld [vmem:[%s437_s3 + $0x8] sm:$0xff]  ;;  %v246_v30 = vld [vmem:[%s437_s3] sm:$0xff]  ;;  %s350_s3 = smov 96  }
   0xe   :  { %70 = vadd.xlane.f32.xlu0 %v69_v1  ;;  %259 = vrcp.f32 %v349_v21  ;;  %199 = vmatpush.bf16.msra.mxu0 %v247_v28  ;;  %v254_v1 = vld [vmem:[#allocation2] ss:$0 sm:$0xff]  ;;  %vm211_vm15 = vcmask 257024  }
  0x12   :  { %200 = vmatpush.bf16.msra.mxu0 %v246_v30 }
  0x13   :  { %v258_v5 = vpop.eup %257 }
  0x14   :  { %v76_v6 = vmul.f32 32.0, %v258_v5  ;;  %vm80_vm1 = vweird.f32 %v258_v5  ;;  %v260_v22 = vpop.eup %259 }
  0x15   :  { %v95_v23 = vmul.f32 31.0, %v260_v22  ;;  %vm99_vm2 = vweird.f32 %v260_v22 }
  0x16   :  { %73 = vadd.xlane.f32.xlu0 %v72_v3  ;;  %v77_v7 = vsub.f32 1.0, %v76_v6 }
  0x17   :  { %v96_v24 = vsub.f32 1.0, %v95_v23  ;;  %v256_v23 = vld [vmem:[#allocation6] ss:$0 sm:$0xff] }
  0x18   :  { %v78_v8 = vmul.f32 %v258_v5, %v77_v7 }
  0x19   :  { %v97_v25 = vmul.f32 %v260_v22, %v96_v24 }
  0x1a   :  { %v79_v9 = vadd.f32 %v258_v5, %v78_v8 }
  0x1b   :  { %v98_v26 = vadd.f32 %v260_v22, %v97_v25 }
  0x1c   :  { %v81_v10 = vsel %vm80_vm1, %v258_v5, %v79_v9 }
  0x1d   :  { %v100_v27 = vsel %vm99_vm2, %v260_v22, %v98_v26 }
  0x81   :  { %v71_v11 = vpop.xlane.xlu0 %70 }
  0x82   :  { %v82_v12 = vmul.f32 %v81_v10, %v71_v11 }
  0x84   :  { %v403_v13 = vsub.f32 %v64_v0, %v82_v12 }
  0x86   :  { %v86_v14 = vmul.f32 %v403_v13, %v403_v13  ;;  %v106_v9 = vmul.f32 %v254_v1, %v403_v13 }
  0x88   :  { %v88_v15 = vsel %vm68_vm0, %v86_v14, 0.0 }
  0x89   :  { %89 = vadd.xlane.f32.xlu1 %v88_v15  ;;  %v74_v16 = vpop.xlane.xlu0 %73 }
  0x8a   :  { %v83_v17 = vmul.f32 %v81_v10, %v74_v16  ;;  %v255_v16 = vld [vmem:[#allocation4] ss:$0 sm:$0xff] }
  0x8c   :  { %v408_v18 = vsub.f32 %v65_v2, %v83_v17 }
  0x8e   :  { %v87_v19 = vmul.f32 %v408_v18, %v408_v18  ;;  %v107_v12 = vmul.f32 %v254_v1, %v408_v18 }
  0x90   :  { %v91_v20 = vsel %vm68_vm0, %v87_v19, 0.0 }
  0x91   :  { %92 = vadd.xlane.f32.xlu1 %v91_v20 }
  0xfc   :  { %v90_v29 = vpop.xlane.xlu1 %89 }
  0xfd   :  { %v101_v31 = vmul.f32 %v100_v27, %v90_v29 }
  0xff   :  { %261 = vrsqrt.f32 %v101_v31  ;;  %vm115_vm3 = vcmp.eq.f32.partialorder %v101_v31, inf  ;;  %v118_v44 = vand.u32 2147483648, %v101_v31  ;;  %vm117_vm4 = vcmp.eq.f32.partialorder %v101_v31, 0.0 }
 0x104   :  { %v93_v32 = vpop.xlane.xlu1 %92 }
 0x105   :  { %v262_v33 = vpop.eup %261  ;;  %v102_v34 = vmul.f32 %v100_v27, %v93_v32 }
 0x106   :  { %v109_v35 = vmul.f32 %v262_v33, %v101_v31 }
 0x107   :  { %263 = vrsqrt.f32 %v102_v34  ;;  %vm127_vm5 = vcmp.eq.f32.partialorder %v102_v34, inf  ;;  %v130_v52 = vand.u32 2147483648, %v102_v34  ;;  %vm129_vm6 = vcmp.eq.f32.partialorder %v102_v34, 0.0 }
 0x108   :  { %v110_v36 = vmul.f32 %v262_v33, %v109_v35 }
 0x10a   :  { %v111_v37 = vmul.f32 0.5, %v110_v36 }
 0x10c   :  { %v112_v38 = vsub.f32 1.5, %v111_v37 }
 0x10d   :  { %v264_v39 = vpop.eup %263 }
 0x10e   :  { %v113_v40 = vmul.f32 %v262_v33, %v112_v38  ;;  %v121_v41 = vmul.f32 %v264_v39, %v102_v34 }
 0x110   :  { %v114_v42 = vmul.f32 %v113_v40, %v101_v31  ;;  %v122_v43 = vmul.f32 %v264_v39, %v121_v41 }
 0x112   :  { %v116_v45 = vsel %vm115_vm3, %v101_v31, %v114_v42  ;;  %v123_v46 = vmul.f32 0.5, %v122_v43 }
 0x113   :  { %v119_v47 = vsel %vm117_vm4, %v118_v44, %v116_v45 }
 0x114   :  { %v124_v48 = vsub.f32 1.5, %v123_v46  ;;  %v132_v49 = vadd.f32 1e-06, %v119_v47 }
 0x116   :  { %v125_v50 = vmul.f32 %v264_v39, %v124_v48  ;;  %265 = vrcp.f32 %v132_v49  ;;  %v145_v62 = vand.u32 2147483648, %v132_v49  ;;  %vm139_vm8 = vweird.f32 %v132_v49 }
 0x117   :  { %v143_v63 = vand.u32 2147483647, %v132_v49 }
 0x118   :  { %v126_v51 = vmul.f32 %v125_v50, %v102_v34  ;;  %v146_v4 = vor.u32 1.1754944e-38, %v145_v62 }
 0x119   :  { %vm144_vm10 = vcmp.eq.f32.partialorder %v143_v63, 8.507059e+37 }
 0x11a   :  { %v128_v53 = vsel %vm127_vm5, %v102_v34, %v126_v51 }
 0x11b   :  { %v131_v54 = vsel %vm129_vm6, %v130_v52, %v128_v53 }
 0x11c   :  { %v266_v55 = vpop.eup %265  ;;  %v133_v56 = vadd.f32 1e-06, %v131_v54 }
 0x11d   :  { %v135_v57 = vmul.f32 %v266_v55, %v132_v49  ;;  %vm140_vm7 = vweird.f32 %v266_v55 }
 0x11e   :  { %267 = vrcp.f32 %v133_v56  ;;  %vm141_vm9 = vmor %vm139_vm8, %vm140_vm7  ;;  %v160_v5 = vand.u32 2147483648, %v133_v56  ;;  %v158_v7 = vand.u32 2147483647, %v133_v56  ;;  %vm154_vm12 = vweird.f32 %v133_v56 }
 0x11f   :  { %v136_v58 = vsub.f32 1.0, %v135_v57 }
 0x120   :  { %v161_v11 = vor.u32 1.1754944e-38, %v160_v5  ;;  %vm159_vm14 = vcmp.eq.f32.partialorder %v158_v7, 8.507059e+37 }
 0x121   :  { %v137_v59 = vmul.f32 %v266_v55, %v136_v58 }
 0x123   :  { %v138_v60 = vadd.f32 %v266_v55, %v137_v59 }
 0x124   :  { %v268_v61 = vpop.eup %267 }
 0x125   :  { %v150_v0 = vmul.f32 %v268_v61, %v133_v56  ;;  %v142_v2 = vsel %vm141_vm9, %v266_v55, %v138_v60  ;;  %vm155_vm11 = vweird.f32 %v268_v61 }
 0x126   :  { %v147_v8 = vsel %vm144_vm10, %v146_v4, %v142_v2  ;;  %vm156_vm13 = vmor %vm154_vm12, %vm155_vm11 }
 0x127   :  { %v151_v3 = vsub.f32 1.0, %v150_v0  ;;  %v148_v14 = vmul.f32 %v147_v8, %v106_v9 }
 0x129   :  { %v152_v6 = vmul.f32 %v268_v61, %v151_v3  ;;  %v167_v20 = vadd.f32 %v255_v16, %v148_v14 }
 0x12b   :  { %v153_v10 = vadd.f32 %v268_v61, %v152_v6 }
 0x12d   :  { %v157_v15 = vsel %vm156_vm13, %v268_v61, %v153_v10 }
 0x12e   :  { %v162_v17 = vsel %vm159_vm14, %v161_v11, %v157_v15 }
 0x12f   :  { %v163_v19 = vmul.f32 %v162_v17, %v107_v12 }
 0x131   :  { %v168_v21 = vadd.f32 %v255_v16, %v163_v19 }
 0x133   :  { %v169_v22 = vpack.c.bf16 %v168_v21, %v167_v20 }
 0x135   :  { %245 = vmatmul.msk.bf16.vlgmr.msra.gmra.mxu0 %vm68_vm0, %v169_v22  ;;  %vm224_vm0 = vcmask 519168  }
 0x1b2   :  { %v202_v24 = vpop.f32.mrf.mxu0 }
 0x1b3   :  { %v203_v13 = vadd.f32 %v256_v23, %v202_v24 }
 0x1b5   :  { %v207_v25 = vmul.f32 0.35355338, %v203_v13  ;;  %v214_v26 = vpack.c.bf16 %v203_v13, %v203_v13 }
 0x1b7   :  { %v209_v27 = vpack.c.bf16 %v207_v25, %v207_v25  ;;  %218 = vrot.lane.b32.xlu2 %v214_v26, %s350_s3 }
 0x1b9   :  { %212 = vst.msk [vmem:[%s439_s5] sm:$0xf] %vm211_vm15, %v209_v27 }
 0x1ba   :  { %v204_v18 = vpop.f32.mrf.mxu0 }
 0x1bb   :  { %v205_v28 = vadd.f32 %v256_v23, %v204_v18 }
 0x1bd   :  { %v208_v29 = vmul.f32 0.35355338, %v205_v28  ;;  %v215_v30 = vpack.c.bf16 %v205_v28, %v205_v28 }
 0x1bf   :  { %v210_v31 = vpack.c.bf16 %v208_v29, %v208_v29  ;;  %220 = vrot.lane.b32.xlu2 %v215_v30, %s350_s3 }
 0x1c1   :  { %213 = vst.msk [vmem:[%s439_s5 + $0x4] sm:$0xf] %vm211_vm15, %v210_v31 }
 0x211   :  { %v219_v32 = vpop.permute.xlu2 %218 }
 0x212   :  { %225 = vst.msk [vmem:[%s440_s6] sm:$0xf] %vm224_vm0, %v219_v32 }
 0x219   :  { %v221_v33 = vpop.permute.xlu2 %220 }
 0x21a   :  { %226 = vst.msk [vmem:[%s440_s6 + $0x4] sm:$0xf] %vm224_vm0, %v221_v33 }
 0x21b   :  { %235 = vsyncpa [#allocation3], 1 }
 0x21c   :  { %236 = vsyncpa [#allocation5], 1 }

// kernel: mix_att_decoder.11
= control target key start
LH: loop header
LB: loop body
LE: loop exit
PB: predicated region body
PF: predicated region fallthrough
CT: control target
= control target key end

     0   :  { %s1713_s0 = inlined_call_operand.vmem [shape: bf16[2,8,32], index: 0, kind: input, shape index: {}]   ;;  %s1714_s1 = inlined_call_operand.vmem [shape: bf16[2,8,64], index: 1, kind: input, shape index: {}]   ;;  %s1715_s2 = inlined_call_operand.vmem [shape: s8[2,8,8], index: 2, kind: input, shape index: {}]   ;;  %s1716_s3 = inlined_call_operand.vmem [shape: f32[2,8,32], index: 3, kind: input, shape index: {}]   ;;  %s1717_s4 = inlined_call_operand.hbm [shape: bf16[32,32], index: 4, kind: input, shape index: {}]   ;;  %s1718_s5 = inlined_call_operand.vmem [shape: f32[1,32], index: 5, kind: input, shape index: {}]   ;;  %s1719_s6 = inlined_call_operand.vmem [shape: f32[1,32], index: 6, kind: input, shape index: {}]   ;;  %s1720_s7 = inlined_call_operand.hbm [shape: f32[1,32], index: 7, kind: input, shape index: {}]   ;;  %s1721_s8 = inlined_call_operand.hbm [shape: bf16[32,32], index: 8, kind: input, shape index: {}]   ;;  %s1722_s9 = inlined_call_operand.hbm [shape: f32[1,32], index: 9, kind: input, shape index: {}]   ;;  %s1723_s10 = inlined_call_operand.vmem [shape: f32[2,8,32], index: 10, kind: output, shape index: {0}]   ;;  %s1724_s11 = inlined_call_operand.vmem [shape: bf16[2,8,32], index: 11, kind: output, shape index: {1}]  }
   0x1   :  { %1725 = sst [smem:[#allocation12_spill]] %s1717_s4 }
   0x2   :  { %1726 = sst [smem:[#allocation13_spill]] %s1720_s7 }
   0x3   :  { %17 = vsyncpa [#allocation3], 0 }
   0x4   :  { %18 = vsyncpa [#allocation5], 0 }
   0x5   :  { %19 = vsyncpa [#allocation8], 0  ;;  %s1554_s17 = smov 0   ;;  %s1556_s18 = smov 0  }
   0x6   :  { %s1558_s19 = smov 0  }
   0x7 LB: > { %s1727_s7 = sld [smem:[#allocation13_spill]]  ;;  %s1160_s23 = sadd.s32 4294967295, %s1473_s19   ;;  %s1473_s19 = sphi %s1558_s19, %s25_s19   ;;  %s1469_s18 = sphi %s1556_s18, %s1733_s18   ;;  %s1465_s17 = sphi %s1554_s17, %s1732_s17  }
   0x8   : > { %p1162_p0 = scmp.ge.s32.totalorder %s1473_s19, 1  ;;  %p332_p1 = scmp.lt.s32.totalorder %s1473_s19, 3 }
   0x9   : > { %p1575_p2 = scmp.eq.s32.totalorder %s1160_s23, 0  ;;  %s1475_s26 = smov [#allocation4]  }
   0xa   : > { %p1579_p3 = pnand %p1162_p0, %p332_p1  ;;  %s366_s27 = sshll.u32 %s1475_s26, 4  ;;  %s367_s27 = int_to_ptr.vmem [resolvable:$true] %s366_s27 }
   0xb   : > { %s37_s29 = sadd.s32 1, %s1469_s18  ;;  %s1731_s4 = sld [smem:[#allocation12_spill]] }
   0xc   : > { %p1227_p4 = pneg %p1579_p3  ;;  %p39_p6 = scmp.ge.s32.totalorder %s37_s29, 2 }
   0xd   : > { %s364_s22 = sshll.u32 %s1727_s7, 4  ;;  %s1476_s14 = smov [#allocation2]   ;;  %s365_s22 = int_to_ptr.hbm [resolvable:$true] %s364_s22 }
   0xe   : > { %p1587_p5 = pnand %p1575_p2, %p1227_p4  ;;  %s1735_s29 = smov (%p39_p6, %s37_s29), 0 }
   0xf   : > { %s345_s15 = sshll.u32 %s1476_s14, 4  ;;  %s375_s21 = sshll.u32 %s1721_s8, 4  ;;  %s346_s15 = int_to_ptr.vmem [resolvable:$true] %s345_s15  ;;  %s376_s21 = int_to_ptr.hbm [resolvable:$true] %s375_s21 }
  0x10   : > { %1233 = dma.hbm_to_vmem [thread:$0]  (!%p1587_p5), %s365_s22, 16, %s367_s27, [#allocation5]  }
  0x11   : > { %s343_s13 = sshll.u32 %s1731_s4, 4  ;;  %s1477_s23 = smov 64   ;;  %s344_s13 = int_to_ptr.hbm [resolvable:$true] %s343_s13 }
  0x12   : > { %s1478_s26 = smov 4   ;;  %s1479_s30 = smov [#allocation6]  }
  0x13   : > { %1230 = dma.hbm_to_vmem [thread:$0]  (!%p1587_p5), %s344_s13, 256, %s346_s15, [#allocation3], %s1477_s23, %s1477_s23, %s1478_s26  }
  0x14   : > { %s377_s12 = sshll.u32 %s1479_s30, 4  ;;  %s390_s22 = sshll.u32 %s1722_s9, 4  ;;  %s378_s12 = int_to_ptr.vmem [resolvable:$true] %s377_s12  ;;  %s391_s22 = int_to_ptr.hbm [resolvable:$true] %s390_s22 }
  0x15   : > { %1236 = dma.hbm_to_vmem [thread:$0]  (!%p1587_p5), %s376_s21, 256, %s378_s12, [#allocation5], %s1477_s23, %s1477_s23, %s1478_s26  }
  0x16   : > { %s1480_s27 = smov [#allocation7]   ;;  %439 = sbr.rel (%p1579_p3) target bundleno = 1662 (0x67e), region = 60 }
  0x17   : > { %s392_s14 = sshll.u32 %s1480_s27, 4  ;;  %s393_s14 = int_to_ptr.vmem [resolvable:$true] %s392_s14 }
  0x18   : > { %1239 = dma.hbm_to_vmem [thread:$0]  (!%p1587_p5), %s391_s22, 16, %s393_s14, [#allocation8]  }
  0x1b   : > { %1452 = dma.done.wait (%p1575_p2), [#allocation3], 256  }
  0x1c   : > { %1454 = vsyncadd (%p1575_p2), [#allocation3], 4294967040 }
  0x1d   : > { %1456 = dma.done.wait (%p1575_p2), [#allocation5], 272  }
  0x1e   : > { %1458 = vsyncadd (%p1575_p2), [#allocation5], 4294967024 }
  0x1f   : > { %1460 = dma.done.wait (%p1575_p2), [#allocation8], 16  }
  0x20   : > { %1462 = vsyncadd (%p1575_p2), [#allocation8], 4294967280  ;;  %p521_p7 = scmp.lt.s32.totalorder %s1465_s17, 1  ;;  %vm569_vm0 = vcmask 64512   ;;  %s1481_s16 = smov 96   ;;  %v1484_v10 = vmov 0.0  }
  0x21   : > { %s1482_s20 = smov 112   ;;  %s1483_s21 = smov 104   ;;  %vm609_vm2 = vcmask 1043456   ;;  %vm819_vm3 = vcmask 130048   ;;  %vm822_vm4 = vcmask 195584   ;;  %vm837_vm5 = vcmask 261120  }
  0x22   : > { %s1737_s17 = smov (!%p521_p7, %s1465_s17), 1  ;;  %s1485_s22 = smov 120   ;;  %vm962_vm14 = vcmask 257024  }
  0x23   : > { %s1630_s4 = sshll.u32 %s1737_s17, 2  ;;  %s1175_s23 = sshll.u32 %s1737_s17, 1 }
  0x24   : > { %s531_s28 = scalar_lea.vmem %s1714_s1, %s1630_s4  ;;  %s527_s15 = scalar_lea.vmem %s1713_s0, %s1630_s4 }
  0x25   : > { %v564_v0 = vld [vmem:[%s531_s28] sm:$0xf]  ;;  %s535_s12 = scalar_lea.vmem %s1715_s2, %s1175_s23  ;;  %s1486_s27 = smov 88  }
  0x26   : > { %v574_v1 = vsel %vm569_vm0, %v564_v0, 0  ;;  %v563_v2 = vld [vmem:[%s527_s15] sm:$0xf]  ;;  %v602_v3 = vunpack.c.l.b16 %v564_v0  ;;  %s1487_s14 = smov 80   ;;  %s1488_s7 = smov 72  }
  0x27   : > { %583 = vmatpush.bf16.xpose.msra.mxu0 %v574_v1  ;;  %v628_v5 = vunpack.c.l.b16 %v563_v2  ;;  %v558_v7 = vld [vmem:[%s535_s12] sm:$0x3]  ;;  %s1489_s25 = smov 8   ;;  %s1490_s28 = smov 24  }
  0x28   : > { %v1642_v4 = vpack.c.b16 %v602_v3, %v602_v3  ;;  %v559_v8 = vunpack.c.0.s8 %v558_v7  ;;  %s1491_s24 = smov 16   ;;  %s1176_s13 = sshll.u32 %s1737_s17, 3 }
  0x29   : > { %v629_v6 = vpack.c.b16 %v628_v5, %v628_v5  ;;  %s549_s12 = scalar_lea.vmem %s1723_s10, %s1176_s13 }
  0x2a   : > { %604 = vrot.lane.b32.xlu2 %v1642_v4, %s1481_s16  ;;  %v560_v9 = vcvt.s32.f32 %v559_v8 }
  0x2c   : > { %vm561_vm1 = vcmp.eq.f32.partialorder %v560_v9, 0.0 }
  0x2d   : > { %v562_v11 = vsel %vm561_vm1, -1e+09, %v1484_v10 }
  0x2e   : > { %1179 = vmatmul.msk.bf16.vlgmr.msra.gmra.mxu0 %vm569_vm0, %v563_v2 }
  0x32   : > { %689 = vrot.lane.b32.xlu2 %v1642_v4, %s1482_s20 }
  0x3a   : > { %746 = vrot.lane.b32.xlu2 %v1642_v4, %s1483_s21 }
  0x42   : > { %687 = vrot.lane.b32.xlu2 %v629_v6, %s1482_s20  ;;  %s542_s20 = scalar_lea.vmem %s1716_s3, %s1176_s13 }
  0x84   : > { %v605_v16 = vpop.permute.xlu2 %604 }
  0x85   : > { %v611_v27 = vsel %vm609_vm2, %v605_v16, 0 }
  0x86   : > { %620 = vmatpush.bf16.msra.mxu1 %v611_v27 }
  0x8c   : > { %v690_v17 = vpop.permute.xlu2 %689 }
  0x8d   : > { %v695_v28 = vsel %vm569_vm0, %v690_v17, 0 }
  0x8e   : > { %704 = vmatpush.bf16.xpose.msrb.mxu1 %v695_v28 }
  0x94   : > { %v747_v21 = vpop.permute.xlu2 %746 }
  0x95   : > { %v752_v22 = vsel %vm569_vm0, %v747_v21, 0 }
  0x96   : > { %761 = vmatpush.bf16.xpose.msrb.mxu0 %v752_v22 }
  0x9c   : > { %v688_v35 = vpop.permute.xlu2 %687 }
  0xab   : > { %v585_v12 = vpop.f32.mrf.mxu0 }
  0xac   : > { %v586_v13 = vadd.f32 %v585_v12, %v562_v11 }
  0xae   : > { %v589_v14 = vsel %vm569_vm0, %v586_v13, -inf }
  0xaf   : > { %590 = vmax.xlane.f32.xlu0 %v589_v14 }
  0xb3   : > { %v587_v15 = vpop.f32.mrf.mxu0 }
  0xc3   : > { %632 = vrot.lane.b32.xlu0 %v1642_v4, %s1485_s22 }
  0xcb   : > { %744 = vrot.lane.b32.xlu0 %v629_v6, %s1483_s21 }
 0x122   : > { %v591_v18 = vpop.xlane.xlu0 %590 }
 0x123   : > { %v592_v19 = vsub.f32 %v586_v13, %v591_v18 }
 0x125   : > { %v593_v20 = vmul.f32 1.442695, %v592_v19 }
 0x127   : > { %1295 = vpow2.f32 %v593_v20 }
 0x12d   : > { %v1296_v23 = vpop.eup %1295 }
 0x12e   : > { %v595_v24 = vsel %vm569_vm0, %v1296_v23, 0.0 }
 0x12f   : > { %596 = vadd.xlane.f32.xlu1 %v595_v24 }
 0x135   : > { %v633_v25 = vpop.permute.xlu0 %632 }
 0x136   : > { %v638_v29 = vsel %vm569_vm0, %v633_v25, 0 }
 0x137   : > { %647 = vmatpush.bf16.xpose.msra.mxu2 %v638_v29 }
 0x13d   : > { %v745_v26 = vpop.permute.xlu0 %744 }
 0x13e   : > { %1185 = vmatmul.msk.bf16.vlgmr.msrb.gmra.mxu0 %vm569_vm0, %v745_v26 }
 0x148   : > { %630 = vrot.lane.b32.xlu1 %v629_v6, %s1485_s22 }
 0x1a2   : > { %v597_v30 = vpop.xlane.xlu1 %596 }
 0x1a3   : > { %1297 = vrcp.f32 %v597_v30 }
 0x1a9   : > { %v1298_v31 = vpop.eup %1297 }
 0x1aa   : > { %v599_v32 = vmul.f32 %v1298_v31, %v1296_v23 }
 0x1ac   : > { %v600_v33 = vpack.c.bf16 %v599_v32, %v599_v32 }
 0x1ae   : > { %1180 = vmatmul.msk.bf16.vlgmr.msra.gmra.mxu1 %vm569_vm0, %v600_v33 }
 0x1ba   : > { %v631_v34 = vpop.permute.xlu1 %630 }
 0x1bb   : > { %1181 = vmatmul.msk.bf16.vlgmr.msra.gmra.mxu2 %vm569_vm0, %v631_v34  ;;  %v763_v36 = vpop.f32.mrf.mxu0  ;;  %v1208_v34 = vld [vmem:[#allocation2 + $0x8] sm:$0xff] }
 0x1bc   : > { %v764_v37 = vadd.f32 %v763_v36, %v562_v11  ;;  %846 = vmatpush.bf16.msra.mxu1 %v1208_v34 }
 0x1be   : > { %1183 = vmatmul.msk.bf16.vlgmr.msrb.gmra.mxu1 %vm569_vm0, %v688_v35  ;;  %v767_v38 = vsel %vm569_vm0, %v764_v37, -inf  ;;  %v1207_v35 = vld [vmem:[#allocation2] sm:$0xff] }
 0x1bf   : > { %768 = vmax.xlane.f32.xlu0 %v767_v38 }
 0x1c0   : > { %847 = vmatpush.bf16.msra.mxu1 %v1207_v35 }
 0x1c3   : > { %v765_v39 = vpop.f32.mrf.mxu0 }
 0x22b   : > { %v1663_v40 = vpop.f32.mrf.mxu1 }
 0x232   : > { %v769_v52 = vpop.xlane.xlu0 %768 }
 0x233   : > { %v624_v41 = vpop.f32.mrf.mxu1  ;;  %v770_v56 = vsub.f32 %v764_v37, %v769_v52  ;;  %v626_v37 = vpack.c.bf16 %v1663_v40, %v1663_v40  ;;  %v1291_v40 = vld [vmem:[%s1718_s5] ss:$0 sm:$0xff] }
 0x235   : > { %v771_v58 = vmul.f32 1.442695, %v770_v56 }
 0x23b   : > { %v706_v42 = vpop.f32.mrf.mxu1 }
 0x23c   : > { %v707_v43 = vadd.f32 %v706_v42, %v562_v11 }
 0x23e   : > { %v649_v44 = vpop.f32.mrf.mxu2  ;;  %v710_v45 = vsel %vm569_vm0, %v707_v43, -inf }
 0x23f   : > { %v650_v46 = vadd.f32 %v649_v44, %v562_v11  ;;  %711 = vmax.xlane.f32.xlu1 %v710_v45  ;;  %v853_v44 = vld [vmem:[%s542_s20] sm:$0xff] }
 0x241   : > { %v653_v47 = vsel %vm569_vm0, %v650_v46, -inf }
 0x242   : > { %654 = vmax.xlane.f32.xlu2 %v653_v47 }
 0x243   : > { %v708_v48 = vpop.f32.mrf.mxu1 }
 0x246   : > { %v651_v49 = vpop.f32.mrf.mxu2 }
 0x258   : > { %665 = vrot.lane.b32.xlu1 %v1642_v4, %s1486_s27 }
 0x2b2   : > { %v712_v50 = vpop.xlane.xlu1 %711 }
 0x2b3   : > { %v713_v51 = vsub.f32 %v707_v43, %v712_v50  ;;  %v1492_v50 = vmov 32.0  }
 0x2b5   : > { %v714_v53 = vmul.f32 1.442695, %v713_v51  ;;  %v655_v54 = vpop.xlane.xlu2 %654 }
 0x2b6   : > { %v656_v55 = vsub.f32 %v650_v46, %v655_v54 }
 0x2b7   : > { %1299 = vpow2.f32 %v714_v53 }
 0x2b8   : > { %v657_v57 = vmul.f32 1.442695, %v656_v55 }
 0x2ba   : > { %1301 = vpow2.f32 %v657_v57 }
 0x2bb   : > { %1303 = vpow2.f32 %v771_v58 }
 0x2bd   : > { %v1300_v59 = vpop.eup %1299 }
 0x2be   : > { %v716_v60 = vsel %vm569_vm0, %v1300_v59, 0.0 }
 0x2bf   : > { %717 = vadd.xlane.f32.xlu0 %v716_v60 }
 0x2c0   : > { %v1302_v61 = vpop.eup %1301 }
 0x2c1   : > { %v659_v62 = vsel %vm569_vm0, %v1302_v61, 0.0  ;;  %v1304_v63 = vpop.eup %1303 }
 0x2c2   : > { %660 = vadd.xlane.f32.xlu2 %v659_v62  ;;  %v773_v0 = vsel %vm569_vm0, %v1304_v63, 0.0  ;;  %v1493_v62 = vmov 31.0  }
 0x2ca   : > { %774 = vadd.xlane.f32.xlu2 %v773_v0  ;;  %v666_v1 = vpop.permute.xlu1 %665 }
 0x2cb   : > { %v671_v2 = vsel %vm609_vm2, %v666_v1, 0 }
 0x2cc   : > { %680 = vmatpush.bf16.msra.mxu3 %v671_v2 }
 0x2d3   : > { %722 = vrot.lane.b32.xlu0 %v1642_v4, %s1487_s14 }
 0x2e2   : > { %779 = vrot.lane.b32.xlu2 %v1642_v4, %s1488_s7  ;;  %s556_s7 = scalar_lea.vmem %s1724_s11, %s1630_s4 }
 0x332   : > { %v718_v6 = vpop.xlane.xlu0 %717 }
 0x335   : > { %v661_v3 = vpop.xlane.xlu2 %660 }
 0x336   : > { %1305 = vrcp.f32 %v661_v3 }
 0x33c   : > { %v1306_v5 = vpop.eup %1305 }
 0x33d   : > { %v775_v7 = vpop.xlane.xlu2 %774  ;;  %v663_v8 = vmul.f32 %v1306_v5, %v1302_v61  ;;  %v1210_v5 = vld [vmem:[#allocation6 + $0x8] sm:$0xff] }
 0x33e   : > { %1307 = vrcp.f32 %v775_v7 }
 0x33f   : > { %v664_v9 = vpack.c.bf16 %v663_v8, %v663_v8  ;;  %1309 = vrcp.f32 %v718_v6  ;;  %v1209_v6 = vld [vmem:[#allocation6] sm:$0xff] }
 0x340   : > { %1311 = vrcp.f32 %v1492_v50 }
 0x341   : > { %1182 = vmatmul.msk.bf16.vlgmr.msra.gmra.mxu3 %vm569_vm0, %v664_v9  ;;  %1313 = vrcp.f32 %v1493_v62 }
 0x344   : > { %v1308_v10 = vpop.eup %1307 }
 0x345   : > { %v777_v11 = vmul.f32 %v1308_v10, %v1304_v63  ;;  %v780_v12 = vpop.permute.xlu2 %779  ;;  %v723_v13 = vpop.permute.xlu0 %722 }
 0x346   : > { %v728_v4 = vsel %vm609_vm2, %v723_v13, 0  ;;  %v785_v14 = vsel %vm609_vm2, %v780_v12, 0  ;;  %v1310_v16 = vpop.eup %1309 }
 0x347   : > { %737 = vmatpush.bf16.msrb.mxu3 %v728_v4  ;;  %794 = vmatpush.bf16.msrb.mxu2 %v785_v14  ;;  %v778_v15 = vpack.c.bf16 %v777_v11, %v777_v11  ;;  %v720_v17 = vmul.f32 %v1310_v16, %v1300_v59  ;;  %v1312_v51 = vpop.eup %1311 }
 0x348   : > { %v867_v52 = vmul.f32 32.0, %v1312_v51  ;;  %vm871_vm6 = vweird.f32 %v1312_v51  ;;  %v1314_v63 = vpop.eup %1313 }
 0x349   : > { %v721_v18 = vpack.c.bf16 %v720_v17, %v720_v17  ;;  %v880_v0 = vmul.f32 31.0, %v1314_v63  ;;  %vm884_vm7 = vweird.f32 %v1314_v63 }
 0x34a   : > { %1186 = vmatmul.msk.bf16.vlgmr.msrb.gmra.mxu2 %vm569_vm0, %v778_v15  ;;  %v868_v53 = vsub.f32 1.0, %v867_v52 }
 0x34b   : > { %v881_v1 = vsub.f32 1.0, %v880_v0  ;;  %953 = vmatpush.bf16.msra.mxu3 %v1210_v5 }
 0x34c   : > { %v869_v54 = vmul.f32 %v1312_v51, %v868_v53 }
 0x34d   : > { %v882_v2 = vmul.f32 %v1314_v63, %v881_v1 }
 0x34e   : > { %v870_v55 = vadd.f32 %v1312_v51, %v869_v54 }
 0x34f   : > { %v883_v3 = vadd.f32 %v1314_v63, %v882_v2  ;;  %954 = vmatpush.bf16.msra.mxu3 %v1209_v6 }
 0x350   : > { %v872_v56 = vsel %vm871_vm6, %v1312_v51, %v870_v55 }
 0x351   : > { %1184 = vmatmul.msk.bf16.vlgmr.msrb.gmra.mxu3 %vm569_vm0, %v721_v18  ;;  %v885_v7 = vsel %vm884_vm7, %v1314_v63, %v883_v3 }
 0x3c4   : > { %v682_v19 = vpop.f32.mrf.mxu3 }
 0x3c5   : > { %v686_v20 = vpack.c.bf16 %v682_v19, %v682_v19 }
 0x3c7   : > { %v802_v21 = vunpack.c.l.b16 %v686_v20 }
 0x3c9   : > { %v803_v22 = vpack.c.b16 %v802_v21, %v802_v21 }
 0x3cb   : > { %804 = vrot.lane.b32.xlu1 %v803_v22, %s1489_s25 }
 0x3cc   : > { %v684_v23 = vpop.f32.mrf.mxu3 }
 0x3cd   : > { %v796_v24 = vpop.f32.mrf.mxu2 }
 0x3ce   : > { %v800_v25 = vpack.c.bf16 %v796_v24, %v796_v24  ;;  %v1292_v24 = vld [vmem:[%s1719_s6] ss:$0 sm:$0xff] }
 0x3d0   : > { %v812_v26 = vunpack.c.l.b16 %v800_v25 }
 0x3d2   : > { %v813_v27 = vpack.c.b16 %v812_v26, %v812_v26 }
 0x3d4   : > { %814 = vrot.lane.b32.xlu1 %v813_v27, %s1490_s28  ;;  %v739_v28 = vpop.f32.mrf.mxu3 }
 0x3d5   : > { %v743_v29 = vpack.c.bf16 %v739_v28, %v739_v28  ;;  %v798_v30 = vpop.f32.mrf.mxu2 }
 0x3d7   : > { %v807_v31 = vunpack.c.l.b16 %v743_v29 }
 0x3d9   : > { %v808_v32 = vpack.c.b16 %v807_v31, %v807_v31  ;;  %v1293_v31 = vld [vmem:[#allocation4] ss:$0 sm:$0xff] }
 0x3db   : > { %809 = vrot.lane.b32.xlu0 %v808_v32, %s1491_s24 }
 0x3dc   : > { %v741_v33 = vpop.f32.mrf.mxu3 }
 0x43d   : > { %v805_v36 = vpop.permute.xlu1 %804 }
 0x43e   : > { %v818_v38 = vsel %vm569_vm0, %v626_v37, %v805_v36  ;;  %v1294_v36 = vld [vmem:[#allocation7] ss:$0 sm:$0xff] }
 0x446   : > { %v815_v41 = vpop.permute.xlu1 %814 }
 0x44d   : > { %v810_v39 = vpop.permute.xlu0 %809 }
 0x44e   : > { %v821_v42 = vsel %vm819_vm3, %v818_v38, %v810_v39 }
 0x44f   : > { %v824_v43 = vsel %vm822_vm4, %v821_v42, %v815_v41 }
 0x450   : > { %1195 = vmatmul.msk.bf16.vlgmr.msra.gmra.mxu1 %vm837_vm5, %v824_v43 }
 0x4cd   : > { %v849_v45 = vpop.f32.mrf.mxu1 }
 0x4ce   : > { %v854_v46 = vadd.f32 %v853_v44, %v849_v45 }
 0x4d0   : > { %v859_v47 = vadd.f32 %v1291_v40, %v854_v46 }
 0x4d2   : > { %860 = vst.msk [vmem:[%s549_s12] sm:$0xff] %vm837_vm5, %v859_v47  ;;  %v863_v48 = vsel %vm837_vm5, %v859_v47, 0.0 }
 0x4d3   : > { %864 = vadd.xlane.f32.xlu2 %v863_v48 }
 0x4d5   : > { %v851_v49 = vpop.f32.mrf.mxu1 }
 0x546   : > { %v865_v57 = vpop.xlane.xlu2 %864 }
 0x547   : > { %v873_v58 = vmul.f32 %v872_v56, %v865_v57 }
 0x549   : > { %v874_v59 = vsub.f32 %v859_v47, %v873_v58 }
 0x54b   : > { %v875_v60 = vmul.f32 %v874_v59, %v874_v59  ;;  %v890_v29 = vmul.f32 %v1292_v24, %v874_v59 }
 0x54d   : > { %v876_v61 = vsel %vm837_vm5, %v875_v60, 0.0 }
 0x54e   : > { %877 = vadd.xlane.f32.xlu0 %v876_v61 }
 0x5c1   : > { %v878_v8 = vpop.xlane.xlu0 %877 }
 0x5c2   : > { %v886_v9 = vmul.f32 %v885_v7, %v878_v8 }
 0x5c4   : > { %1315 = vrsqrt.f32 %v886_v9  ;;  %vm898_vm8 = vcmp.eq.f32.partialorder %v886_v9, inf  ;;  %v901_v16 = vand.u32 2147483648, %v886_v9  ;;  %vm900_vm9 = vcmp.eq.f32.partialorder %v886_v9, 0.0 }
 0x5ca   : > { %v1316_v10 = vpop.eup %1315 }
 0x5cb   : > { %v892_v11 = vmul.f32 %v1316_v10, %v886_v9 }
 0x5cd   : > { %v893_v12 = vmul.f32 %v1316_v10, %v892_v11 }
 0x5cf   : > { %v894_v13 = vmul.f32 0.5, %v893_v12 }
 0x5d1   : > { %v895_v4 = vsub.f32 1.5, %v894_v13 }
 0x5d3   : > { %v896_v14 = vmul.f32 %v1316_v10, %v895_v4 }
 0x5d5   : > { %v897_v15 = vmul.f32 %v896_v14, %v886_v9 }
 0x5d7   : > { %v899_v17 = vsel %vm898_vm8, %v886_v9, %v897_v15 }
 0x5d8   : > { %v902_v18 = vsel %vm900_vm9, %v901_v16, %v899_v17 }
 0x5d9   : > { %v903_v19 = vadd.f32 1e-06, %v902_v18 }
 0x5db   : > { %1317 = vrcp.f32 %v903_v19  ;;  %v915_v23 = vand.u32 2147483648, %v903_v19  ;;  %v913_v26 = vand.u32 2147483647, %v903_v19  ;;  %vm909_vm11 = vweird.f32 %v903_v19 }
 0x5dd   : > { %v916_v28 = vor.u32 1.1754944e-38, %v915_v23  ;;  %vm914_vm13 = vcmp.eq.f32.partialorder %v913_v26, 8.507059e+37 }
 0x5e1   : > { %v1318_v20 = vpop.eup %1317 }
 0x5e2   : > { %v905_v21 = vmul.f32 %v1318_v20, %v903_v19  ;;  %vm910_vm10 = vweird.f32 %v1318_v20 }
 0x5e3   : > { %vm911_vm12 = vmor %vm909_vm11, %vm910_vm10 }
 0x5e4   : > { %v906_v22 = vsub.f32 1.0, %v905_v21 }
 0x5e6   : > { %v907_v25 = vmul.f32 %v1318_v20, %v906_v22 }
 0x5e8   : > { %v908_v27 = vadd.f32 %v1318_v20, %v907_v25 }
 0x5ea   : > { %v912_v30 = vsel %vm911_vm12, %v1318_v20, %v908_v27 }
 0x5eb   : > { %v917_v32 = vsel %vm914_vm13, %v916_v28, %v912_v30 }
 0x5ec   : > { %v918_v33 = vmul.f32 %v917_v32, %v890_v29 }
 0x5ee   : > { %v922_v34 = vadd.f32 %v1293_v31, %v918_v33 }
 0x5f0   : > { %v923_v35 = vpack.c.bf16 %v922_v34, %v922_v34 }
 0x5f2   : > { %1204 = vmatmul.msk.bf16.vlgmr.msra.gmra.mxu3 %vm837_vm5, %v923_v35 }
 0x675   : > { %v956_v37 = vpop.f32.mrf.mxu3 }
 0x676   : > { %v957_v38 = vadd.f32 %v1294_v36, %v956_v37 }
 0x678   : > { %v960_v39 = vmul.f32 0.35355338, %v957_v38 }
 0x67a   : > { %v961_v41 = vpack.c.bf16 %v960_v39, %v960_v39 }
 0x67c   : > { %963 = vst.msk [vmem:[%s556_s7] sm:$0xf] %vm962_vm14, %v961_v41 }
 0x67d   : > { %v958_v42 = vpop.f32.mrf.mxu3 }
 0x67e PF: > { %s25_s19 = sadd.s32 1, %s1473_s19   ;;  %s1732_s17 = smov %s1469_s18 }
 0x67f   : > { %p22_p8 = scmp.ge.s32.totalorder %s25_s19, 4   ;;  %s1733_s18 = smov %s1735_s29 }
 0x681   :  { %24 = sbr.rel (!%p22_p8) target bundleno = 7 (0x7), region = 128 }
 0x686   :  { %1009 = vsyncpa [#allocation3], 1 }
 0x687   :  { %1011 = vsyncpa [#allocation3 + $0x1], 1 }
 0x688   :  { %1012 = vsyncpa [#allocation5], 1 }
 0x689   :  { %1013 = vsyncpa [#allocation8], 1 }

// kernel: mix_att_decoder.13
= control target key start
LH: loop header
LB: loop body
LE: loop exit
PB: predicated region body
PF: predicated region fallthrough
CT: control target
= control target key end

     0   :  { %s918_s21 = smov 0   ;;  %s920_s22 = smov 0   ;;  %s1013_s0 = inlined_call_operand.vmem [shape: bf16[2,8,32], index: 0, kind: input, shape index: {}]   ;;  %s1014_s1 = inlined_call_operand.vmem [shape: bf16[2,10,64], index: 1, kind: input, shape index: {}]   ;;  %s1015_s2 = inlined_call_operand.vmem [shape: s8[2,1,10], index: 2, kind: input, shape index: {}]   ;;  %s1016_s3 = inlined_call_operand.vmem [shape: f32[2,8,32], index: 3, kind: input, shape index: {}]   ;;  %s1017_s4 = inlined_call_operand.vmem [shape: bf16[32,32], index: 4, kind: input, shape index: {}]   ;;  %s1018_s5 = inlined_call_operand.vmem [shape: f32[1,32], index: 5, kind: input, shape index: {}]   ;;  %s1019_s6 = inlined_call_operand.vmem [shape: f32[2,8,32], index: 6, kind: output, shape index: {}]  }
   0x1   :  { %s922_s23 = smov 0  }
   0x2 LB: > { %s28_s24 = sadd.s32 1, %s866_s22  ;;  %p763_p0 = scmp.ge.s32.totalorder %s870_s23, 1  ;;  %s870_s23 = sphi %s922_s23, %s16_s23   ;;  %s866_s22 = sphi %s920_s22, %s1021_s22   ;;  %s862_s21 = sphi %s918_s21, %s1020_s21  }
   0x3   : > { %p30_p1 = scmp.ge.s32.totalorder %s28_s24, 2  ;;  %p262_p2 = scmp.lt.s32.totalorder %s870_s23, 3 }
   0x5   : > { %s1023_s24 = smov (%p30_p1, %s28_s24), 0  ;;  %p263_p3 = pnand %p763_p0, %p262_p2 }
   0x6   : > { %p311_p4 = scmp.lt.s32.totalorder (!%p263_p3), %s862_s21, 1  ;;  %s872_s9 = smov (!%p263_p3), 96  }
   0x7   : > { %266 = sbr.rel (%p263_p3) target bundleno = 1218 (0x4c2), region = 44  ;;  %s873_s10 = smov (!%p263_p3), 112  }
   0x8   : > { %s874_s11 = smov (!%p263_p3), 104   ;;  %s876_s15 = smov (!%p263_p3), 120  }
   0x9   : > { %s877_s16 = smov (!%p263_p3), 88   ;;  %s878_s17 = smov (!%p263_p3), 80  }
   0xa   : > { %s879_s18 = smov (!%p263_p3), 72   ;;  %s880_s19 = smov (!%p263_p3), 8  }
   0xb   : > { %s881_s20 = smov (!%p263_p3), 24  }
   0xc   : > { %s1025_s21 = smov (!%p311_p4, %s862_s21), 1  ;;  %vm359_vm0 = vcmask 64512   ;;  %v875_v10 = vmov 0.0   ;;  %vm379_vm2 = vcmask 80896   ;;  %vm397_vm3 = vcmask 1044480  }
   0xd   : > { %s936_s25 = sshll.u32 %s1025_s21, 3  ;;  %s764_s29 = sshll.u32 %s1025_s21, 2  ;;  %vm607_vm4 = vcmask 130048   ;;  %vm610_vm5 = vcmask 195584   ;;  %vm625_vm6 = vcmask 261120  }
   0xe   : > { %s322_s28 = scalar_lea.vmem %s1014_s1, %s936_s25  ;;  %s317_s8 = scalar_lea.vmem %s1013_s0, %s764_s29 }
   0xf   : > { %v771_v0 = vld [vmem:[%s322_s28] sm:$0xf]  ;;  %v793_v1 = vld [vmem:[%s322_s28] sm:$0x10]  ;;  %s325_s14 = scalar_lea.vmem %s1015_s2, %s1025_s21  ;;  %s882_s21 = smov 16  }
  0x10   : > { %v942_v2 = vor.u32 %v793_v1, %v771_v0  ;;  %v346_v4 = vld [vmem:[%s317_s8] sm:$0xf]  ;;  %s332_s8 = scalar_lea.vmem %s1016_s3, %s936_s25  ;;  %s339_s13 = scalar_lea.vmem %s1019_s6, %s936_s25 }
  0x11   : > { %v416_v5 = vunpack.c.l.b16 %v346_v4  ;;  %v341_v7 = vld [vmem:[%s325_s14] sm:$0x1] }
  0x12   : > { %v364_v3 = vsel %vm359_vm0, %v942_v2, 0  ;;  %392 = vrot.lane.b32.xlu2 %v942_v2, %s872_s9  ;;  %v342_v8 = vunpack.c.0.s8 %v341_v7 }
  0x13   : > { %373 = vmatpush.bf16.xpose.msra.mxu0 %v364_v3  ;;  %v417_v6 = vpack.c.b16 %v416_v5, %v416_v5 }
  0x14   : > { %v343_v9 = vcvt.s32.f32 %v342_v8 }
  0x16   : > { %vm344_vm1 = vcmp.eq.f32.partialorder %v343_v9, 0.0 }
  0x17   : > { %v345_v11 = vsel %vm344_vm1, -1e+09, %v875_v10 }
  0x18   : > { %v353_v12 = vperm.slane %v345_v11, 0 }
  0x1a   : > { %773 = vmatmul.msk.bf16.vlgmr.msra.gmra.mxu0 %vm359_vm0, %v346_v4  ;;  %477 = vrot.lane.b32.xlu2 %v942_v2, %s873_s10 }
  0x22   : > { %534 = vrot.lane.b32.xlu2 %v942_v2, %s874_s11 }
  0x2a   : > { %475 = vrot.lane.b32.xlu2 %v417_v6, %s873_s10 }
  0x6c   : > { %v393_v17 = vpop.permute.xlu2 %392 }
  0x6d   : > { %v399_v28 = vsel %vm397_vm3, %v393_v17, 0 }
  0x6e   : > { %408 = vmatpush.bf16.msra.mxu1 %v399_v28 }
  0x74   : > { %v478_v18 = vpop.permute.xlu2 %477 }
  0x75   : > { %v483_v29 = vsel %vm359_vm0, %v478_v18, 0 }
  0x76   : > { %492 = vmatpush.bf16.xpose.msrb.mxu1 %v483_v29 }
  0x7c   : > { %v535_v22 = vpop.permute.xlu2 %534 }
  0x7d   : > { %v540_v23 = vsel %vm359_vm0, %v535_v22, 0 }
  0x7e   : > { %549 = vmatpush.bf16.xpose.msrb.mxu0 %v540_v23 }
  0x84   : > { %v476_v36 = vpop.permute.xlu2 %475 }
  0x97   : > { %v375_v13 = vpop.f32.mrf.mxu0 }
  0x98   : > { %v376_v14 = vadd.f32 %v375_v13, %v353_v12 }
  0x9a   : > { %v380_v15 = vsel %vm379_vm2, %v376_v14, -inf }
  0x9b   : > { %381 = vmax.xlane.f32.xlu0 %v380_v15 }
  0x9f   : > { %v377_v16 = vpop.f32.mrf.mxu0 }
  0xaf   : > { %420 = vrot.lane.b32.xlu0 %v942_v2, %s876_s15 }
  0xb7   : > { %532 = vrot.lane.b32.xlu0 %v417_v6, %s874_s11 }
 0x10e   : > { %v382_v19 = vpop.xlane.xlu0 %381 }
 0x10f   : > { %v383_v20 = vsub.f32 %v376_v14, %v382_v19 }
 0x111   : > { %v384_v21 = vmul.f32 1.442695, %v383_v20 }
 0x113   : > { %832 = vpow2.f32 %v384_v21 }
 0x119   : > { %v833_v24 = vpop.eup %832 }
 0x11a   : > { %v386_v25 = vsel %vm379_vm2, %v833_v24, 0.0 }
 0x11b   : > { %387 = vadd.xlane.f32.xlu1 %v386_v25 }
 0x121   : > { %v421_v26 = vpop.permute.xlu0 %420 }
 0x122   : > { %v426_v30 = vsel %vm359_vm0, %v421_v26, 0 }
 0x123   : > { %435 = vmatpush.bf16.xpose.msra.mxu2 %v426_v30 }
 0x129   : > { %v533_v27 = vpop.permute.xlu0 %532 }
 0x12a   : > { %779 = vmatmul.msk.bf16.vlgmr.msrb.gmra.mxu0 %vm359_vm0, %v533_v27 }
 0x134   : > { %418 = vrot.lane.b32.xlu1 %v417_v6, %s876_s15 }
 0x18e   : > { %v388_v31 = vpop.xlane.xlu1 %387 }
 0x18f   : > { %834 = vrcp.f32 %v388_v31 }
 0x195   : > { %v835_v32 = vpop.eup %834 }
 0x196   : > { %v390_v33 = vmul.f32 %v835_v32, %v833_v24 }
 0x198   : > { %v391_v34 = vpack.c.bf16 %v390_v33, %v390_v33 }
 0x19a   : > { %774 = vmatmul.msk.bf16.vlgmr.msra.gmra.mxu1 %vm379_vm2, %v391_v34 }
 0x1a6   : > { %v419_v35 = vpop.permute.xlu1 %418 }
 0x1a7   : > { %775 = vmatmul.msk.bf16.vlgmr.msra.gmra.mxu2 %vm359_vm0, %v419_v35  ;;  %v551_v37 = vpop.f32.mrf.mxu0  ;;  %v795_v35 = vld [vmem:[%s1017_s4 + $0x8] sm:$0xff] }
 0x1a8   : > { %v552_v38 = vadd.f32 %v551_v37, %v353_v12  ;;  %634 = vmatpush.bf16.msra.mxu1 %v795_v35 }
 0x1aa   : > { %777 = vmatmul.msk.bf16.vlgmr.msrb.gmra.mxu1 %vm359_vm0, %v476_v36  ;;  %v555_v39 = vsel %vm379_vm2, %v552_v38, -inf  ;;  %v794_v36 = vld [vmem:[%s1017_s4] sm:$0xff] }
 0x1ab   : > { %556 = vmax.xlane.f32.xlu0 %v555_v39 }
 0x1ac   : > { %635 = vmatpush.bf16.msra.mxu1 %v794_v36 }
 0x1af   : > { %v553_v40 = vpop.f32.mrf.mxu0 }
 0x217   : > { %v968_v41 = vpop.f32.mrf.mxu1 }
 0x21e   : > { %v557_v53 = vpop.xlane.xlu0 %556 }
 0x21f   : > { %v412_v42 = vpop.f32.mrf.mxu1  ;;  %v558_v57 = vsub.f32 %v552_v38, %v557_v53  ;;  %v414_v38 = vpack.c.bf16 %v968_v41, %v968_v41 }
 0x221   : > { %v559_v59 = vmul.f32 1.442695, %v558_v57 }
 0x227   : > { %v494_v43 = vpop.f32.mrf.mxu1 }
 0x228   : > { %v495_v44 = vadd.f32 %v494_v43, %v353_v12 }
 0x22a   : > { %v437_v45 = vpop.f32.mrf.mxu2  ;;  %v498_v46 = vsel %vm379_vm2, %v495_v44, -inf }
 0x22b   : > { %v438_v47 = vadd.f32 %v437_v45, %v353_v12  ;;  %499 = vmax.xlane.f32.xlu1 %v498_v46  ;;  %v641_v45 = vld [vmem:[%s332_s8] sm:$0xff] }
 0x22c   : > { %v831_v46 = vld [vmem:[%s1018_s5] ss:$0 sm:$0xff] }
 0x22d   : > { %v441_v48 = vsel %vm379_vm2, %v438_v47, -inf }
 0x22e   : > { %442 = vmax.xlane.f32.xlu2 %v441_v48 }
 0x22f   : > { %v496_v49 = vpop.f32.mrf.mxu1 }
 0x232   : > { %v439_v50 = vpop.f32.mrf.mxu2 }
 0x244   : > { %453 = vrot.lane.b32.xlu1 %v942_v2, %s877_s16 }
 0x29e   : > { %v500_v51 = vpop.xlane.xlu1 %499 }
 0x29f   : > { %v501_v52 = vsub.f32 %v495_v44, %v500_v51 }
 0x2a1   : > { %v502_v54 = vmul.f32 1.442695, %v501_v52  ;;  %v443_v55 = vpop.xlane.xlu2 %442 }
 0x2a2   : > { %v444_v56 = vsub.f32 %v438_v47, %v443_v55 }
 0x2a3   : > { %836 = vpow2.f32 %v502_v54 }
 0x2a4   : > { %v445_v58 = vmul.f32 1.442695, %v444_v56 }
 0x2a6   : > { %838 = vpow2.f32 %v445_v58 }
 0x2a7   : > { %840 = vpow2.f32 %v559_v59 }
 0x2a9   : > { %v837_v60 = vpop.eup %836 }
 0x2aa   : > { %v504_v61 = vsel %vm379_vm2, %v837_v60, 0.0 }
 0x2ab   : > { %505 = vadd.xlane.f32.xlu0 %v504_v61 }
 0x2ac   : > { %v839_v62 = vpop.eup %838 }
 0x2ad   : > { %v447_v63 = vsel %vm379_vm2, %v839_v62, 0.0  ;;  %v841_v0 = vpop.eup %840 }
 0x2ae   : > { %448 = vadd.xlane.f32.xlu2 %v447_v63  ;;  %v561_v1 = vsel %vm379_vm2, %v841_v0, 0.0 }
 0x2b6   : > { %562 = vadd.xlane.f32.xlu2 %v561_v1  ;;  %v454_v3 = vpop.permute.xlu1 %453 }
 0x2b7   : > { %v459_v4 = vsel %vm397_vm3, %v454_v3, 0 }
 0x2b8   : > { %468 = vmatpush.bf16.msra.mxu3 %v459_v4 }
 0x2bf   : > { %510 = vrot.lane.b32.xlu0 %v942_v2, %s878_s17 }
 0x2ce   : > { %567 = vrot.lane.b32.xlu2 %v942_v2, %s879_s18 }
 0x31e   : > { %v506_v7 = vpop.xlane.xlu0 %505 }
 0x321   : > { %v449_v5 = vpop.xlane.xlu2 %448 }
 0x322   : > { %842 = vrcp.f32 %v449_v5 }
 0x328   : > { %v843_v6 = vpop.eup %842 }
 0x329   : > { %v563_v8 = vpop.xlane.xlu2 %562  ;;  %v451_v9 = vmul.f32 %v843_v6, %v839_v62 }
 0x32a   : > { %844 = vrcp.f32 %v563_v8 }
 0x32b   : > { %v452_v10 = vpack.c.bf16 %v451_v9, %v451_v9  ;;  %846 = vrcp.f32 %v506_v7 }
 0x32d   : > { %776 = vmatmul.msk.bf16.vlgmr.msra.gmra.mxu3 %vm379_vm2, %v452_v10 }
 0x330   : > { %v845_v11 = vpop.eup %844 }
 0x331   : > { %v565_v12 = vmul.f32 %v845_v11, %v841_v0  ;;  %v568_v13 = vpop.permute.xlu2 %567  ;;  %v511_v14 = vpop.permute.xlu0 %510 }
 0x332   : > { %v516_v2 = vsel %vm397_vm3, %v511_v14, 0  ;;  %v573_v15 = vsel %vm397_vm3, %v568_v13, 0  ;;  %v847_v17 = vpop.eup %846 }
 0x333   : > { %525 = vmatpush.bf16.msrb.mxu3 %v516_v2  ;;  %582 = vmatpush.bf16.msrb.mxu2 %v573_v15  ;;  %v566_v16 = vpack.c.bf16 %v565_v12, %v565_v12  ;;  %v508_v18 = vmul.f32 %v847_v17, %v837_v60 }
 0x335   : > { %v509_v19 = vpack.c.bf16 %v508_v18, %v508_v18 }
 0x336   : > { %780 = vmatmul.msk.bf16.vlgmr.msrb.gmra.mxu2 %vm379_vm2, %v566_v16 }
 0x33d   : > { %778 = vmatmul.msk.bf16.vlgmr.msrb.gmra.mxu3 %vm379_vm2, %v509_v19 }
 0x3b0   : > { %v470_v20 = vpop.f32.mrf.mxu3 }
 0x3b1   : > { %v474_v21 = vpack.c.bf16 %v470_v20, %v470_v20 }
 0x3b3   : > { %v590_v22 = vunpack.c.l.b16 %v474_v21 }
 0x3b5   : > { %v591_v23 = vpack.c.b16 %v590_v22, %v590_v22 }
 0x3b7   : > { %592 = vrot.lane.b32.xlu1 %v591_v23, %s880_s19 }
 0x3b8   : > { %v472_v24 = vpop.f32.mrf.mxu3 }
 0x3b9   : > { %v584_v25 = vpop.f32.mrf.mxu2 }
 0x3ba   : > { %v588_v26 = vpack.c.bf16 %v584_v25, %v584_v25 }
 0x3bc   : > { %v600_v27 = vunpack.c.l.b16 %v588_v26 }
 0x3be   : > { %v601_v28 = vpack.c.b16 %v600_v27, %v600_v27 }
 0x3c0   : > { %602 = vrot.lane.b32.xlu1 %v601_v28, %s881_s20  ;;  %v527_v29 = vpop.f32.mrf.mxu3 }
 0x3c1   : > { %v531_v30 = vpack.c.bf16 %v527_v29, %v527_v29  ;;  %v586_v31 = vpop.f32.mrf.mxu2 }
 0x3c3   : > { %v595_v32 = vunpack.c.l.b16 %v531_v30 }
 0x3c5   : > { %v596_v33 = vpack.c.b16 %v595_v32, %v595_v32 }
 0x3c7   : > { %597 = vrot.lane.b32.xlu0 %v596_v33, %s882_s21 }
 0x3c8   : > { %v529_v34 = vpop.f32.mrf.mxu3 }
 0x429   : > { %v593_v37 = vpop.permute.xlu1 %592 }
 0x42a   : > { %v606_v39 = vsel %vm359_vm0, %v414_v38, %v593_v37 }
 0x432   : > { %v603_v42 = vpop.permute.xlu1 %602 }
 0x439   : > { %v598_v40 = vpop.permute.xlu0 %597 }
 0x43a   : > { %v609_v43 = vsel %vm607_vm4, %v606_v39, %v598_v40 }
 0x43b   : > { %v612_v44 = vsel %vm610_vm5, %v609_v43, %v603_v42 }
 0x43c   : > { %789 = vmatmul.msk.bf16.vlgmr.msra.gmra.mxu1 %vm625_vm6, %v612_v44 }
 0x4b9   : > { %v637_v41 = vpop.f32.mrf.mxu1 }
 0x4ba   : > { %v642_v47 = vadd.f32 %v641_v45, %v637_v41 }
 0x4bc   : > { %v647_v48 = vadd.f32 %v831_v46, %v642_v47 }
 0x4be   : > { %648 = vst.msk [vmem:[%s339_s13] sm:$0xff] %vm625_vm6, %v647_v48 }
 0x4c1   : > { %v639_v49 = vpop.f32.mrf.mxu1 }
 0x4c2 PF: > { %s16_s23 = sadd.s32 1, %s870_s23   ;;  %s1020_s21 = smov %s866_s22 }
 0x4c3   : > { %p13_p5 = scmp.ge.s32.totalorder %s16_s23, 4   ;;  %s1021_s22 = smov %s1023_s24 }
 0x4c5   :  { %15 = sbr.rel (!%p13_p5) target bundleno = 2 (0x2), region = 83 }

// kernel: mix_att_decoder.14
= control target key start
LH: loop header
LB: loop body
LE: loop exit
PB: predicated region body
PF: predicated region fallthrough
CT: control target
= control target key end

     0   :  { %vm31_vm0 = vcmask 261120   ;;  %v285_v4 = vmov 32.0   ;;  %v286_v24 = vmov 31.0   ;;  %vm209_vm15 = vcmask 523264   ;;  %s392_s0 = inlined_call_operand.vmem [shape: f32[16,32], index: 0, kind: input, shape index: {}]   ;;  %s393_s1 = inlined_call_operand.vmem [shape: f32[1,32], index: 1, kind: input, shape index: {}]   ;;  %s394_s2 = inlined_call_operand.vmem [shape: f32[1,32], index: 2, kind: input, shape index: {}]   ;;  %s395_s4 = inlined_call_operand.vmem [shape: f32[1,64], index: 4, kind: input, shape index: {}]   ;;  %s396_s3 = inlined_call_operand.vmem [shape: bf16[32,64], index: 3, kind: input, shape index: {}]   ;;  %s397_s6 = inlined_call_operand.vmem [shape: f32[1,32], index: 6, kind: input, shape index: {}]   ;;  %s398_s5 = inlined_call_operand.vmem [shape: bf16[64,32], index: 5, kind: input, shape index: {}]   ;;  %s399_s7 = inlined_call_operand.vmem [shape: f32[16,32], index: 7, kind: output, shape index: {}]  }
   0x1   :  { %v330_v0 = vld [vmem:[%s392_s0] sm:$0xff]  ;;  %v337_v2 = vld [vmem:[%s392_s0 + $0x8] sm:$0xff]  ;;  %273 = vrcp.f32 %v285_v4 }
   0x2   :  { %v32_v1 = vsel %vm31_vm0, %v330_v0, 0.0  ;;  %v35_v3 = vsel %vm31_vm0, %v337_v2, 0.0  ;;  %v269_v12 = vld [vmem:[%s393_s1] ss:$0 sm:$0xff]  ;;  %275 = vrcp.f32 %v286_v24  ;;  %v262_v31 = vld [vmem:[%s396_s3 + $0x8] sm:$0xff] }
   0x3   :  { %33 = vadd.xlane.f32.xlu0 %v32_v1  ;;  %162 = vmatpush.bf16.msra.mxu0 %v262_v31  ;;  %v261_v33 = vld [vmem:[%s396_s3] sm:$0xff] }
   0x7   :  { %v274_v5 = vpop.eup %273  ;;  %163 = vmatpush.bf16.msra.mxu0 %v261_v33 }
   0x8   :  { %v39_v6 = vmul.f32 32.0, %v274_v5  ;;  %vm43_vm1 = vweird.f32 %v274_v5  ;;  %v276_v25 = vpop.eup %275 }
   0x9   :  { %v58_v26 = vmul.f32 31.0, %v276_v25  ;;  %vm62_vm2 = vweird.f32 %v276_v25 }
   0xa   :  { %v40_v7 = vsub.f32 1.0, %v39_v6 }
   0xb   :  { %36 = vadd.xlane.f32.xlu0 %v35_v3  ;;  %v59_v27 = vsub.f32 1.0, %v58_v26  ;;  %v264_v26 = vld [vmem:[%s398_s5 + $0x8] sm:$0xff] }
   0xc   :  { %v41_v8 = vmul.f32 %v274_v5, %v40_v7 }
   0xd   :  { %v60_v28 = vmul.f32 %v276_v25, %v59_v27 }
   0xe   :  { %v42_v9 = vadd.f32 %v274_v5, %v41_v8 }
   0xf   :  { %v61_v29 = vadd.f32 %v276_v25, %v60_v28  ;;  %v271_v28 = vld [vmem:[%s395_s4] ss:$0 sm:$0xff] }
  0x10   :  { %v44_v10 = vsel %vm43_vm1, %v274_v5, %v42_v9 }
  0x11   :  { %v63_v30 = vsel %vm62_vm2, %v276_v25, %v61_v29  ;;  %v266_v25 = vld [vmem:[%s398_s5 + $0x18] sm:$0xff] }
  0x12   :  { %217 = vmatpush.bf16.msra.mxu1 %v266_v25 }
  0x76   :  { %v34_v11 = vpop.xlane.xlu0 %33 }
  0x77   :  { %v45_v13 = vmul.f32 %v44_v10, %v34_v11 }
  0x79   :  { %v47_v14 = vsub.f32 %v330_v0, %v45_v13 }
  0x7b   :  { %v345_v15 = vmul.f32 %v269_v12, %v47_v14  ;;  %v49_v16 = vmul.f32 %v47_v14, %v47_v14 }
  0x7d   :  { %v51_v17 = vsel %vm31_vm0, %v49_v16, 0.0 }
  0x7e   :  { %52 = vadd.xlane.f32.xlu1 %v51_v17  ;;  %v37_v18 = vpop.xlane.xlu0 %36 }
  0x7f   :  { %v46_v19 = vmul.f32 %v44_v10, %v37_v18  ;;  %v270_v18 = vld [vmem:[%s394_s2] ss:$0 sm:$0xff] }
  0x81   :  { %v48_v20 = vsub.f32 %v337_v2, %v46_v19 }
  0x83   :  { %v349_v21 = vmul.f32 %v269_v12, %v48_v20  ;;  %v50_v22 = vmul.f32 %v48_v20, %v48_v20 }
  0x85   :  { %v54_v23 = vsel %vm31_vm0, %v50_v22, 0.0 }
  0x86   :  { %55 = vadd.xlane.f32.xlu1 %v54_v23 }
  0xf1   :  { %v53_v32 = vpop.xlane.xlu1 %52 }
  0xf2   :  { %v64_v34 = vmul.f32 %v63_v30, %v53_v32 }
  0xf4   :  { %277 = vrsqrt.f32 %v64_v34  ;;  %vm78_vm3 = vcmp.eq.f32.partialorder %v64_v34, inf  ;;  %v81_v47 = vand.u32 2147483648, %v64_v34  ;;  %vm80_vm4 = vcmp.eq.f32.partialorder %v64_v34, 0.0 }
  0xf9   :  { %v56_v35 = vpop.xlane.xlu1 %55 }
  0xfa   :  { %v278_v36 = vpop.eup %277  ;;  %v65_v37 = vmul.f32 %v63_v30, %v56_v35  ;;  %v272_v35 = vld [vmem:[%s397_s6] ss:$0 sm:$0xff] }
  0xfb   :  { %v72_v38 = vmul.f32 %v278_v36, %v64_v34 }
  0xfc   :  { %279 = vrsqrt.f32 %v65_v37  ;;  %vm90_vm5 = vcmp.eq.f32.partialorder %v65_v37, inf  ;;  %v93_v55 = vand.u32 2147483648, %v65_v37  ;;  %vm92_vm6 = vcmp.eq.f32.partialorder %v65_v37, 0.0 }
  0xfd   :  { %v73_v39 = vmul.f32 %v278_v36, %v72_v38 }
  0xff   :  { %v74_v40 = vmul.f32 0.5, %v73_v39 }
 0x101   :  { %v75_v41 = vsub.f32 1.5, %v74_v40 }
 0x102   :  { %v280_v42 = vpop.eup %279 }
 0x103   :  { %v76_v43 = vmul.f32 %v278_v36, %v75_v41  ;;  %v84_v44 = vmul.f32 %v280_v42, %v65_v37 }
 0x105   :  { %v77_v45 = vmul.f32 %v76_v43, %v64_v34  ;;  %v85_v46 = vmul.f32 %v280_v42, %v84_v44 }
 0x107   :  { %v79_v48 = vsel %vm78_vm3, %v64_v34, %v77_v45  ;;  %v86_v49 = vmul.f32 0.5, %v85_v46 }
 0x108   :  { %v82_v50 = vsel %vm80_vm4, %v81_v47, %v79_v48 }
 0x109   :  { %v87_v51 = vsub.f32 1.5, %v86_v49  ;;  %v95_v52 = vadd.f32 1e-06, %v82_v50 }
 0x10b   :  { %v88_v53 = vmul.f32 %v280_v42, %v87_v51  ;;  %281 = vrcp.f32 %v95_v52  ;;  %v108_v3 = vand.u32 2147483648, %v95_v52  ;;  %vm102_vm8 = vweird.f32 %v95_v52 }
 0x10c   :  { %v106_v4 = vand.u32 2147483647, %v95_v52 }
 0x10d   :  { %v89_v54 = vmul.f32 %v88_v53, %v65_v37  ;;  %v109_v8 = vor.u32 1.1754944e-38, %v108_v3 }
 0x10e   :  { %vm107_vm10 = vcmp.eq.f32.partialorder %v106_v4, 8.507059e+37 }
 0x10f   :  { %v91_v56 = vsel %vm90_vm5, %v65_v37, %v89_v54 }
 0x110   :  { %v94_v57 = vsel %vm92_vm6, %v93_v55, %v91_v56 }
 0x111   :  { %v282_v58 = vpop.eup %281  ;;  %v96_v59 = vadd.f32 1e-06, %v94_v57 }
 0x112   :  { %v98_v60 = vmul.f32 %v282_v58, %v95_v52  ;;  %vm103_vm7 = vweird.f32 %v282_v58 }
 0x113   :  { %283 = vrcp.f32 %v96_v59  ;;  %vm104_vm9 = vmor %vm102_vm8, %vm103_vm7  ;;  %v123_v9 = vand.u32 2147483648, %v96_v59  ;;  %v121_v11 = vand.u32 2147483647, %v96_v59  ;;  %vm117_vm12 = vweird.f32 %v96_v59 }
 0x114   :  { %v99_v61 = vsub.f32 1.0, %v98_v60 }
 0x115   :  { %v124_v14 = vor.u32 1.1754944e-38, %v123_v9  ;;  %vm122_vm14 = vcmp.eq.f32.partialorder %v121_v11, 8.507059e+37 }
 0x116   :  { %v100_v62 = vmul.f32 %v282_v58, %v99_v61 }
 0x118   :  { %v101_v63 = vadd.f32 %v282_v58, %v100_v62 }
 0x119   :  { %v284_v1 = vpop.eup %283 }
 0x11a   :  { %v113_v5 = vmul.f32 %v284_v1, %v96_v59  ;;  %v105_v6 = vsel %vm104_vm9, %v282_v58, %v101_v63  ;;  %vm118_vm11 = vweird.f32 %v284_v1 }
 0x11b   :  { %v110_v12 = vsel %vm107_vm10, %v109_v8, %v105_v6  ;;  %vm119_vm13 = vmor %vm117_vm12, %vm118_vm11 }
 0x11c   :  { %v114_v7 = vsub.f32 1.0, %v113_v5  ;;  %v111_v16 = vmul.f32 %v110_v12, %v345_v15  ;;  %v265_v15 = vld [vmem:[%s398_s5 + $0x10] sm:$0xff] }
 0x11d   :  { %218 = vmatpush.bf16.msra.mxu1 %v265_v15 }
 0x11e   :  { %v115_v10 = vmul.f32 %v284_v1, %v114_v7  ;;  %v130_v22 = vadd.f32 %v270_v18, %v111_v16 }
 0x120   :  { %v116_v13 = vadd.f32 %v284_v1, %v115_v10 }
 0x121   :  { %219 = vmatpush.bf16.msra.mxu1 %v264_v26 }
 0x122   :  { %v120_v17 = vsel %vm119_vm13, %v284_v1, %v116_v13 }
 0x123   :  { %v125_v19 = vsel %vm122_vm14, %v124_v14, %v120_v17 }
 0x124   :  { %v126_v20 = vmul.f32 %v125_v19, %v349_v21  ;;  %v263_v21 = vld [vmem:[%s398_s5] sm:$0xff] }
 0x125   :  { %220 = vmatpush.bf16.msra.mxu1 %v263_v21 }
 0x126   :  { %v131_v23 = vadd.f32 %v270_v18, %v126_v20 }
 0x128   :  { %v132_v24 = vpack.c.bf16 %v131_v23, %v130_v22 }
 0x12a   :  { %243 = vmatmul.msk.bf16.vlgmr.msra.gmra.mxu0 %vm31_vm0, %v132_v24 }
 0x1a7   :  { %v165_v27 = vpop.f32.mrf.mxu0 }
 0x1a8   :  { %v166_v29 = vadd.f32 %v271_v28, %v165_v27 }
 0x1aa   :  { %v170_v32 = vmax.f32 %v166_v29, 0.0 }
 0x1af   :  { %v167_v30 = vpop.f32.mrf.mxu0 }
 0x1b0   :  { %v168_v31 = vadd.f32 %v271_v28, %v167_v30 }
 0x1b2   :  { %v171_v33 = vmax.f32 %v168_v31, 0.0 }
 0x1b4   :  { %v172_v34 = vpack.c.bf16 %v171_v33, %v170_v32 }
 0x1b6   :  { %260 = vmatmul.msk.bf16.vlgmr.msra.gmra.mxu1 %vm209_vm15, %v172_v34 }
 0x233   :  { %v222_v36 = vpop.f32.mrf.mxu1 }
 0x234   :  { %v223_v37 = vadd.f32 %v272_v35, %v222_v36 }
 0x236   :  { %v227_v38 = vadd.f32 %v223_v37, %v330_v0 }
 0x238   :  { %229 = vst.msk [vmem:[%s399_s7] sm:$0xff] %vm31_vm0, %v227_v38 }
 0x23b   :  { %v224_v39 = vpop.f32.mrf.mxu1 }
 0x23c   :  { %v225_v40 = vadd.f32 %v272_v35, %v224_v39 }
 0x23e   :  { %v228_v41 = vadd.f32 %v225_v40, %v337_v2 }
 0x240   :  { %230 = vst.msk [vmem:[%s399_s7 + $0x8] sm:$0xff] %vm31_vm0, %v228_v41 }

// kernel: mix_att_decoder.15
= control target key start
LH: loop header
LB: loop body
LE: loop exit
PB: predicated region body
PF: predicated region fallthrough
CT: control target
= control target key end

     0   :  { %vm27_vm0 = vcmask 261120   ;;  %v223_v4 = vmov 32.0   ;;  %v224_v24 = vmov 31.0   ;;  %vm170_vm15 = vcmask 257024   ;;  %s225_s8 = smov 96   ;;  %s305_s0 = inlined_call_operand.vmem [shape: f32[16,32], index: 0, kind: input, shape index: {}]   ;;  %s306_s1 = inlined_call_operand.vmem [shape: f32[1,32], index: 1, kind: input, shape index: {}]   ;;  %s307_s2 = inlined_call_operand.vmem [shape: f32[1,32], index: 2, kind: input, shape index: {}]   ;;  %s308_s4 = inlined_call_operand.vmem [shape: f32[1,96], index: 4, kind: input, shape index: {}]   ;;  %s309_s3 = inlined_call_operand.vmem [shape: bf16[32,96], index: 3, kind: input, shape index: {}]   ;;  %s310_s5 = inlined_call_operand.vmem [shape: bf16[16,32], index: 5, kind: output, shape index: {0}]   ;;  %s311_s6 = inlined_call_operand.vmem [shape: bf16[16,64], index: 6, kind: output, shape index: {1}]  }
   0x1   :  { %v23_v0 = vld [vmem:[%s305_s0] sm:$0xff]  ;;  %v24_v2 = vld [vmem:[%s305_s0 + $0x8] sm:$0xff]  ;;  %211 = vrcp.f32 %v223_v4 }
   0x2   :  { %v28_v1 = vsel %vm27_vm0, %v23_v0, 0.0  ;;  %v31_v3 = vsel %vm27_vm0, %v24_v2, 0.0  ;;  %v208_v12 = vld [vmem:[%s306_s1] ss:$0 sm:$0xff]  ;;  %213 = vrcp.f32 %v224_v24  ;;  %v204_v31 = vld [vmem:[%s309_s3 + $0x8] sm:$0xff] }
   0x3   :  { %29 = vadd.xlane.f32.xlu0 %v28_v1  ;;  %158 = vmatpush.bf16.msra.mxu0 %v204_v31  ;;  %v203_v33 = vld [vmem:[%s309_s3] sm:$0xff] }
   0x7   :  { %v212_v5 = vpop.eup %211  ;;  %159 = vmatpush.bf16.msra.mxu0 %v203_v33 }
   0x8   :  { %v35_v6 = vmul.f32 32.0, %v212_v5  ;;  %vm39_vm1 = vweird.f32 %v212_v5  ;;  %v214_v25 = vpop.eup %213 }
   0x9   :  { %v54_v26 = vmul.f32 31.0, %v214_v25  ;;  %vm58_vm2 = vweird.f32 %v214_v25 }
   0xa   :  { %v36_v7 = vsub.f32 1.0, %v35_v6 }
   0xb   :  { %32 = vadd.xlane.f32.xlu0 %v31_v3  ;;  %v55_v27 = vsub.f32 1.0, %v54_v26 }
   0xc   :  { %v37_v8 = vmul.f32 %v212_v5, %v36_v7 }
   0xd   :  { %v56_v28 = vmul.f32 %v214_v25, %v55_v27 }
   0xe   :  { %v38_v9 = vadd.f32 %v212_v5, %v37_v8 }
   0xf   :  { %v57_v29 = vadd.f32 %v214_v25, %v56_v28 }
  0x10   :  { %v40_v10 = vsel %vm39_vm1, %v212_v5, %v38_v9 }
  0x11   :  { %v59_v30 = vsel %vm58_vm2, %v214_v25, %v57_v29 }
  0x76   :  { %v30_v11 = vpop.xlane.xlu0 %29 }
  0x77   :  { %v41_v13 = vmul.f32 %v40_v10, %v30_v11 }
  0x79   :  { %v43_v14 = vsub.f32 %v23_v0, %v41_v13 }
  0x7b   :  { %v272_v15 = vmul.f32 %v208_v12, %v43_v14  ;;  %v45_v16 = vmul.f32 %v43_v14, %v43_v14 }
  0x7d   :  { %v47_v17 = vsel %vm27_vm0, %v45_v16, 0.0  ;;  %v209_v16 = vld [vmem:[%s307_s2] ss:$0 sm:$0xff] }
  0x7e   :  { %48 = vadd.xlane.f32.xlu1 %v47_v17  ;;  %v33_v18 = vpop.xlane.xlu0 %32 }
  0x7f   :  { %v42_v19 = vmul.f32 %v40_v10, %v33_v18 }
  0x81   :  { %v44_v20 = vsub.f32 %v24_v2, %v42_v19 }
  0x83   :  { %v275_v21 = vmul.f32 %v208_v12, %v44_v20  ;;  %v46_v22 = vmul.f32 %v44_v20, %v44_v20 }
  0x85   :  { %v50_v23 = vsel %vm27_vm0, %v46_v22, 0.0 }
  0x86   :  { %51 = vadd.xlane.f32.xlu1 %v50_v23  ;;  %v210_v23 = vld [vmem:[%s308_s4] ss:$0 sm:$0xff] }
  0xf1   :  { %v49_v32 = vpop.xlane.xlu1 %48 }
  0xf2   :  { %v60_v34 = vmul.f32 %v59_v30, %v49_v32 }
  0xf4   :  { %215 = vrsqrt.f32 %v60_v34  ;;  %vm74_vm3 = vcmp.eq.f32.partialorder %v60_v34, inf  ;;  %v77_v47 = vand.u32 2147483648, %v60_v34  ;;  %vm76_vm4 = vcmp.eq.f32.partialorder %v60_v34, 0.0 }
  0xf9   :  { %v52_v35 = vpop.xlane.xlu1 %51 }
  0xfa   :  { %v216_v36 = vpop.eup %215  ;;  %v61_v37 = vmul.f32 %v59_v30, %v52_v35 }
  0xfb   :  { %v68_v38 = vmul.f32 %v216_v36, %v60_v34 }
  0xfc   :  { %217 = vrsqrt.f32 %v61_v37  ;;  %vm86_vm5 = vcmp.eq.f32.partialorder %v61_v37, inf  ;;  %v89_v55 = vand.u32 2147483648, %v61_v37  ;;  %vm88_vm6 = vcmp.eq.f32.partialorder %v61_v37, 0.0 }
  0xfd   :  { %v69_v39 = vmul.f32 %v216_v36, %v68_v38 }
  0xff   :  { %v70_v40 = vmul.f32 0.5, %v69_v39 }
 0x101   :  { %v71_v41 = vsub.f32 1.5, %v70_v40 }
 0x102   :  { %v218_v42 = vpop.eup %217 }
 0x103   :  { %v72_v43 = vmul.f32 %v216_v36, %v71_v41  ;;  %v80_v44 = vmul.f32 %v218_v42, %v61_v37 }
 0x105   :  { %v73_v45 = vmul.f32 %v72_v43, %v60_v34  ;;  %v81_v46 = vmul.f32 %v218_v42, %v80_v44 }
 0x107   :  { %v75_v48 = vsel %vm74_vm3, %v60_v34, %v73_v45  ;;  %v82_v49 = vmul.f32 0.5, %v81_v46 }
 0x108   :  { %v78_v50 = vsel %vm76_vm4, %v77_v47, %v75_v48 }
 0x109   :  { %v83_v51 = vsub.f32 1.5, %v82_v49  ;;  %v91_v52 = vadd.f32 1e-06, %v78_v50 }
 0x10b   :  { %v84_v53 = vmul.f32 %v218_v42, %v83_v51  ;;  %219 = vrcp.f32 %v91_v52  ;;  %v104_v1 = vand.u32 2147483648, %v91_v52  ;;  %vm98_vm8 = vweird.f32 %v91_v52 }
 0x10c   :  { %v102_v2 = vand.u32 2147483647, %v91_v52 }
 0x10d   :  { %v85_v54 = vmul.f32 %v84_v53, %v61_v37  ;;  %v105_v6 = vor.u32 1.1754944e-38, %v104_v1 }
 0x10e   :  { %vm103_vm10 = vcmp.eq.f32.partialorder %v102_v2, 8.507059e+37 }
 0x10f   :  { %v87_v56 = vsel %vm86_vm5, %v61_v37, %v85_v54 }
 0x110   :  { %v90_v57 = vsel %vm88_vm6, %v89_v55, %v87_v56 }
 0x111   :  { %v220_v58 = vpop.eup %219  ;;  %v92_v59 = vadd.f32 1e-06, %v90_v57 }
 0x112   :  { %v94_v60 = vmul.f32 %v220_v58, %v91_v52  ;;  %vm99_vm7 = vweird.f32 %v220_v58 }
 0x113   :  { %221 = vrcp.f32 %v92_v59  ;;  %vm100_vm9 = vmor %vm98_vm8, %vm99_vm7  ;;  %v119_v7 = vand.u32 2147483648, %v92_v59  ;;  %v117_v9 = vand.u32 2147483647, %v92_v59  ;;  %vm113_vm12 = vweird.f32 %v92_v59 }
 0x114   :  { %v95_v61 = vsub.f32 1.0, %v94_v60 }
 0x115   :  { %v120_v12 = vor.u32 1.1754944e-38, %v119_v7  ;;  %vm118_vm14 = vcmp.eq.f32.partialorder %v117_v9, 8.507059e+37 }
 0x116   :  { %v96_v62 = vmul.f32 %v220_v58, %v95_v61 }
 0x118   :  { %v97_v63 = vadd.f32 %v220_v58, %v96_v62 }
 0x119   :  { %v222_v0 = vpop.eup %221 }
 0x11a   :  { %v109_v3 = vmul.f32 %v222_v0, %v92_v59  ;;  %v101_v4 = vsel %vm100_vm9, %v220_v58, %v97_v63  ;;  %vm114_vm11 = vweird.f32 %v222_v0 }
 0x11b   :  { %v106_v10 = vsel %vm103_vm10, %v105_v6, %v101_v4  ;;  %vm115_vm13 = vmor %vm113_vm12, %vm114_vm11 }
 0x11c   :  { %v110_v5 = vsub.f32 1.0, %v109_v3  ;;  %v107_v13 = vmul.f32 %v106_v10, %v272_v15 }
 0x11e   :  { %v111_v8 = vmul.f32 %v222_v0, %v110_v5  ;;  %v126_v19 = vadd.f32 %v209_v16, %v107_v13 }
 0x120   :  { %v112_v11 = vadd.f32 %v222_v0, %v111_v8 }
 0x122   :  { %v116_v14 = vsel %vm115_vm13, %v222_v0, %v112_v11 }
 0x123   :  { %v121_v17 = vsel %vm118_vm14, %v120_v12, %v116_v14 }
 0x124   :  { %v122_v18 = vmul.f32 %v121_v17, %v275_v21 }
 0x126   :  { %v127_v20 = vadd.f32 %v209_v16, %v122_v18 }
 0x128   :  { %v128_v22 = vpack.c.bf16 %v127_v20, %v126_v19 }
 0x12a   :  { %202 = vmatmul.msk.bf16.vlgmr.msra.gmra.mxu0 %vm27_vm0, %v128_v22  ;;  %vm183_vm0 = vcmask 519168  }
 0x1a7   :  { %v161_v24 = vpop.f32.mrf.mxu0 }
 0x1a8   :  { %v162_v15 = vadd.f32 %v210_v23, %v161_v24 }
 0x1aa   :  { %v166_v25 = vmul.f32 0.35355338, %v162_v15  ;;  %v173_v26 = vpack.c.bf16 %v162_v15, %v162_v15 }
 0x1ac   :  { %v168_v27 = vpack.c.bf16 %v166_v25, %v166_v25  ;;  %177 = vrot.lane.b32.xlu2 %v173_v26, %s225_s8 }
 0x1ae   :  { %171 = vst.msk [vmem:[%s310_s5] sm:$0xf] %vm170_vm15, %v168_v27 }
 0x1af   :  { %v163_v21 = vpop.f32.mrf.mxu0 }
 0x1b0   :  { %v164_v28 = vadd.f32 %v210_v23, %v163_v21 }
 0x1b2   :  { %v167_v29 = vmul.f32 0.35355338, %v164_v28  ;;  %v174_v30 = vpack.c.bf16 %v164_v28, %v164_v28 }
 0x1b4   :  { %v169_v31 = vpack.c.bf16 %v167_v29, %v167_v29  ;;  %179 = vrot.lane.b32.xlu2 %v174_v30, %s225_s8 }
 0x1b6   :  { %172 = vst.msk [vmem:[%s310_s5 + $0x4] sm:$0xf] %vm170_vm15, %v169_v31 }
 0x206   :  { %v178_v32 = vpop.permute.xlu2 %177 }
 0x207   :  { %184 = vst.msk [vmem:[%s311_s6] sm:$0xf] %vm183_vm0, %v178_v32 }
 0x20e   :  { %v180_v33 = vpop.permute.xlu2 %179 }
 0x20f   :  { %185 = vst.msk [vmem:[%s311_s6 + $0x4] sm:$0xf] %vm183_vm0, %v180_v33 }

// kernel: mix_att_decoder.16
= control target key start
LH: loop header
LB: loop body
LE: loop exit
PB: predicated region body
PF: predicated region fallthrough
CT: control target
= control target key end

     0   :  { %s1260_s17 = smov 0   ;;  %s1262_s18 = smov 0   ;;  %s1382_s0 = inlined_call_operand.vmem [shape: bf16[2,8,32], index: 0, kind: input, shape index: {}]   ;;  %s1383_s1 = inlined_call_operand.vmem [shape: bf16[2,8,64], index: 1, kind: input, shape index: {}]   ;;  %s1384_s2 = inlined_call_operand.vmem [shape: s8[2,8,8], index: 2, kind: input, shape index: {}]   ;;  %s1385_s3 = inlined_call_operand.vmem [shape: f32[2,8,32], index: 3, kind: input, shape index: {}]   ;;  %s1386_s4 = inlined_call_operand.vmem [shape: bf16[32,32], index: 4, kind: input, shape index: {}]   ;;  %s1387_s5 = inlined_call_operand.vmem [shape: f32[1,32], index: 5, kind: input, shape index: {}]   ;;  %s1388_s6 = inlined_call_operand.vmem [shape: f32[1,32], index: 6, kind: input, shape index: {}]   ;;  %s1389_s7 = inlined_call_operand.vmem [shape: f32[1,32], index: 7, kind: input, shape index: {}]   ;;  %s1390_s8 = inlined_call_operand.vmem [shape: bf16[32,32], index: 8, kind: input, shape index: {}]   ;;  %s1391_s9 = inlined_call_operand.vmem [shape: f32[1,32], index: 9, kind: input, shape index: {}]   ;;  %s1392_s10 = inlined_call_operand.vmem [shape: f32[2,8,32], index: 10, kind: output, shape index: {0}]   ;;  %s1393_s11 = inlined_call_operand.vmem [shape: bf16[2,8,32], index: 11, kind: output, shape index: {1}]  }
   0x1   :  { %s1264_s19 = smov 0  }
   0x2 LB: > { %s34_s20 = sadd.s32 1, %s1181_s18  ;;  %p1059_p0 = scmp.ge.s32.totalorder %s1185_s19, 1  ;;  %s1185_s19 = sphi %s1264_s19, %s22_s19   ;;  %s1181_s18 = sphi %s1262_s18, %s1395_s18   ;;  %s1177_s17 = sphi %s1260_s17, %s1394_s17  }
   0x3   : > { %p36_p1 = scmp.ge.s32.totalorder %s34_s20, 2  ;;  %p392_p2 = scmp.lt.s32.totalorder %s1185_s19, 3 }
   0x5   : > { %s1397_s20 = smov (%p36_p1, %s34_s20), 0  ;;  %p393_p3 = pnand %p1059_p0, %p392_p2 }
   0x6   : > { %p458_p4 = scmp.lt.s32.totalorder (!%p393_p3), %s1177_s17, 1  ;;  %s1187_s28 = smov (!%p393_p3), 96  }
   0x7   : > { %396 = sbr.rel (%p393_p3) target bundleno = 1640 (0x668), region = 60  ;;  %s1188_s29 = smov (!%p393_p3), 112  }
   0x8   : > { %s1189_s30 = smov (!%p393_p3), 104   ;;  %s1191_s16 = smov (!%p393_p3), 120  }
   0x9   : > { %s1192_s22 = smov (!%p393_p3), 88   ;;  %s1193_s23 = smov (!%p393_p3), 80  }
   0xa   : > { %s1195_s25 = smov (!%p393_p3), 8   ;;  %s1196_s26 = smov (!%p393_p3), 24  }
   0xc   : > { %s1399_s17 = smov (!%p458_p4, %s1177_s17), 1  ;;  %vm506_vm0 = vcmask 64512   ;;  %v1190_v10 = vmov 0.0   ;;  %vm546_vm2 = vcmask 1043456   ;;  %vm756_vm3 = vcmask 130048  }
   0xd   : > { %s1281_s21 = sshll.u32 %s1399_s17, 2  ;;  %s1062_s12 = sshll.u32 %s1399_s17, 1  ;;  %vm759_vm4 = vcmask 195584   ;;  %vm774_vm5 = vcmask 261120   ;;  %vm899_vm14 = vcmask 257024  }
   0xe   : > { %s468_s24 = scalar_lea.vmem %s1383_s1, %s1281_s21  ;;  %s464_s27 = scalar_lea.vmem %s1382_s0, %s1281_s21 }
   0xf   : > { %v501_v0 = vld [vmem:[%s468_s24] sm:$0xf]  ;;  %s472_s15 = scalar_lea.vmem %s1384_s2, %s1062_s12  ;;  %s1194_s24 = smov 72  }
  0x10   : > { %v511_v1 = vsel %vm506_vm0, %v501_v0, 0  ;;  %v500_v2 = vld [vmem:[%s464_s27] sm:$0xf]  ;;  %v539_v3 = vunpack.c.l.b16 %v501_v0  ;;  %s1197_s27 = smov 16   ;;  %s1063_s13 = sshll.u32 %s1399_s17, 3 }
  0x11   : > { %520 = vmatpush.bf16.xpose.msra.mxu0 %v511_v1  ;;  %v565_v5 = vunpack.c.l.b16 %v500_v2  ;;  %v495_v7 = vld [vmem:[%s472_s15] sm:$0x3] }
  0x12   : > { %v1293_v4 = vpack.c.b16 %v539_v3, %v539_v3  ;;  %v496_v8 = vunpack.c.0.s8 %v495_v7 }
  0x13   : > { %v566_v6 = vpack.c.b16 %v565_v5, %v565_v5 }
  0x14   : > { %541 = vrot.lane.b32.xlu2 %v1293_v4, %s1187_s28  ;;  %v497_v9 = vcvt.s32.f32 %v496_v8 }
  0x16   : > { %vm498_vm1 = vcmp.eq.f32.partialorder %v497_v9, 0.0 }
  0x17   : > { %v499_v11 = vsel %vm498_vm1, -1e+09, %v1190_v10 }
  0x18   : > { %1066 = vmatmul.msk.bf16.vlgmr.msra.gmra.mxu0 %vm506_vm0, %v500_v2 }
  0x1c   : > { %626 = vrot.lane.b32.xlu2 %v1293_v4, %s1188_s29 }
  0x24   : > { %683 = vrot.lane.b32.xlu2 %v1293_v4, %s1189_s30 }
  0x2c   : > { %624 = vrot.lane.b32.xlu2 %v566_v6, %s1188_s29 }
  0x6e   : > { %v542_v16 = vpop.permute.xlu2 %541 }
  0x6f   : > { %v548_v27 = vsel %vm546_vm2, %v542_v16, 0 }
  0x70   : > { %557 = vmatpush.bf16.msra.mxu1 %v548_v27 }
  0x76   : > { %v627_v17 = vpop.permute.xlu2 %626 }
  0x77   : > { %v632_v28 = vsel %vm506_vm0, %v627_v17, 0 }
  0x78   : > { %641 = vmatpush.bf16.xpose.msrb.mxu1 %v632_v28 }
  0x7e   : > { %v684_v21 = vpop.permute.xlu2 %683 }
  0x7f   : > { %v689_v22 = vsel %vm506_vm0, %v684_v21, 0 }
  0x80   : > { %698 = vmatpush.bf16.xpose.msrb.mxu0 %v689_v22 }
  0x86   : > { %v625_v35 = vpop.permute.xlu2 %624 }
  0x95   : > { %v522_v12 = vpop.f32.mrf.mxu0 }
  0x96   : > { %v523_v13 = vadd.f32 %v522_v12, %v499_v11 }
  0x98   : > { %v526_v14 = vsel %vm506_vm0, %v523_v13, -inf }
  0x99   : > { %527 = vmax.xlane.f32.xlu0 %v526_v14 }
  0x9d   : > { %v524_v15 = vpop.f32.mrf.mxu0 }
  0xad   : > { %569 = vrot.lane.b32.xlu0 %v1293_v4, %s1191_s16 }
  0xb5   : > { %681 = vrot.lane.b32.xlu0 %v566_v6, %s1189_s30 }
 0x10c   : > { %v528_v18 = vpop.xlane.xlu0 %527 }
 0x10d   : > { %v529_v19 = vsub.f32 %v523_v13, %v528_v18 }
 0x10f   : > { %v530_v20 = vmul.f32 1.442695, %v529_v19 }
 0x111   : > { %1139 = vpow2.f32 %v530_v20 }
 0x117   : > { %v1140_v23 = vpop.eup %1139 }
 0x118   : > { %v532_v24 = vsel %vm506_vm0, %v1140_v23, 0.0 }
 0x119   : > { %533 = vadd.xlane.f32.xlu1 %v532_v24 }
 0x11f   : > { %v570_v25 = vpop.permute.xlu0 %569 }
 0x120   : > { %v575_v29 = vsel %vm506_vm0, %v570_v25, 0 }
 0x121   : > { %584 = vmatpush.bf16.xpose.msra.mxu2 %v575_v29 }
 0x127   : > { %v682_v26 = vpop.permute.xlu0 %681 }
 0x128   : > { %1072 = vmatmul.msk.bf16.vlgmr.msrb.gmra.mxu0 %vm506_vm0, %v682_v26 }
 0x132   : > { %567 = vrot.lane.b32.xlu1 %v566_v6, %s1191_s16  ;;  %s479_s16 = scalar_lea.vmem %s1385_s3, %s1063_s13 }
 0x18c   : > { %v534_v30 = vpop.xlane.xlu1 %533 }
 0x18d   : > { %1141 = vrcp.f32 %v534_v30 }
 0x193   : > { %v1142_v31 = vpop.eup %1141 }
 0x194   : > { %v536_v32 = vmul.f32 %v1142_v31, %v1140_v23 }
 0x196   : > { %v537_v33 = vpack.c.bf16 %v536_v32, %v536_v32 }
 0x198   : > { %1067 = vmatmul.msk.bf16.vlgmr.msra.gmra.mxu1 %vm506_vm0, %v537_v33 }
 0x1a4   : > { %v568_v34 = vpop.permute.xlu1 %567 }
 0x1a5   : > { %1068 = vmatmul.msk.bf16.vlgmr.msra.gmra.mxu2 %vm506_vm0, %v568_v34  ;;  %v700_v36 = vpop.f32.mrf.mxu0  ;;  %v1095_v34 = vld [vmem:[%s1386_s4 + $0x8] sm:$0xff] }
 0x1a6   : > { %v701_v37 = vadd.f32 %v700_v36, %v499_v11  ;;  %783 = vmatpush.bf16.msra.mxu1 %v1095_v34 }
 0x1a8   : > { %1070 = vmatmul.msk.bf16.vlgmr.msrb.gmra.mxu1 %vm506_vm0, %v625_v35  ;;  %v704_v38 = vsel %vm506_vm0, %v701_v37, -inf  ;;  %v1094_v35 = vld [vmem:[%s1386_s4] sm:$0xff] }
 0x1a9   : > { %705 = vmax.xlane.f32.xlu0 %v704_v38 }
 0x1aa   : > { %784 = vmatpush.bf16.msra.mxu1 %v1094_v35 }
 0x1ad   : > { %v702_v39 = vpop.f32.mrf.mxu0 }
 0x215   : > { %v1314_v40 = vpop.f32.mrf.mxu1 }
 0x21c   : > { %v706_v52 = vpop.xlane.xlu0 %705 }
 0x21d   : > { %v561_v41 = vpop.f32.mrf.mxu1  ;;  %v707_v56 = vsub.f32 %v701_v37, %v706_v52  ;;  %v563_v37 = vpack.c.bf16 %v1314_v40, %v1314_v40  ;;  %v1135_v40 = vld [vmem:[%s1387_s5] ss:$0 sm:$0xff] }
 0x21f   : > { %v708_v58 = vmul.f32 1.442695, %v707_v56 }
 0x225   : > { %v643_v42 = vpop.f32.mrf.mxu1 }
 0x226   : > { %v644_v43 = vadd.f32 %v643_v42, %v499_v11 }
 0x228   : > { %v586_v44 = vpop.f32.mrf.mxu2  ;;  %v647_v45 = vsel %vm506_vm0, %v644_v43, -inf }
 0x229   : > { %v587_v46 = vadd.f32 %v586_v44, %v499_v11  ;;  %648 = vmax.xlane.f32.xlu1 %v647_v45  ;;  %v790_v44 = vld [vmem:[%s479_s16] sm:$0xff] }
 0x22b   : > { %v590_v47 = vsel %vm506_vm0, %v587_v46, -inf }
 0x22c   : > { %591 = vmax.xlane.f32.xlu2 %v590_v47 }
 0x22d   : > { %v645_v48 = vpop.f32.mrf.mxu1 }
 0x230   : > { %v588_v49 = vpop.f32.mrf.mxu2 }
 0x242   : > { %602 = vrot.lane.b32.xlu1 %v1293_v4, %s1192_s22 }
 0x29c   : > { %v649_v50 = vpop.xlane.xlu1 %648 }
 0x29d   : > { %v650_v51 = vsub.f32 %v644_v43, %v649_v50  ;;  %v1198_v50 = vmov 32.0  }
 0x29f   : > { %v651_v53 = vmul.f32 1.442695, %v650_v51  ;;  %v592_v54 = vpop.xlane.xlu2 %591 }
 0x2a0   : > { %v593_v55 = vsub.f32 %v587_v46, %v592_v54 }
 0x2a1   : > { %1143 = vpow2.f32 %v651_v53 }
 0x2a2   : > { %v594_v57 = vmul.f32 1.442695, %v593_v55 }
 0x2a4   : > { %1145 = vpow2.f32 %v594_v57 }
 0x2a5   : > { %1147 = vpow2.f32 %v708_v58 }
 0x2a7   : > { %v1144_v59 = vpop.eup %1143 }
 0x2a8   : > { %v653_v60 = vsel %vm506_vm0, %v1144_v59, 0.0 }
 0x2a9   : > { %654 = vadd.xlane.f32.xlu0 %v653_v60 }
 0x2aa   : > { %v1146_v61 = vpop.eup %1145 }
 0x2ab   : > { %v596_v62 = vsel %vm506_vm0, %v1146_v61, 0.0  ;;  %v1148_v63 = vpop.eup %1147 }
 0x2ac   : > { %597 = vadd.xlane.f32.xlu2 %v596_v62  ;;  %v710_v0 = vsel %vm506_vm0, %v1148_v63, 0.0  ;;  %v1199_v62 = vmov 31.0  }
 0x2b4   : > { %711 = vadd.xlane.f32.xlu2 %v710_v0  ;;  %v603_v1 = vpop.permute.xlu1 %602 }
 0x2b5   : > { %v608_v2 = vsel %vm546_vm2, %v603_v1, 0 }
 0x2b6   : > { %617 = vmatpush.bf16.msra.mxu3 %v608_v2 }
 0x2bd   : > { %659 = vrot.lane.b32.xlu0 %v1293_v4, %s1193_s23 }
 0x2cc   : > { %716 = vrot.lane.b32.xlu2 %v1293_v4, %s1194_s24  ;;  %s493_s24 = scalar_lea.vmem %s1393_s11, %s1281_s21 }
 0x31c   : > { %v655_v6 = vpop.xlane.xlu0 %654 }
 0x31f   : > { %v598_v3 = vpop.xlane.xlu2 %597 }
 0x320   : > { %1149 = vrcp.f32 %v598_v3 }
 0x326   : > { %v1150_v5 = vpop.eup %1149 }
 0x327   : > { %v712_v7 = vpop.xlane.xlu2 %711  ;;  %v600_v8 = vmul.f32 %v1150_v5, %v1146_v61  ;;  %v1097_v5 = vld [vmem:[%s1390_s8 + $0x8] sm:$0xff] }
 0x328   : > { %1151 = vrcp.f32 %v712_v7 }
 0x329   : > { %v601_v9 = vpack.c.bf16 %v600_v8, %v600_v8  ;;  %1153 = vrcp.f32 %v655_v6  ;;  %v1096_v6 = vld [vmem:[%s1390_s8] sm:$0xff] }
 0x32a   : > { %1155 = vrcp.f32 %v1198_v50 }
 0x32b   : > { %1069 = vmatmul.msk.bf16.vlgmr.msra.gmra.mxu3 %vm506_vm0, %v601_v9  ;;  %1157 = vrcp.f32 %v1199_v62 }
 0x32e   : > { %v1152_v10 = vpop.eup %1151 }
 0x32f   : > { %v714_v11 = vmul.f32 %v1152_v10, %v1148_v63  ;;  %v717_v12 = vpop.permute.xlu2 %716  ;;  %v660_v13 = vpop.permute.xlu0 %659 }
 0x330   : > { %v665_v4 = vsel %vm546_vm2, %v660_v13, 0  ;;  %v722_v14 = vsel %vm546_vm2, %v717_v12, 0  ;;  %v1154_v16 = vpop.eup %1153 }
 0x331   : > { %674 = vmatpush.bf16.msrb.mxu3 %v665_v4  ;;  %731 = vmatpush.bf16.msrb.mxu2 %v722_v14  ;;  %v715_v15 = vpack.c.bf16 %v714_v11, %v714_v11  ;;  %v657_v17 = vmul.f32 %v1154_v16, %v1144_v59  ;;  %v1156_v51 = vpop.eup %1155 }
 0x332   : > { %v804_v52 = vmul.f32 32.0, %v1156_v51  ;;  %vm808_vm6 = vweird.f32 %v1156_v51  ;;  %v1158_v63 = vpop.eup %1157 }
 0x333   : > { %v658_v18 = vpack.c.bf16 %v657_v17, %v657_v17  ;;  %v817_v0 = vmul.f32 31.0, %v1158_v63  ;;  %vm821_vm7 = vweird.f32 %v1158_v63 }
 0x334   : > { %1073 = vmatmul.msk.bf16.vlgmr.msrb.gmra.mxu2 %vm506_vm0, %v715_v15  ;;  %v805_v53 = vsub.f32 1.0, %v804_v52 }
 0x335   : > { %v818_v1 = vsub.f32 1.0, %v817_v0  ;;  %890 = vmatpush.bf16.msra.mxu3 %v1097_v5 }
 0x336   : > { %v806_v54 = vmul.f32 %v1156_v51, %v805_v53 }
 0x337   : > { %v819_v2 = vmul.f32 %v1158_v63, %v818_v1 }
 0x338   : > { %v807_v55 = vadd.f32 %v1156_v51, %v806_v54 }
 0x339   : > { %v820_v3 = vadd.f32 %v1158_v63, %v819_v2  ;;  %891 = vmatpush.bf16.msra.mxu3 %v1096_v6 }
 0x33a   : > { %v809_v56 = vsel %vm808_vm6, %v1156_v51, %v807_v55 }
 0x33b   : > { %1071 = vmatmul.msk.bf16.vlgmr.msrb.gmra.mxu3 %vm506_vm0, %v658_v18  ;;  %v822_v7 = vsel %vm821_vm7, %v1158_v63, %v820_v3 }
 0x3ae   : > { %v619_v19 = vpop.f32.mrf.mxu3 }
 0x3af   : > { %v623_v20 = vpack.c.bf16 %v619_v19, %v619_v19 }
 0x3b1   : > { %v739_v21 = vunpack.c.l.b16 %v623_v20 }
 0x3b3   : > { %v740_v22 = vpack.c.b16 %v739_v21, %v739_v21 }
 0x3b5   : > { %741 = vrot.lane.b32.xlu1 %v740_v22, %s1195_s25 }
 0x3b6   : > { %v621_v23 = vpop.f32.mrf.mxu3 }
 0x3b7   : > { %v733_v24 = vpop.f32.mrf.mxu2 }
 0x3b8   : > { %v737_v25 = vpack.c.bf16 %v733_v24, %v733_v24  ;;  %v1136_v24 = vld [vmem:[%s1388_s6] ss:$0 sm:$0xff] }
 0x3ba   : > { %v749_v26 = vunpack.c.l.b16 %v737_v25 }
 0x3bc   : > { %v750_v27 = vpack.c.b16 %v749_v26, %v749_v26 }
 0x3be   : > { %751 = vrot.lane.b32.xlu1 %v750_v27, %s1196_s26  ;;  %v676_v28 = vpop.f32.mrf.mxu3  ;;  %s486_s26 = scalar_lea.vmem %s1392_s10, %s1063_s13 }
 0x3bf   : > { %v680_v29 = vpack.c.bf16 %v676_v28, %v676_v28  ;;  %v735_v30 = vpop.f32.mrf.mxu2 }
 0x3c1   : > { %v744_v31 = vunpack.c.l.b16 %v680_v29 }
 0x3c3   : > { %v745_v32 = vpack.c.b16 %v744_v31, %v744_v31  ;;  %v1137_v31 = vld [vmem:[%s1389_s7] ss:$0 sm:$0xff] }
 0x3c5   : > { %746 = vrot.lane.b32.xlu0 %v745_v32, %s1197_s27 }
 0x3c6   : > { %v678_v33 = vpop.f32.mrf.mxu3 }
 0x427   : > { %v742_v36 = vpop.permute.xlu1 %741 }
 0x428   : > { %v755_v38 = vsel %vm506_vm0, %v563_v37, %v742_v36  ;;  %v1138_v36 = vld [vmem:[%s1391_s9] ss:$0 sm:$0xff] }
 0x430   : > { %v752_v41 = vpop.permute.xlu1 %751 }
 0x437   : > { %v747_v39 = vpop.permute.xlu0 %746 }
 0x438   : > { %v758_v42 = vsel %vm756_vm3, %v755_v38, %v747_v39 }
 0x439   : > { %v761_v43 = vsel %vm759_vm4, %v758_v42, %v752_v41 }
 0x43a   : > { %1082 = vmatmul.msk.bf16.vlgmr.msra.gmra.mxu1 %vm774_vm5, %v761_v43 }
 0x4b7   : > { %v786_v45 = vpop.f32.mrf.mxu1 }
 0x4b8   : > { %v791_v46 = vadd.f32 %v790_v44, %v786_v45 }
 0x4ba   : > { %v796_v47 = vadd.f32 %v1135_v40, %v791_v46 }
 0x4bc   : > { %797 = vst.msk [vmem:[%s486_s26] sm:$0xff] %vm774_vm5, %v796_v47  ;;  %v800_v48 = vsel %vm774_vm5, %v796_v47, 0.0 }
 0x4bd   : > { %801 = vadd.xlane.f32.xlu2 %v800_v48 }
 0x4bf   : > { %v788_v49 = vpop.f32.mrf.mxu1 }
 0x530   : > { %v802_v57 = vpop.xlane.xlu2 %801 }
 0x531   : > { %v810_v58 = vmul.f32 %v809_v56, %v802_v57 }
 0x533   : > { %v811_v59 = vsub.f32 %v796_v47, %v810_v58 }
 0x535   : > { %v812_v60 = vmul.f32 %v811_v59, %v811_v59  ;;  %v827_v29 = vmul.f32 %v1136_v24, %v811_v59 }
 0x537   : > { %v813_v61 = vsel %vm774_vm5, %v812_v60, 0.0 }
 0x538   : > { %814 = vadd.xlane.f32.xlu0 %v813_v61 }
 0x5ab   : > { %v815_v8 = vpop.xlane.xlu0 %814 }
 0x5ac   : > { %v823_v9 = vmul.f32 %v822_v7, %v815_v8 }
 0x5ae   : > { %1159 = vrsqrt.f32 %v823_v9  ;;  %vm835_vm8 = vcmp.eq.f32.partialorder %v823_v9, inf  ;;  %v838_v16 = vand.u32 2147483648, %v823_v9  ;;  %vm837_vm9 = vcmp.eq.f32.partialorder %v823_v9, 0.0 }
 0x5b4   : > { %v1160_v10 = vpop.eup %1159 }
 0x5b5   : > { %v829_v11 = vmul.f32 %v1160_v10, %v823_v9 }
 0x5b7   : > { %v830_v12 = vmul.f32 %v1160_v10, %v829_v11 }
 0x5b9   : > { %v831_v13 = vmul.f32 0.5, %v830_v12 }
 0x5bb   : > { %v832_v4 = vsub.f32 1.5, %v831_v13 }
 0x5bd   : > { %v833_v14 = vmul.f32 %v1160_v10, %v832_v4 }
 0x5bf   : > { %v834_v15 = vmul.f32 %v833_v14, %v823_v9 }
 0x5c1   : > { %v836_v17 = vsel %vm835_vm8, %v823_v9, %v834_v15 }
 0x5c2   : > { %v839_v18 = vsel %vm837_vm9, %v838_v16, %v836_v17 }
 0x5c3   : > { %v840_v19 = vadd.f32 1e-06, %v839_v18 }
 0x5c5   : > { %1161 = vrcp.f32 %v840_v19  ;;  %v852_v23 = vand.u32 2147483648, %v840_v19  ;;  %v850_v26 = vand.u32 2147483647, %v840_v19  ;;  %vm846_vm11 = vweird.f32 %v840_v19 }
 0x5c7   : > { %v853_v28 = vor.u32 1.1754944e-38, %v852_v23  ;;  %vm851_vm13 = vcmp.eq.f32.partialorder %v850_v26, 8.507059e+37 }
 0x5cb   : > { %v1162_v20 = vpop.eup %1161 }
 0x5cc   : > { %v842_v21 = vmul.f32 %v1162_v20, %v840_v19  ;;  %vm847_vm10 = vweird.f32 %v1162_v20 }
 0x5cd   : > { %vm848_vm12 = vmor %vm846_vm11, %vm847_vm10 }
 0x5ce   : > { %v843_v22 = vsub.f32 1.0, %v842_v21 }
 0x5d0   : > { %v844_v25 = vmul.f32 %v1162_v20, %v843_v22 }
 0x5d2   : > { %v845_v27 = vadd.f32 %v1162_v20, %v844_v25 }
 0x5d4   : > { %v849_v30 = vsel %vm848_vm12, %v1162_v20, %v845_v27 }
 0x5d5   : > { %v854_v32 = vsel %vm851_vm13, %v853_v28, %v849_v30 }
 0x5d6   : > { %v855_v33 = vmul.f32 %v854_v32, %v827_v29 }
 0x5d8   : > { %v859_v34 = vadd.f32 %v1137_v31, %v855_v33 }
 0x5da   : > { %v860_v35 = vpack.c.bf16 %v859_v34, %v859_v34 }
 0x5dc   : > { %1091 = vmatmul.msk.bf16.vlgmr.msra.gmra.mxu3 %vm774_vm5, %v860_v35 }
 0x65f   : > { %v893_v37 = vpop.f32.mrf.mxu3 }
 0x660   : > { %v894_v38 = vadd.f32 %v1138_v36, %v893_v37 }
 0x662   : > { %v897_v39 = vmul.f32 0.35355338, %v894_v38 }
 0x664   : > { %v898_v41 = vpack.c.bf16 %v897_v39, %v897_v39 }
 0x666   : > { %900 = vst.msk [vmem:[%s493_s24] sm:$0xf] %vm899_vm14, %v898_v41 }
 0x667   : > { %v895_v42 = vpop.f32.mrf.mxu3 }
 0x668 PF: > { %s22_s19 = sadd.s32 1, %s1185_s19   ;;  %s1394_s17 = smov %s1181_s18 }
 0x669   : > { %p19_p5 = scmp.ge.s32.totalorder %s22_s19, 4   ;;  %s1395_s18 = smov %s1397_s20 }
 0x66b   :  { %21 = sbr.rel (!%p19_p5) target bundleno = 2 (0x2), region = 111 }

// kernel: mix_att_decoder.19
= control target key start
LH: loop header
LB: loop body
LE: loop exit
PB: predicated region body
PF: predicated region fallthrough
CT: control target
= control target key end

     0   :  { %vm38_vm0 = vcmask 261120   ;;  %s581_s0 = inlined_call_operand.vmem [shape: f32[16,32], index: 0, kind: input, shape index: {}]   ;;  %s582_s1 = inlined_call_operand.vmem [shape: f32[1,32], index: 1, kind: input, shape index: {}]   ;;  %s583_s2 = inlined_call_operand.vmem [shape: f32[1,32], index: 2, kind: input, shape index: {}]   ;;  %s584_s3 = inlined_call_operand.vmem [shape: bf16[32,64], index: 3, kind: input, shape index: {}]   ;;  %s585_s4 = inlined_call_operand.vmem [shape: f32[1,64], index: 4, kind: input, shape index: {}]   ;;  %s586_s5 = inlined_call_operand.vmem [shape: bf16[64,32], index: 5, kind: input, shape index: {}]   ;;  %s587_s6 = inlined_call_operand.vmem [shape: f32[1,32], index: 6, kind: input, shape index: {}]   ;;  %s588_s7 = inlined_call_operand.vmem [shape: f32[1,32], index: 7, kind: input, shape index: {}]   ;;  %s589_s8 = inlined_call_operand.vmem [shape: f32[1,32], index: 8, kind: input, shape index: {}]   ;;  %s590_s9 = inlined_call_operand.hbm [shape: f32[16,32], index: 9, kind: output, shape index: {}]  }
   0x1   :  { %v491_v0 = vld [vmem:[%s581_s0] sm:$0xff] }
   0x2   :  { %v39_v1 = vsel %vm38_vm0, %v491_v0, 0.0 }
   0x3   :  { %40 = vadd.xlane.f32.xlu0 %v39_v1 }
   0x4   :  { %14 = vsyncpa [#allocation3], 0  ;;  %v498_v2 = vld [vmem:[%s581_s0 + $0x8] sm:$0xff]  ;;  %v433_v4 = vmov 32.0   ;;  %v434_v21 = vmov 31.0   ;;  %v370_v30 = vld [vmem:[%s584_s3] sm:$0xff] }
   0x5   :  { %v42_v3 = vsel %vm38_vm0, %v498_v2, 0.0  ;;  %387 = vrcp.f32 %v433_v4  ;;  %v371_v28 = vld [vmem:[%s584_s3 + $0x8] sm:$0xff]  ;;  %vm216_vm15 = vcmask 523264   ;;  %s332_s11 = sshll.u32 %s590_s9, 4  ;;  %s436_s12 = smov 128   ;;  %s333_s11 = int_to_ptr.hbm [resolvable:$true] %s332_s11 }
   0x6   :  { %389 = vrcp.f32 %v434_v21  ;;  %169 = vmatpush.bf16.msra.mxu0 %v371_v28  ;;  %v372_v28 = vld [vmem:[%s586_s5] sm:$0xff]  ;;  %s437_s0 = smov 8  }
   0xa   :  { %170 = vmatpush.bf16.msra.mxu0 %v370_v30  ;;  %v383_v30 = vld [vmem:[%s585_s4] ss:$0 sm:$0xff] }
   0xb   :  { %43 = vadd.xlane.f32.xlu0 %v42_v3  ;;  %v388_v5 = vpop.eup %387  ;;  %v381_v3 = vld [vmem:[%s582_s1] ss:$0 sm:$0xff] }
   0xc   :  { %v46_v6 = vmul.f32 32.0, %v388_v5  ;;  %vm50_vm1 = vweird.f32 %v388_v5  ;;  %v390_v22 = vpop.eup %389 }
   0xd   :  { %v65_v23 = vmul.f32 31.0, %v390_v22  ;;  %vm69_vm2 = vweird.f32 %v390_v22 }
   0xe   :  { %v47_v7 = vsub.f32 1.0, %v46_v6 }
   0xf   :  { %v66_v24 = vsub.f32 1.0, %v65_v23 }
  0x10   :  { %v48_v8 = vmul.f32 %v388_v5, %v47_v7 }
  0x11   :  { %v67_v25 = vmul.f32 %v390_v22, %v66_v24 }
  0x12   :  { %v49_v9 = vadd.f32 %v388_v5, %v48_v8 }
  0x13   :  { %v68_v26 = vadd.f32 %v390_v22, %v67_v25 }
  0x14   :  { %v502_v10 = vsel %vm50_vm1, %v388_v5, %v49_v9 }
  0x15   :  { %v518_v27 = vsel %vm69_vm2, %v390_v22, %v68_v26  ;;  %v373_v26 = vld [vmem:[%s586_s5 + $0x8] sm:$0xff] }
  0x76   :  { %v41_v11 = vpop.xlane.xlu0 %40 }
  0x77   :  { %v52_v12 = vmul.f32 %v502_v10, %v41_v11 }
  0x79   :  { %v506_v13 = vsub.f32 %v491_v0, %v52_v12 }
  0x7b   :  { %v56_v14 = vmul.f32 %v506_v13, %v506_v13  ;;  %v76_v12 = vmul.f32 %v381_v3, %v506_v13  ;;  %v375_v13 = vld [vmem:[%s586_s5 + $0x18] sm:$0xff] }
  0x7c   :  { %224 = vmatpush.bf16.msra.mxu1 %v375_v13 }
  0x7d   :  { %v58_v15 = vsel %vm38_vm0, %v56_v14, 0.0 }
  0x7e   :  { %59 = vadd.xlane.f32.xlu1 %v58_v15  ;;  %v44_v16 = vpop.xlane.xlu0 %43 }
  0x7f   :  { %v53_v17 = vmul.f32 %v502_v10, %v44_v16 }
  0x81   :  { %v513_v18 = vsub.f32 %v498_v2, %v53_v17 }
  0x83   :  { %v57_v19 = vmul.f32 %v513_v18, %v513_v18  ;;  %v77_v16 = vmul.f32 %v381_v3, %v513_v18  ;;  %v374_v18 = vld [vmem:[%s586_s5 + $0x10] sm:$0xff] }
  0x84   :  { %225 = vmatpush.bf16.msra.mxu1 %v374_v18 }
  0x85   :  { %v61_v20 = vsel %vm38_vm0, %v57_v19, 0.0 }
  0x86   :  { %62 = vadd.xlane.f32.xlu1 %v61_v20  ;;  %v382_v20 = vld [vmem:[%s583_s2] ss:$0 sm:$0xff] }
  0x88   :  { %226 = vmatpush.bf16.msra.mxu1 %v373_v26 }
  0x8c   :  { %227 = vmatpush.bf16.msra.mxu1 %v372_v28 }
  0xf1   :  { %v60_v29 = vpop.xlane.xlu1 %59 }
  0xf2   :  { %v71_v31 = vmul.f32 %v518_v27, %v60_v29 }
  0xf4   :  { %391 = vrsqrt.f32 %v71_v31  ;;  %vm85_vm3 = vcmp.eq.f32.partialorder %v71_v31, inf  ;;  %v88_v44 = vand.u32 2147483648, %v71_v31  ;;  %vm87_vm4 = vcmp.eq.f32.partialorder %v71_v31, 0.0 }
  0xf9   :  { %v63_v32 = vpop.xlane.xlu1 %62 }
  0xfa   :  { %v392_v33 = vpop.eup %391  ;;  %v72_v34 = vmul.f32 %v518_v27, %v63_v32 }
  0xfb   :  { %v79_v35 = vmul.f32 %v392_v33, %v71_v31 }
  0xfc   :  { %393 = vrsqrt.f32 %v72_v34  ;;  %vm97_vm5 = vcmp.eq.f32.partialorder %v72_v34, inf  ;;  %v100_v52 = vand.u32 2147483648, %v72_v34  ;;  %vm99_vm6 = vcmp.eq.f32.partialorder %v72_v34, 0.0 }
  0xfd   :  { %v80_v36 = vmul.f32 %v392_v33, %v79_v35 }
  0xff   :  { %v81_v37 = vmul.f32 0.5, %v80_v36 }
 0x101   :  { %v82_v38 = vsub.f32 1.5, %v81_v37  ;;  %v384_v37 = vld [vmem:[%s587_s6] ss:$0 sm:$0xff] }
 0x102   :  { %v394_v39 = vpop.eup %393 }
 0x103   :  { %v83_v40 = vmul.f32 %v392_v33, %v82_v38  ;;  %v91_v41 = vmul.f32 %v394_v39, %v72_v34 }
 0x105   :  { %v84_v42 = vmul.f32 %v83_v40, %v71_v31  ;;  %v92_v43 = vmul.f32 %v394_v39, %v91_v41 }
 0x107   :  { %v86_v45 = vsel %vm85_vm3, %v71_v31, %v84_v42  ;;  %v93_v46 = vmul.f32 0.5, %v92_v43 }
 0x108   :  { %v89_v47 = vsel %vm87_vm4, %v88_v44, %v86_v45 }
 0x109   :  { %v94_v48 = vsub.f32 1.5, %v93_v46  ;;  %v102_v49 = vadd.f32 1e-06, %v89_v47 }
 0x10b   :  { %v95_v50 = vmul.f32 %v394_v39, %v94_v48  ;;  %395 = vrcp.f32 %v102_v49  ;;  %v115_v62 = vand.u32 2147483648, %v102_v49  ;;  %vm109_vm8 = vweird.f32 %v102_v49 }
 0x10c   :  { %v113_v63 = vand.u32 2147483647, %v102_v49 }
 0x10d   :  { %v96_v51 = vmul.f32 %v95_v50, %v72_v34  ;;  %v116_v6 = vor.u32 1.1754944e-38, %v115_v62 }
 0x10e   :  { %vm114_vm10 = vcmp.eq.f32.partialorder %v113_v63, 8.507059e+37 }
 0x10f   :  { %v98_v53 = vsel %vm97_vm5, %v72_v34, %v96_v51 }
 0x110   :  { %v101_v54 = vsel %vm99_vm6, %v100_v52, %v98_v53 }
 0x111   :  { %v396_v55 = vpop.eup %395  ;;  %v103_v56 = vadd.f32 1e-06, %v101_v54 }
 0x112   :  { %v105_v57 = vmul.f32 %v396_v55, %v102_v49  ;;  %vm110_vm7 = vweird.f32 %v396_v55 }
 0x113   :  { %397 = vrcp.f32 %v103_v56  ;;  %vm111_vm9 = vmor %vm109_vm8, %vm110_vm7  ;;  %v130_v7 = vand.u32 2147483648, %v103_v56  ;;  %v128_v9 = vand.u32 2147483647, %v103_v56  ;;  %vm124_vm12 = vweird.f32 %v103_v56 }
 0x114   :  { %v106_v58 = vsub.f32 1.0, %v105_v57 }
 0x115   :  { %v131_v15 = vor.u32 1.1754944e-38, %v130_v7  ;;  %vm129_vm14 = vcmp.eq.f32.partialorder %v128_v9, 8.507059e+37 }
 0x116   :  { %v107_v59 = vmul.f32 %v396_v55, %v106_v58 }
 0x118   :  { %v108_v60 = vadd.f32 %v396_v55, %v107_v59 }
 0x119   :  { %v398_v61 = vpop.eup %397 }
 0x11a   :  { %v120_v1 = vmul.f32 %v398_v61, %v103_v56  ;;  %v112_v4 = vsel %vm111_vm9, %v396_v55, %v108_v60  ;;  %vm125_vm11 = vweird.f32 %v398_v61 }
 0x11b   :  { %v117_v11 = vsel %vm114_vm10, %v116_v6, %v112_v4  ;;  %vm126_vm13 = vmor %vm124_vm12, %vm125_vm11 }
 0x11c   :  { %v121_v5 = vsub.f32 1.0, %v120_v1  ;;  %v118_v17 = vmul.f32 %v117_v11, %v76_v12 }
 0x11e   :  { %v122_v8 = vmul.f32 %v398_v61, %v121_v5  ;;  %v137_v23 = vadd.f32 %v382_v20, %v118_v17 }
 0x120   :  { %v123_v14 = vadd.f32 %v398_v61, %v122_v8 }
 0x122   :  { %v127_v19 = vsel %vm126_vm13, %v398_v61, %v123_v14 }
 0x123   :  { %v132_v21 = vsel %vm129_vm14, %v131_v15, %v127_v19 }
 0x124   :  { %v133_v22 = vmul.f32 %v132_v21, %v77_v16 }
 0x126   :  { %v138_v24 = vadd.f32 %v382_v20, %v133_v22 }
 0x128   :  { %v139_v25 = vpack.c.bf16 %v138_v24, %v137_v23  ;;  %v385_v23 = vld [vmem:[%s588_s7] ss:$0 sm:$0xff]  ;;  %s435_s7 = smov [#allocation2]  }
 0x12a   :  { %352 = vmatmul.msk.bf16.vlgmr.msra.gmra.mxu0 %vm38_vm0, %v139_v25 }
 0x1a7   :  { %v172_v29 = vpop.f32.mrf.mxu0 }
 0x1a8   :  { %v173_v31 = vadd.f32 %v383_v30, %v172_v29 }
 0x1aa   :  { %v177_v34 = vmax.f32 %v173_v31, 0.0  ;;  %v386_v31 = vld [vmem:[%s589_s8] ss:$0 sm:$0xff]  ;;  %s330_s8 = sshll.u32 %s435_s7, 4  ;;  %s331_s8 = int_to_ptr.vmem [resolvable:$true] %s330_s8 }
 0x1af   :  { %v174_v32 = vpop.f32.mrf.mxu0 }
 0x1b0   :  { %v175_v33 = vadd.f32 %v383_v30, %v174_v32 }
 0x1b2   :  { %v178_v35 = vmax.f32 %v175_v33, 0.0 }
 0x1b4   :  { %v179_v36 = vpack.c.bf16 %v178_v35, %v177_v34 }
 0x1b6   :  { %369 = vmatmul.msk.bf16.vlgmr.msra.gmra.mxu1 %vm216_vm15, %v179_v36 }
 0x233   :  { %v229_v38 = vpop.f32.mrf.mxu1 }
 0x234   :  { %v230_v39 = vadd.f32 %v384_v37, %v229_v38 }
 0x236   :  { %v234_v40 = vadd.f32 %v230_v39, %v491_v0 }
 0x238   :  { %v238_v41 = vsel %vm38_vm0, %v234_v40, 0.0 }
 0x239   :  { %239 = vadd.xlane.f32.xlu2 %v238_v41 }
 0x23b   :  { %v231_v42 = vpop.f32.mrf.mxu1 }
 0x23c   :  { %v232_v43 = vadd.f32 %v384_v37, %v231_v42 }
 0x23e   :  { %v235_v44 = vadd.f32 %v232_v43, %v498_v2 }
 0x240   :  { %v241_v45 = vsel %vm38_vm0, %v235_v44, 0.0 }
 0x241   :  { %242 = vadd.xlane.f32.xlu2 %v241_v45 }
 0x2ac   :  { %v240_v46 = vpop.xlane.xlu2 %239 }
 0x2ad   :  { %v244_v47 = vmul.f32 %v240_v46, %v502_v10 }
 0x2af   :  { %v246_v48 = vsub.f32 %v234_v40, %v244_v47 }
 0x2b1   :  { %v248_v49 = vmul.f32 %v246_v48, %v246_v48  ;;  %v261_v28 = vmul.f32 %v385_v23, %v246_v48 }
 0x2b3   :  { %v250_v50 = vsel %vm38_vm0, %v248_v49, 0.0 }
 0x2b4   :  { %251 = vadd.xlane.f32.xlu0 %v250_v50  ;;  %v243_v51 = vpop.xlane.xlu2 %242 }
 0x2b5   :  { %v245_v0 = vmul.f32 %v243_v51, %v502_v10 }
 0x2b7   :  { %v562_v52 = vsub.f32 %v235_v44, %v245_v0 }
 0x2b9   :  { %v249_v53 = vmul.f32 %v562_v52, %v562_v52  ;;  %v262_v41 = vmul.f32 %v385_v23, %v562_v52 }
 0x2bb   :  { %v253_v2 = vsel %vm38_vm0, %v249_v53, 0.0 }
 0x2bc   :  { %254 = vadd.xlane.f32.xlu1 %v253_v2 }
 0x327   :  { %v252_v54 = vpop.xlane.xlu0 %251 }
 0x328   :  { %v256_v55 = vmul.f32 %v252_v54, %v518_v27 }
 0x32a   :  { %399 = vrsqrt.f32 %v256_v55  ;;  %vm270_vm1 = vcmp.eq.f32.partialorder %v256_v55, inf  ;;  %v273_v5 = vand.u32 2147483648, %v256_v55  ;;  %vm272_vm2 = vcmp.eq.f32.partialorder %v256_v55, 0.0 }
 0x32f   :  { %v255_v56 = vpop.xlane.xlu1 %254 }
 0x330   :  { %v400_v57 = vpop.eup %399  ;;  %v257_v58 = vmul.f32 %v255_v56, %v518_v27 }
 0x331   :  { %v264_v59 = vmul.f32 %v400_v57, %v256_v55 }
 0x332   :  { %401 = vrsqrt.f32 %v257_v58  ;;  %vm282_vm3 = vcmp.eq.f32.partialorder %v257_v58, inf  ;;  %v285_v14 = vand.u32 2147483648, %v257_v58  ;;  %vm284_vm4 = vcmp.eq.f32.partialorder %v257_v58, 0.0 }
 0x333   :  { %v265_v60 = vmul.f32 %v400_v57, %v264_v59 }
 0x335   :  { %v266_v10 = vmul.f32 0.5, %v265_v60 }
 0x337   :  { %v267_v61 = vsub.f32 1.5, %v266_v10 }
 0x338   :  { %v402_v62 = vpop.eup %401 }
 0x339   :  { %v268_v63 = vmul.f32 %v400_v57, %v267_v61  ;;  %v276_v1 = vmul.f32 %v402_v62, %v257_v58 }
 0x33b   :  { %v269_v3 = vmul.f32 %v268_v63, %v256_v55  ;;  %v277_v4 = vmul.f32 %v402_v62, %v276_v1 }
 0x33d   :  { %v271_v6 = vsel %vm270_vm1, %v256_v55, %v269_v3  ;;  %v278_v7 = vmul.f32 0.5, %v277_v4 }
 0x33e   :  { %v274_v8 = vsel %vm272_vm2, %v273_v5, %v271_v6 }
 0x33f   :  { %v287_v9 = vadd.f32 1e-06, %v274_v8  ;;  %v279_v11 = vsub.f32 1.5, %v278_v7 }
 0x341   :  { %403 = vrcp.f32 %v287_v9  ;;  %v280_v27 = vmul.f32 %v402_v62, %v279_v11  ;;  %v300_v22 = vand.u32 2147483648, %v287_v9  ;;  %v298_v25 = vand.u32 2147483647, %v287_v9 }
 0x342   :  { %vm294_vm6 = vweird.f32 %v287_v9 }
 0x343   :  { %v281_v12 = vmul.f32 %v280_v27, %v257_v58  ;;  %v301_v26 = vor.u32 1.1754944e-38, %v300_v22  ;;  %vm299_vm8 = vcmp.eq.f32.partialorder %v298_v25, 8.507059e+37 }
 0x345   :  { %v283_v15 = vsel %vm282_vm3, %v257_v58, %v281_v12 }
 0x346   :  { %v286_v16 = vsel %vm284_vm4, %v285_v14, %v283_v15 }
 0x347   :  { %v404_v17 = vpop.eup %403  ;;  %v288_v19 = vadd.f32 1e-06, %v286_v16 }
 0x348   :  { %v290_v20 = vmul.f32 %v404_v17, %v287_v9  ;;  %vm295_vm5 = vweird.f32 %v404_v17 }
 0x349   :  { %405 = vrcp.f32 %v288_v19  ;;  %vm296_vm7 = vmor %vm294_vm6, %vm295_vm5  ;;  %v315_v35 = vand.u32 2147483648, %v288_v19  ;;  %v313_v37 = vand.u32 2147483647, %v288_v19  ;;  %vm309_vm10 = vweird.f32 %v288_v19 }
 0x34a   :  { %v291_v21 = vsub.f32 1.0, %v290_v20 }
 0x34b   :  { %v316_v40 = vor.u32 1.1754944e-38, %v315_v35  ;;  %vm314_vm12 = vcmp.eq.f32.partialorder %v313_v37, 8.507059e+37 }
 0x34c   :  { %v292_v24 = vmul.f32 %v404_v17, %v291_v21 }
 0x34e   :  { %v293_v13 = vadd.f32 %v404_v17, %v292_v24 }
 0x34f   :  { %v406_v18 = vpop.eup %405 }
 0x350   :  { %v297_v29 = vsel %vm296_vm7, %v404_v17, %v293_v13  ;;  %v305_v30 = vmul.f32 %v406_v18, %v288_v19  ;;  %vm310_vm9 = vweird.f32 %v406_v18 }
 0x351   :  { %v302_v32 = vsel %vm299_vm8, %v301_v26, %v297_v29  ;;  %vm311_vm11 = vmor %vm309_vm10, %vm310_vm9 }
 0x352   :  { %v303_v33 = vmul.f32 %v302_v32, %v261_v28  ;;  %v306_v34 = vsub.f32 1.0, %v305_v30 }
 0x354   :  { %v307_v36 = vmul.f32 %v406_v18, %v306_v34  ;;  %v322_v38 = vadd.f32 %v386_v31, %v303_v33 }
 0x356   :  { %v308_v39 = vadd.f32 %v406_v18, %v307_v36  ;;  %324 = vst.msk [vmem:[#allocation2] sm:$0xff] %vm38_vm0, %v322_v38 }
 0x358   :  { %v312_v42 = vsel %vm311_vm11, %v406_v18, %v308_v39 }
 0x359   :  { %v317_v43 = vsel %vm314_vm12, %v316_v40, %v312_v42 }
 0x35a   :  { %v318_v44 = vmul.f32 %v317_v43, %v262_v41 }
 0x35c   :  { %v323_v45 = vadd.f32 %v386_v31, %v318_v44 }
 0x35e   :  { %325 = vst.msk [vmem:[#allocation2 + $0x8] sm:$0xff] %vm38_vm0, %v323_v45 }
 0x35f   :  { %338 = dma.vmem_to_hbm [thread:$0]  %s331_s8, 256, %s333_s11, [#allocation3], %s436_s12, %s436_s12, %s437_s0  }
 0x360   :  { %431 = dma.done.wait [#allocation3], 256  }
 0x361   :  { %432 = vsyncadd [#allocation3], 4294967040 }
 0x362   :  { %343 = vsyncpa [#allocation3], 1 }

</bundles_post_ra>
